<compile_context>
chip_gen: v6e
topology: v6e:2x2x1
jax: 0.10.0
libtpu: 0.0.40
codegen_flags: <defaults>
</compile_context>

<pallas_src>
import jax
import jax.numpy as jnp
from jax.experimental import pallas as pl
from jax.experimental.pallas import tpu as pltpu


# ------------------------------- utilities -------------------------------- #
def _round_up(x, m):
    return (x + m - 1) // m * m


def _pad2(a, rows, cols):
    return jnp.pad(a, ((0, rows - a.shape[0]), (0, cols - a.shape[1])))


def _agg_tiles(n_pad):
    """Streaming-path tiles.  n_pad is a multiple of 512.

    Row tile keeps >= 2 tiles (v7x megacore sharding of the parallel axis);
    reduction tile is the largest of 2048/1024/512 dividing n_pad.
    """
    tm = 512 if n_pad >= 1024 else n_pad // 2
    tk = 512
    for cand in (2048, 1024):
        if n_pad % cand == 0:
            tk = cand
            break
    return tm, tk


def _vmem_estimate(tm, tk, n_pad, hid_pad, cls_pad):
    """Rough double-buffered VMEM footprint of the streaming aggregation."""
    a_tile = 2 * tm * tk * 2             # bf16 A_hat tile, double-buffered
    xw_res = 2 * n_pad * hid_pad * 2     # resident XW1 (counted x2, conservative)
    consts = 2 * (hid_pad * 4 + hid_pad * cls_pad * 2 + cls_pad * 4)
    out_blk = 2 * tm * max(hid_pad, cls_pad) * 4
    acc = tm * hid_pad * 4
    return a_tile + xw_res + consts + out_blk + acc


def _agg_compiler_params(tm, tk, n_pad, hid_pad, cls_pad):
    params = dict(dimension_semantics=("parallel", "arbitrary"))
    est = _vmem_estimate(tm, tk, n_pad, hid_pad, cls_pad)
    if est > (14 << 20):  # v5e scoped-VMEM default is 16 MiB; raise explicitly
        params["vmem_limit_bytes"] = int(min(est + (8 << 20), 64 << 20))
    return pltpu.CompilerParams(**params)


# ----------------------------- Pallas kernels ------------------------------ #
def _fused_gcn_kernel(a_ref, x_ref, w1_ref, b1_ref, w2_ref, b2_ref, o_ref):
    """Whole 2-layer GCN, everything VMEM-resident (A_hat read once)."""
    cdt = a_ref.dtype
    xw1 = jnp.dot(x_ref[...], w1_ref[...], preferred_element_type=jnp.float32)
    h = jnp.maximum(
        jnp.dot(a_ref[...], xw1.astype(cdt), preferred_element_type=jnp.float32)
        + b1_ref[...],
        0.0,
    )
    xw2 = jnp.dot(h.astype(cdt), w2_ref[...], preferred_element_type=jnp.float32)
    o_ref[...] = (
        jnp.dot(a_ref[...], xw2.astype(cdt), preferred_element_type=jnp.float32)
        + b2_ref[...]
    )


def fused_forward(a_pad, x_pad, w1_pad, b1_2d, w2_pad, b2_2d):
    n_pad = a_pad.shape[0]
    cls_pad = w2_pad.shape[1]
    # No grid: whole arrays mapped into VMEM (small-graph path only).
    return pl.pallas_call(
        _fused_gcn_kernel,
        out_shape=jax.ShapeDtypeStruct((n_pad, cls_pad), jnp.float32),
    )(a_pad, x_pad, w1_pad, b1_2d, w2_pad, b2_2d)


def _xw_kernel(x_ref, w_ref, o_ref):
    """Feature transform: one row tile of X times the full (small) W."""
    o_ref[...] = jnp.dot(
        x_ref[...], w_ref[...], preferred_element_type=jnp.float32
    ).astype(o_ref.dtype)


def feature_transform(x, w, tm):
    """XW = X @ W, tiled over row tiles of X (computed exactly once)."""
    n_pad, f_in = x.shape
    f_out = w.shape[1]
    return pl.pallas_call(
        _xw_kernel,
        out_shape=jax.ShapeDtypeStruct((n_pad, f_out), x.dtype),
        grid=(n_pad // tm,),
        in_specs=[
            pl.BlockSpec((tm, f_in), lambda i: (i, 0)),
            pl.BlockSpec((f_in, f_out), lambda i: (0, 0)),
        ],
        out_specs=pl.BlockSpec((tm, f_out), lambda i: (i, 0)),
        compiler_params=pltpu.CompilerParams(dimension_semantics=("parallel",)),
    )(x, w)


def _agg_l1_kernel(a_ref, xw_ref, b1_ref, w2_ref, o_ref, acc_ref):
    """Layer-1 aggregation with fused bias + ReLU + layer-2 transform.

    acc[i] = sum_k A_hat[i,k] @ XW1[k]   (XW1 VMEM-resident, sliced per k)
    out[i] = relu(acc[i] + b1) @ W2      (written as bf16 xw2)
    """
    k = pl.program_id(1)

    @pl.when(k == 0)
    def _():
        acc_ref[...] = jnp.zeros_like(acc_ref)

    tk = a_ref.shape[1]
    start = pl.multiple_of(k * tk, tk)
    acc_ref[...] += jnp.dot(
        a_ref[...], xw_ref[pl.ds(start, tk), :], preferred_element_type=jnp.float32
    )

    @pl.when(k == pl.num_programs(1) - 1)
    def _():
        h = jnp.maximum(acc_ref[...] + b1_ref[...], 0.0)
        o_ref[...] = jnp.dot(
            h.astype(w2_ref.dtype), w2_ref[...], preferred_element_type=jnp.float32
        ).astype(o_ref.dtype)


def aggregate_fused_l1(a_pad, xw1, b1_2d, w2, tm, tk, *, out_dtype):
    n_pad = a_pad.shape[0]
    hid_pad = xw1.shape[1]
    cls_pad = w2.shape[1]
    return pl.pallas_call(
        _agg_l1_kernel,
        out_shape=jax.ShapeDtypeStruct((n_pad, cls_pad), out_dtype),
        grid=(n_pad // tm, n_pad // tk),
        in_specs=[
            pl.BlockSpec((tm, tk), lambda i, k: (i, k)),            # A_hat (streamed)
            pl.BlockSpec((n_pad, hid_pad), lambda i, k: (0, 0)),    # XW1 resident
            pl.BlockSpec((1, hid_pad), lambda i, k: (0, 0)),        # b1 resident
            pl.BlockSpec((hid_pad, cls_pad), lambda i, k: (0, 0)),  # W2 resident
        ],
        out_specs=pl.BlockSpec((tm, cls_pad), lambda i, k: (i, 0)),
        scratch_shapes=[pltpu.VMEM((tm, hid_pad), jnp.float32)],
        compiler_params=_agg_compiler_params(tm, tk, n_pad, hid_pad, cls_pad),
    )(a_pad, xw1, b1_2d, w2)


def _agg_out_kernel(a_ref, xw_ref, b_ref, o_ref, acc_ref):
    """Layer-2 aggregation: out[i] = sum_k A_hat[i,k] @ XW2[k] + b2."""
    k = pl.program_id(1)

    @pl.when(k == 0)
    def _():
        acc_ref[...] = jnp.zeros_like(acc_ref)

    tk = a_ref.shape[1]
    start = pl.multiple_of(k * tk, tk)
    acc_ref[...] += jnp.dot(
        a_ref[...], xw_ref[pl.ds(start, tk), :], preferred_element_type=jnp.float32
    )

    @pl.when(k == pl.num_programs(1) - 1)
    def _():
        o_ref[...] = (acc_ref[...] + b_ref[...]).astype(o_ref.dtype)


def aggregate_out(a_pad, xw2, b2_2d, tm, tk):
    n_pad = a_pad.shape[0]
    cls_pad = xw2.shape[1]
    return pl.pallas_call(
        _agg_out_kernel,
        out_shape=jax.ShapeDtypeStruct((n_pad, cls_pad), jnp.float32),
        grid=(n_pad // tm, n_pad // tk),
        in_specs=[
            pl.BlockSpec((tm, tk), lambda i, k: (i, k)),           # A_hat (streamed)
            pl.BlockSpec((n_pad, cls_pad), lambda i, k: (0, 0)),   # XW2 resident
            pl.BlockSpec((1, cls_pad), lambda i, k: (0, 0)),       # b2 resident
        ],
        out_specs=pl.BlockSpec((tm, cls_pad), lambda i, k: (i, 0)),
        scratch_shapes=[pltpu.VMEM((tm, cls_pad), jnp.float32)],
        compiler_params=_agg_compiler_params(tm, tk, n_pad, cls_pad, cls_pad),
    )(a_pad, xw2, b2_2d)


# ------------------------------- Glue (JAX) -------------------------------- #
def build_normalized_adjacency(edge_index, num_nodes):
    """Dense D^{-1/2} (A + I) D^{-1/2} following PyG gcn_norm.

    Pre-existing self-loops are dropped and every node gets exactly one
    weight-1 self-loop (add_remaining_self_loops).  Duplicate (src, dst)
    pairs are summed, matching PyG edge-weight accumulation.  Built with an
    O(E) scatter-add.  A_hat[dst, src] holds the edge weight so A_hat @ X
    aggregates source features into targets (source_to_target flow).
    """
    src = edge_index[0]
    dst = edge_index[1]
    keep = (src != dst).astype(jnp.float32)
    a = jnp.zeros((num_nodes, num_nodes), jnp.float32)
    a = a.at[dst, src].add(keep)
    a = a + jnp.eye(num_nodes, dtype=jnp.float32)  # self-loops
    deg = a.sum(axis=1)
    dinv_sqrt = jax.lax.rsqrt(jnp.maximum(deg, 1e-12))
    return dinv_sqrt[:, None] * a * dinv_sqrt[None, :]


def glorot(key, fan_in, fan_out):
    limit = jnp.sqrt(6.0 / (fan_in + fan_out))
    return jax.random.uniform(
        key, (fan_in, fan_out), jnp.float32, minval=-limit, maxval=limit
    )


class BaseGraphPallas:
    """GCN BaseGraph (aggr='gcn', layers=2): conv(in->hid)+relu, conv(hid->cls)."""

    def __init__(self, in_feat, num_class, hidden_dim, key,
                 compute_dtype=jnp.bfloat16, fused_max_nodes=1024):
        self.in_feat = in_feat
        self.num_class = num_class
        self.hidden_dim = hidden_dim
        self.compute_dtype = compute_dtype
        self.fused_max_nodes = fused_max_nodes  # single-call resident path cap
        k1, k2 = jax.random.split(key)
        # GCNConv init: Glorot weight, zero bias (deterministic, synthetic).
        self.w1 = glorot(k1, in_feat, hidden_dim)
        self.b1 = jnp.zeros((hidden_dim,), jnp.float32)
        self.w2 = glorot(k2, hidden_dim, num_class)
        self.b2 = jnp.zeros((num_class,), jnp.float32)

    def __call__(self, x, edge_index, a_hat=None, force_streaming=False):
        n = x.shape[0]
        cdt = self.compute_dtype
        n_pad = _round_up(n, 512)                 # never fall back to 128 tiles
        f_in_pad = _round_up(self.in_feat, 128)
        hid_pad = _round_up(self.hidden_dim, 128)
        cls_pad = _round_up(self.num_class, 128)

        # A_hat may be precomputed by the caller (static edge_index) and reused.
        if a_hat is None:
            a_hat = build_normalized_adjacency(edge_index, n)
        a_pad = _pad2(a_hat, n_pad, n_pad).astype(cdt)
        x_pad = _pad2(x, n_pad, f_in_pad).astype(cdt)

        w1_pad = _pad2(self.w1, f_in_pad, hid_pad).astype(cdt)
        w2_pad = _pad2(self.w2, hid_pad, cls_pad).astype(cdt)
        b1_pad = jnp.pad(
            self.b1, (0, hid_pad - self.hidden_dim)).reshape(1, hid_pad)
        b2_pad = jnp.pad(
            self.b2, (0, cls_pad - self.num_class)).reshape(1, cls_pad)

        if (not force_streaming) and n_pad <= self.fused_max_nodes:
            # Single-call path: A_hat is read from HBM exactly once for both
            # layers (fits every generation's scoped-VMEM default, incl. v7x).
            out = fused_forward(a_pad, x_pad, w1_pad, b1_pad, w2_pad, b2_pad)
        else:
            # Streaming path: stream A_hat tiles; XW1/W2/biases VMEM-resident.
            tm, tk = _agg_tiles(n_pad)
            xw1 = feature_transform(x_pad, w1_pad, tm)              # X @ W1 once
            xw2 = aggregate_fused_l1(a_pad, xw1, b1_pad, w2_pad,    # relu(A@XW1+b1)@W2
                                     tm, tk, out_dtype=cdt)
            out = aggregate_out(a_pad, xw2, b2_pad, tm, tk)         # A@XW2 + b2
        return out[:n, : self.num_class]


# ------------------------------- References -------------------------------- #
def reference_forward_f32(model, x, edge_index):
    a_hat = build_normalized_adjacency(edge_index, x.shape[0])
    h = jnp.maximum(a_hat @ (x @ model.w1) + model.b1, 0.0)
    return a_hat @ (h @ model.w2) + model.b2


def reference_forward_matched(model, x, edge_index):
    """Same math with the same bf16 casts as the kernels (tight check)."""
    cdt = model.compute_dtype
    a = build_normalized_adjacency(edge_index, x.shape[0]).astype(cdt)
    xw1 = jnp.dot(x.astype(cdt), model.w1.astype(cdt),
                  preferred_element_type=jnp.float32).astype(cdt)
    h = jnp.maximum(
        jnp.dot(a, xw1, preferred_element_type=jnp.float32) + model.b1, 0.0)
    xw2 = jnp.dot(h.astype(cdt), model.w2.astype(cdt),
                  preferred_element_type=jnp.float32).astype(cdt)
    return jnp.dot(a, xw2, preferred_element_type=jnp.float32) + model.b2


# --------------------------------- Main ------------------------------------ #
if __name__ == "__main__":
    key = jax.random.PRNGKey(0)
    k_x, k_e, k_p = jax.random.split(key, 3)

    num_nodes = 16
    in_feat = 8
    hidden_dim = 32
    num_class = 4
    num_edges = 40

    x = jax.random.normal(k_x, (num_nodes, in_feat), jnp.float32)
    edge_index = jax.random.randint(
        k_e, (2, num_edges), 0, num_nodes, dtype=jnp.int32
    )

    model = BaseGraphPallas(in_feat, num_class, hidden_dim, k_p)

    # Exercise both code paths: fused single-call (small graph) and streaming.
    out_fused = jax.block_until_ready(model(x, edge_index))
    out_stream = jax.block_until_ready(model(x, edge_index, force_streaming=True))
    assert out_fused.shape == (num_nodes, num_class)
    assert out_stream.shape == (num_nodes, num_class)

    # Tight check against a reference using the same bf16/f32 mixed precision.
    ref_matched = reference_forward_matched(model, x, edge_index)
    for out in (out_fused, out_stream):
        assert jnp.allclose(out, ref_matched, atol=2e-3, rtol=2e-3), (
            float(jnp.max(jnp.abs(out - ref_matched))))

    # Loose sanity check against full-f32 math (bf16 input rounding budget).
    ref_f32 = reference_forward_f32(model, x, edge_index)
    for out in (out_fused, out_stream):
        assert jnp.allclose(out, ref_f32, atol=5e-2, rtol=5e-2), (
            float(jnp.max(jnp.abs(out - ref_f32))))

    print("KERNEL_OK")
</pallas_src>

<mosaic_0001>
module attributes {stable_mosaic.version = 11 : i64} {
  func.func @_fused_gcn_kernel(%arg0: memref<512x512xbf16, #tpu.memory_space<vmem>>, %arg1: memref<512x128xbf16, #tpu.memory_space<vmem>>, %arg2: memref<128x128xbf16, #tpu.memory_space<vmem>>, %arg3: memref<1x128xf32, #tpu.memory_space<vmem>>, %arg4: memref<128x128xbf16, #tpu.memory_space<vmem>>, %arg5: memref<1x128xf32, #tpu.memory_space<vmem>>, %arg6: memref<512x128xf32, #tpu.memory_space<vmem>>) attributes {dimension_semantics = [], scalar_prefetch = 0 : i64, scratch_operands = 0 : i64, tpu.core_type = #tpu.core_type<tc>} {
    %c0 = arith.constant 0 : index
    %c0_0 = arith.constant 0 : index
    %0 = vector.load %arg1[%c0, %c0_0] : memref<512x128xbf16, #tpu.memory_space<vmem>>, vector<512x128xbf16>
    %c0_1 = arith.constant 0 : index
    %c0_2 = arith.constant 0 : index
    %1 = vector.load %arg2[%c0_1, %c0_2] : memref<128x128xbf16, #tpu.memory_space<vmem>>, vector<128x128xbf16>
    %cst = arith.constant dense<0.000000e+00> : vector<512x128xf32>
    %2 = tpu.matmul %0, %1, %cst {dimension_numbers = #tpu.dot_dimension_numbers<[1], [0], [0], [1], [0, 0, 1, 1], [], []>} : vector<512x128xbf16>, vector<128x128xbf16>, vector<512x128xf32> -> vector<512x128xf32>
    %c0_3 = arith.constant 0 : index
    %c0_4 = arith.constant 0 : index
    %3 = vector.load %arg0[%c0_3, %c0_4] : memref<512x512xbf16, #tpu.memory_space<vmem>>, vector<512x512xbf16>
    %4 = arith.truncf %2 : vector<512x128xf32> to vector<512x128xbf16>
    %cst_5 = arith.constant dense<0.000000e+00> : vector<512x128xf32>
    %5 = tpu.matmul %3, %4, %cst_5 {dimension_numbers = #tpu.dot_dimension_numbers<[1], [0], [0], [1], [0, 0, 1, 1], [], []>} : vector<512x512xbf16>, vector<512x128xbf16>, vector<512x128xf32> -> vector<512x128xf32>
    %c0_6 = arith.constant 0 : index
    %c0_7 = arith.constant 0 : index
    %6 = vector.load %arg3[%c0_6, %c0_7] : memref<1x128xf32, #tpu.memory_space<vmem>>, vector<1x128xf32>
    %7 = vector.broadcast %6 : vector<1x128xf32> to vector<512x128xf32>
    %8 = arith.addf %5, %7 : vector<512x128xf32>
    %cst_8 = arith.constant 0.000000e+00 : f32
    %9 = vector.broadcast %cst_8 : f32 to vector<512x128xf32>
    %10 = arith.maximumf %8, %9 : vector<512x128xf32>
    %11 = arith.truncf %10 : vector<512x128xf32> to vector<512x128xbf16>
    %c0_9 = arith.constant 0 : index
    %c0_10 = arith.constant 0 : index
    %12 = vector.load %arg4[%c0_9, %c0_10] : memref<128x128xbf16, #tpu.memory_space<vmem>>, vector<128x128xbf16>
    %cst_11 = arith.constant dense<0.000000e+00> : vector<512x128xf32>
    %13 = tpu.matmul %11, %12, %cst_11 {dimension_numbers = #tpu.dot_dimension_numbers<[1], [0], [0], [1], [0, 0, 1, 1], [], []>} : vector<512x128xbf16>, vector<128x128xbf16>, vector<512x128xf32> -> vector<512x128xf32>
    %c0_12 = arith.constant 0 : index
    %c0_13 = arith.constant 0 : index
    %14 = vector.load %arg0[%c0_12, %c0_13] : memref<512x512xbf16, #tpu.memory_space<vmem>>, vector<512x512xbf16>
    %15 = arith.truncf %13 : vector<512x128xf32> to vector<512x128xbf16>
    %cst_14 = arith.constant dense<0.000000e+00> : vector<512x128xf32>
    %16 = tpu.matmul %14, %15, %cst_14 {dimension_numbers = #tpu.dot_dimension_numbers<[1], [0], [0], [1], [0, 0, 1, 1], [], []>} : vector<512x512xbf16>, vector<512x128xbf16>, vector<512x128xf32> -> vector<512x128xf32>
    %c0_15 = arith.constant 0 : index
    %c0_16 = arith.constant 0 : index
    %17 = vector.load %arg5[%c0_15, %c0_16] : memref<1x128xf32, #tpu.memory_space<vmem>>, vector<1x128xf32>
    %18 = vector.broadcast %17 : vector<1x128xf32> to vector<512x128xf32>
    %19 = arith.addf %16, %18 : vector<512x128xf32>
    %c0_17 = arith.constant 0 : index
    %c0_18 = arith.constant 0 : index
    %20 = vector.load %arg6[%c0_17, %c0_18] : memref<512x128xf32, #tpu.memory_space<vmem>>, vector<512x128xf32>
    tpu.vector_store %arg6[%c0_17, %c0_18], %19 {strides = array<i32>} : memref<512x128xf32, #tpu.memory_space<vmem>>, vector<512x128xf32>,
    return
  }
}

</mosaic_0001>

<bundles_post_ra>
// kernel: tpu_custom_call.1
= control target key start
LH: loop header
LB: loop body
LE: loop exit
PB: predicated region body
PF: predicated region fallthrough
CT: control target
= control target key end

     0   :  { %11 = vsyncpa [#allocation3], 0  ;;  %s4918_s0 = inlined_call_operand.hbm [shape: bf16[512,512], index: 0, kind: input, shape index: {}]   ;;  %s4919_s1 = inlined_call_operand.hbm [shape: bf16[512,128], index: 1, kind: input, shape index: {}]   ;;  %s4920_s2 = inlined_call_operand.hbm [shape: bf16[128,128], index: 2, kind: input, shape index: {}]   ;;  %s4921_s3 = inlined_call_operand.vmem [shape: f32[1,128], index: 3, kind: input, shape index: {}]   ;;  %s4922_s4 = inlined_call_operand.hbm [shape: bf16[128,128], index: 4, kind: input, shape index: {}]   ;;  %s4923_s5 = inlined_call_operand.vmem [shape: f32[1,128], index: 5, kind: input, shape index: {}]   ;;  %s4924_s6 = inlined_call_operand.hbm [shape: f32[512,128], index: 6, kind: output, shape index: {}]  }
   0x1   :  { %12 = vsyncpa [#allocation6], 0 }
   0x2   :  { %13 = vsyncpa [#allocation9], 0 }
   0x3   :  { %14 = vsyncpa [#allocation4], 0  ;;  %s4162_s21 = smov [#allocation5]  }
   0x4   :  { %s32_s22 = sshll.u32 %s4162_s21, 4  ;;  %s33_s22 = int_to_ptr.vmem [resolvable:$true] %s32_s22 }
   0x5   :  { %s4062_s23 = scalar_lea.vmem %s33_s22, 4096  ;;  %p4067_p1 = scmp.lt.s32.totalorder %s33_s22, %s33_s22 }
   0x6   :  { %p4063_p0 = scmp.ne.s32.totalorder %s33_s22, %s4062_s23  ;;  %p4068_p2 = scmp.lt.s32.totalorder %s4062_s23, %s4062_s23 }
   0x8   :  { %p4069_p3 = por %p4068_p2, %p4067_p1 }
   0xa   :  { %p4070_p4 = pnand %p4069_p3, %p4063_p0 }
   0xc   :  { %4073 = shalt.err (!%p4070_p4)
}
   0xd   :  { %s4163_s24 = smov 64   ;;  %s4164_s25 = smov 4  }
   0xe   :  { %38 = dma.hbm_to_vmem [thread:$0]  %s4919_s1, 4096, %s33_s22, [#allocation6], %s4163_s24, %s4163_s24, %s4164_s25  }
   0xf   :  { %s4165_s28 = smov [#allocation2]  }
  0x10   :  { %s20_s29 = sshll.u32 %s4165_s28, 4  ;;  %s21_s29 = int_to_ptr.vmem [resolvable:$true] %s20_s29 }
  0x11   :  { %s4082_s30 = scalar_lea.vmem %s21_s29, 16384  ;;  %p4087_p6 = scmp.lt.s32.totalorder %s21_s29, %s21_s29 }
  0x12   :  { %p4083_p5 = scmp.ne.s32.totalorder %s21_s29, %s4082_s30  ;;  %p4088_p7 = scmp.lt.s32.totalorder %s4082_s30, %s4082_s30 }
  0x14   :  { %p4089_p8 = por %p4088_p7, %p4087_p6 }
  0x16   :  { %p4090_p9 = pnand %p4089_p8, %p4083_p5 }
  0x18   :  { %4093 = shalt.err (!%p4090_p9)
}
  0x19   :  { %s4166_s7 = smov 256   ;;  %s4167_s8 = smov 16  }
  0x1a   :  { %26 = dma.hbm_to_vmem [thread:$0]  %s4918_s0, 16384, %s21_s29, [#allocation3], %s4166_s7, %s4166_s7, %s4167_s8  }
  0x1b   :  { %s4168_s11 = smov [#allocation7]   ;;  %s4169_s13 = smov [#allocation8]  }
  0x1c   :  { %s44_s12 = sshll.u32 %s4168_s11, 4  ;;  %s58_s1 = sshll.u32 %s4169_s13, 4  ;;  %s45_s12 = int_to_ptr.vmem [resolvable:$true] %s44_s12  ;;  %s59_s1 = int_to_ptr.vmem [resolvable:$true] %s58_s1 }
  0x1d   :  { %s4102_s14 = scalar_lea.vmem %s45_s12, 1024  ;;  %p4107_p11 = scmp.lt.s32.totalorder %s45_s12, %s45_s12 }
  0x1e   :  { %p4103_p10 = scmp.ne.s32.totalorder %s45_s12, %s4102_s14  ;;  %p4108_p12 = scmp.lt.s32.totalorder %s4102_s14, %s4102_s14 }
  0x20   :  { %p4109_p13 = por %p4108_p12, %p4107_p11 }
  0x22   :  { %p4110_p0 = pnand %p4109_p13, %p4103_p10 }
  0x24   :  { %4113 = shalt.err (!%p4110_p0)
}
  0x25   :  { %50 = dma.hbm_to_vmem [thread:$0]  %s4920_s2, 1024, %s45_s12, [#allocation6], %s4163_s24, %s4163_s24, %s4164_s25  }
  0x26   :  { %s4122_s0 = scalar_lea.vmem %s59_s1, 1024  ;;  %p4127_p2 = scmp.lt.s32.totalorder %s59_s1, %s59_s1 }
  0x27   :  { %p4123_p1 = scmp.ne.s32.totalorder %s59_s1, %s4122_s0  ;;  %p4128_p3 = scmp.lt.s32.totalorder %s4122_s0, %s4122_s0 }
  0x29   :  { %p4129_p4 = por %p4128_p3, %p4127_p2 }
  0x2b   :  { %p4130_p5 = pnand %p4129_p4, %p4123_p1 }
  0x2d   :  { %4133 = shalt.err (!%p4130_p5)
}
  0x2e   :  { %64 = dma.hbm_to_vmem [thread:$0]  %s4922_s4, 1024, %s59_s1, [#allocation9], %s4163_s24, %s4163_s24, %s4164_s25  }
  0x2f   :  { %4154 = dma.done.wait [#allocation3], 16384  }
  0x30   :  { %4155 = vsyncadd [#allocation3], 4294950912 }
  0x31   :  { %4156 = dma.done.wait [#allocation6], 5120  }
  0x32   :  { %4157 = vsyncadd [#allocation6], 4294962176 }
  0x33   :  { %4158 = dma.done.wait [#allocation9], 1024  }
  0x34   :  { %4159 = vsyncadd [#allocation9], 4294966272  ;;  %v3685_v0 = vld [vmem:[#allocation7 + $0x38] sm:$0xff]   ;;  %v3686_v1 = vld [vmem:[#allocation7 + $0x30] sm:$0xff]   ;;  %v4170_v35 = vmov 0  }
  0x35   :  { %3481 = vmatprep.subr.bf16.mxu0 %v3685_v0  ;;  %v3687_v2 = vld [vmem:[#allocation7 + $0x28] sm:$0xff]   ;;  %v3688_v3 = vld [vmem:[#allocation7 + $0x20] sm:$0xff]   ;;  %v3689_v5 = vld [vmem:[#allocation7 + $0x18] sm:$0xff]   ;;  %1496 = vmatprep.subr.bf16.mxu1 %v4170_v35 }
  0x36   :  { %3482 = vmatpush3.bf16.msra.mxu0 %v3685_v0  ;;  %v3693_v4 = vld [vmem:[#allocation5] sm:$0xff]   ;;  %v3690_v6 = vld [vmem:[#allocation7 + $0x10] sm:$0xff]   ;;  %v3691_v7 = vld [vmem:[#allocation7 + $0x8] sm:$0xff]  }
  0x37   :  { %3483 = vmatprep.subr.bf16.mxu0 %v3686_v1  ;;  %3497 = vmatprep.mubr.bf16.mxu0 %v3693_v4  ;;  %v3692_v8 = vld [vmem:[#allocation7] sm:$0xff]   ;;  %v3694_v9 = vld [vmem:[#allocation5 + $0x8] sm:$0xff]   ;;  %v3695_v10 = vld [vmem:[#allocation5 + $0x10] sm:$0xff]  }
  0x38   :  { %v3696_v11 = vld [vmem:[#allocation5 + $0x18] sm:$0xff]   ;;  %v3697_v12 = vld [vmem:[#allocation5 + $0x20] sm:$0xff]   ;;  %v3698_v13 = vld [vmem:[#allocation5 + $0x28] sm:$0xff]  }
  0x39   :  { %v3699_v14 = vld [vmem:[#allocation5 + $0x30] sm:$0xff]   ;;  %v3700_v15 = vld [vmem:[#allocation5 + $0x38] sm:$0xff]   ;;  %v3701_v16 = vld [vmem:[#allocation5 + $0x40] sm:$0xff]  }
  0x3a   :  { %3484 = vmatpush3.bf16.msra.mxu0 %v3686_v1  ;;  %v3702_v17 = vld [vmem:[#allocation5 + $0x48] sm:$0xff]   ;;  %v3703_v18 = vld [vmem:[#allocation5 + $0x50] sm:$0xff]   ;;  %v3704_v19 = vld [vmem:[#allocation5 + $0x58] sm:$0xff]  }
  0x3b   :  { %3485 = vmatprep.subr.bf16.mxu0 %v3687_v2  ;;  %v3705_v20 = vld [vmem:[#allocation5 + $0x60] sm:$0xff]   ;;  %v3706_v21 = vld [vmem:[#allocation5 + $0x68] sm:$0xff]   ;;  %v3707_v22 = vld [vmem:[#allocation5 + $0x70] sm:$0xff]  }
  0x3c   :  { %v3708_v23 = vld [vmem:[#allocation5 + $0x78] sm:$0xff]   ;;  %v3709_v24 = vld [vmem:[#allocation5 + $0x80] sm:$0xff]   ;;  %v3710_v25 = vld [vmem:[#allocation5 + $0x88] sm:$0xff]  }
  0x3d   :  { %v3711_v26 = vld [vmem:[#allocation5 + $0x90] sm:$0xff]   ;;  %v3712_v27 = vld [vmem:[#allocation5 + $0x98] sm:$0xff]   ;;  %v3713_v28 = vld [vmem:[#allocation5 + $0xa0] sm:$0xff]  }
  0x3e   :  { %3486 = vmatpush3.bf16.msra.mxu0 %v3687_v2  ;;  %v3714_v29 = vld [vmem:[#allocation5 + $0xa8] sm:$0xff]   ;;  %v3715_v30 = vld [vmem:[#allocation5 + $0xb0] sm:$0xff]   ;;  %v3716_v31 = vld [vmem:[#allocation5 + $0xb8] sm:$0xff]  }
  0x3f   :  { %3487 = vmatprep.subr.bf16.mxu0 %v3688_v3  ;;  %v3717_v32 = vld [vmem:[#allocation5 + $0xc0] sm:$0xff]   ;;  %v3718_v33 = vld [vmem:[#allocation5 + $0xc8] sm:$0xff]   ;;  %v3719_v34 = vld [vmem:[#allocation5 + $0xd0] sm:$0xff]  }
  0x40   :  { %v3720_v36 = vld [vmem:[#allocation5 + $0xd8] sm:$0xff]   ;;  %v3721_v37 = vld [vmem:[#allocation5 + $0xe0] sm:$0xff]   ;;  %v3722_v38 = vld [vmem:[#allocation5 + $0xe8] sm:$0xff]  }
  0x41   :  { %v3723_v39 = vld [vmem:[#allocation5 + $0xf0] sm:$0xff]   ;;  %v3724_v40 = vld [vmem:[#allocation5 + $0xf8] sm:$0xff]  }
  0x42   :  { %3488 = vmatpush3.bf16.msra.mxu0 %v3688_v3  ;;  %v3727_v41 = vld [vmem:[#allocation2 + $0x4] ss:$16 sps:$4 sm:$0xff]   ;;  %v3745_v56 = vld [vmem:[#allocation2 + $0xc] ss:$16 sps:$4 sm:$0xff]  }
  0x43   :  { %3489 = vmatprep.subr.bf16.mxu0 %v3689_v5  ;;  %1528 = vmatprep.mubr.bf16.mxu1 %v3727_v41 }
  0x46   :  { %3490 = vmatpush3.bf16.msra.mxu0 %v3689_v5 }
  0x47   :  { %3491 = vmatprep.subr.bf16.mxu0 %v3690_v6 }
  0x4a   :  { %3492 = vmatpush3.bf16.msra.mxu0 %v3690_v6 }
  0x4b   :  { %3493 = vmatprep.subr.bf16.mxu0 %v3691_v7 }
  0x4e   :  { %3494 = vmatpush3.bf16.msra.mxu0 %v3691_v7 }
  0x4f   :  { %3495 = vmatprep.subr.bf16.mxu0 %v3692_v8 }
  0x52   :  { %3496 = vmatpush3.bf16.msra.mxu0 %v3692_v8 }
  0x53   :  { %1785 = vmatprep.subr.bf16.mxu0 %v4170_v35 }
  0x55   :  { %3498 = vmatmul.mubr.bf16.vlgmr.msra.gmra.mxu0 %v3694_v9 }
  0x56   :  { %3501 = vmatprep.mubr.bf16.mxu0 %v3695_v10 }
  0x5d   :  { %3502 = vmatmul.mubr.bf16.gmra.mxu0 %v3696_v11 }
  0x5e   :  { %3505 = vmatprep.mubr.bf16.mxu0 %v3697_v12 }
  0x65   :  { %3506 = vmatmul.mubr.bf16.gmra.mxu0 %v3698_v13 }
  0x66   :  { %3509 = vmatprep.mubr.bf16.mxu0 %v3699_v14 }
  0x6d   :  { %3510 = vmatmul.mubr.bf16.gmra.mxu0 %v3700_v15 }
  0x6e   :  { %3513 = vmatprep.mubr.bf16.mxu0 %v3701_v16 }
  0x75   :  { %3514 = vmatmul.mubr.bf16.gmra.mxu0 %v3702_v17 }
  0x76   :  { %3517 = vmatprep.mubr.bf16.mxu0 %v3703_v18 }
  0x7d   :  { %3518 = vmatmul.mubr.bf16.gmra.mxu0 %v3704_v19 }
  0x7e   :  { %3521 = vmatprep.mubr.bf16.mxu0 %v3705_v20 }
  0x85   :  { %3522 = vmatmul.mubr.bf16.gmra.mxu0 %v3706_v21 }
  0x86   :  { %3525 = vmatprep.mubr.bf16.mxu0 %v3707_v22 }
  0x8d   :  { %3526 = vmatmul.mubr.bf16.gmra.mxu0 %v3708_v23 }
  0x8e   :  { %3529 = vmatprep.mubr.bf16.mxu0 %v3709_v24 }
  0x95   :  { %3530 = vmatmul.mubr.bf16.gmra.mxu0 %v3710_v25 }
  0x96   :  { %3533 = vmatprep.mubr.bf16.mxu0 %v3711_v26 }
  0x9d   :  { %3534 = vmatmul.mubr.bf16.gmra.mxu0 %v3712_v27 }
  0x9e   :  { %3537 = vmatprep.mubr.bf16.mxu0 %v3713_v28 }
  0xa5   :  { %3538 = vmatmul.mubr.bf16.gmra.mxu0 %v3714_v29 }
  0xa6   :  { %3541 = vmatprep.mubr.bf16.mxu0 %v3715_v30 }
  0xad   :  { %3542 = vmatmul.mubr.bf16.gmra.mxu0 %v3716_v31 }
  0xae   :  { %3545 = vmatprep.mubr.bf16.mxu0 %v3717_v32 }
  0xb5   :  { %3546 = vmatmul.mubr.bf16.gmra.mxu0 %v3718_v33 }
  0xb6   :  { %3549 = vmatprep.mubr.bf16.mxu0 %v3719_v34 }
  0xbd   :  { %3550 = vmatmul.mubr.bf16.gmra.mxu0 %v3720_v36 }
  0xbe   :  { %3553 = vmatprep.mubr.bf16.mxu0 %v3721_v37 }
  0xc5   :  { %3554 = vmatmul.mubr.bf16.gmra.mxu0 %v3722_v38 }
  0xc6   :  { %3557 = vmatprep.mubr.bf16.mxu0 %v3723_v39 }
  0xcd   :  { %3558 = vmatmul.mubr.bf16.gmra.mxu0 %v3724_v40 }
  0xce   :  { %1817 = vmatprep.mubr.bf16.mxu0 %v3745_v56 }
 0x115   :  { %v3499_v42 = vpop.f32.mrf.mxu0 }
 0x117   :  { %v434_v43 = vpop.f32.mrf.mxu0 }
 0x119   :  { %v3500_v44 = vpop.f32.mrf.mxu0 }
 0x11a   :  { %v818_v12 = vpack.c.bf16 %v3500_v44, %v3499_v42  ;;  %v3725_v42 = vld [vmem:[#allocation2] ss:$16 sps:$4 sm:$0xff]  }
 0x11b   :  { %v437_v45 = vpop.f32.mrf.mxu0 }
 0x11c   :  { %v817_v15 = vpack.c.bf16 %v437_v45, %v434_v43  ;;  %v3728_v43 = vld [vmem:[#allocation2 + $0x24] ss:$16 sps:$4 sm:$0xff]  }
 0x11d   :  { %v3503_v46 = vpop.f32.mrf.mxu0 }
 0x11f   :  { %v450_v47 = vpop.f32.mrf.mxu0 }
 0x121   :  { %v3504_v48 = vpop.f32.mrf.mxu0 }
 0x122   :  { %v820_v6 = vpack.c.bf16 %v3504_v48, %v3503_v46 }
 0x123   :  { %v453_v49 = vpop.f32.mrf.mxu0 }
 0x124   :  { %v819_v9 = vpack.c.bf16 %v453_v49, %v450_v47 }
 0x125   :  { %v3507_v50 = vpop.f32.mrf.mxu0 }
 0x127   :  { %v466_v51 = vpop.f32.mrf.mxu0 }
 0x129   :  { %v3508_v52 = vpop.f32.mrf.mxu0 }
 0x12a   :  { %v822_v0 = vpack.c.bf16 %v3508_v52, %v3507_v50  ;;  %v3730_v50 = vld [vmem:[#allocation2 + $0x20] ss:$16 sps:$4 sm:$0xff]  }
 0x12b   :  { %v469_v53 = vpop.f32.mrf.mxu0 }
 0x12c   :  { %v821_v3 = vpack.c.bf16 %v469_v53, %v466_v51  ;;  %v3731_v51 = vld [vmem:[#allocation2 + $0x44] ss:$16 sps:$4 sm:$0xff]  }
 0x12d   :  { %v3511_v54 = vpop.f32.mrf.mxu0 }
 0x12f   :  { %v482_v55 = vpop.f32.mrf.mxu0 }
 0x131   :  { %v3512_v57 = vpop.f32.mrf.mxu0 }
 0x132   :  { %v824_v58 = vpack.c.bf16 %v3512_v57, %v3511_v54 }
 0x133   :  { %v485_v59 = vpop.f32.mrf.mxu0 }
 0x134   :  { %1497 = vmatpush1.bf16.msra.mxu1 %v824_v58  ;;  %v823_v61 = vpack.c.bf16 %v485_v59, %v482_v55  ;;  %v3733_v58 = vld [vmem:[#allocation2 + $0x40] ss:$16 sps:$4 sm:$0xff]   ;;  %v3734_v59 = vld [vmem:[#allocation2 + $0x64] ss:$16 sps:$4 sm:$0xff]  }
 0x135   :  { %v4232_v60 = vpop.f32.mrf.mxu0  ;;  %1498 = vmatprep.subr.bf16.mxu1 %v4170_v35 }
 0x137   :  { %v4235_v62 = vpop.f32.mrf.mxu0 }
 0x138   :  { %1499 = vmatpush1.bf16.msra.mxu1 %v823_v61 }
 0x139   :  { %v4237_v63 = vpop.f32.mrf.mxu0  ;;  %1500 = vmatprep.subr.bf16.mxu1 %v4170_v35 }
 0x13a   :  { %v826_v37 = vpack.c.bf16 %v4237_v63, %v4232_v60 }
 0x13b   :  { %v4240_v1 = vpop.f32.mrf.mxu0 }
 0x13c   :  { %1501 = vmatpush1.bf16.msra.mxu1 %v822_v0  ;;  %v825_v40 = vpack.c.bf16 %v4240_v1, %v4235_v62 }
 0x13d   :  { %v3519_v2 = vpop.f32.mrf.mxu0  ;;  %1502 = vmatprep.subr.bf16.mxu1 %v4170_v35 }
 0x13f   :  { %v514_v4 = vpop.f32.mrf.mxu0 }
 0x140   :  { %1503 = vmatpush1.bf16.msra.mxu1 %v821_v3  ;;  %v3737_v3 = vld [vmem:[#allocation2 + $0x84] ss:$16 sps:$4 sm:$0xff]  }
 0x141   :  { %v3520_v5 = vpop.f32.mrf.mxu0  ;;  %1504 = vmatprep.subr.bf16.mxu1 %v4170_v35 }
 0x142   :  { %v828_v30 = vpack.c.bf16 %v3520_v5, %v3519_v2  ;;  %v3736_v2 = vld [vmem:[#allocation2 + $0x60] ss:$16 sps:$4 sm:$0xff]  }
 0x143   :  { %v517_v7 = vpop.f32.mrf.mxu0 }
 0x144   :  { %1505 = vmatpush1.bf16.msra.mxu1 %v820_v6  ;;  %v827_v33 = vpack.c.bf16 %v517_v7, %v514_v4 }
 0x145   :  { %v3523_v8 = vpop.f32.mrf.mxu0  ;;  %1506 = vmatprep.subr.bf16.mxu1 %v4170_v35 }
 0x147   :  { %v530_v10 = vpop.f32.mrf.mxu0 }
 0x148   :  { %1507 = vmatpush1.bf16.msra.mxu1 %v819_v9 }
 0x149   :  { %v3524_v11 = vpop.f32.mrf.mxu0  ;;  %1508 = vmatprep.subr.bf16.mxu1 %v4170_v35 }
 0x14a   :  { %v830_v24 = vpack.c.bf16 %v3524_v11, %v3523_v8  ;;  %v3740_v11 = vld [vmem:[#allocation2 + $0xa4] ss:$16 sps:$4 sm:$0xff]  }
 0x14b   :  { %v533_v13 = vpop.f32.mrf.mxu0 }
 0x14c   :  { %1509 = vmatpush1.bf16.msra.mxu1 %v818_v12  ;;  %v829_v27 = vpack.c.bf16 %v533_v13, %v530_v10  ;;  %v3739_v10 = vld [vmem:[#allocation2 + $0x80] ss:$16 sps:$4 sm:$0xff]  }
 0x14d   :  { %v3527_v14 = vpop.f32.mrf.mxu0  ;;  %1510 = vmatprep.subr.bf16.mxu1 %v4170_v35 }
 0x14f   :  { %v546_v16 = vpop.f32.mrf.mxu0 }
 0x150   :  { %1511 = vmatpush1.bf16.msra.mxu1 %v817_v15 }
 0x151   :  { %v3528_v17 = vpop.f32.mrf.mxu0  ;;  %1512 = vmatprep.subr.bf16.mxu1 %v4170_v35 }
 0x152   :  { %v832_v18 = vpack.c.bf16 %v3528_v17, %v3527_v14  ;;  %v3746_v17 = vld [vmem:[#allocation2 + $0xc4] ss:$16 sps:$4 sm:$0xff]  }
 0x153   :  { %v549_v19 = vpop.f32.mrf.mxu0 }
 0x154   :  { %1513 = vmatpush2.bf16.msra.mxu1 %v832_v18  ;;  %v831_v21 = vpack.c.bf16 %v549_v19, %v546_v16  ;;  %v3742_v16 = vld [vmem:[#allocation2 + $0xa0] ss:$16 sps:$4 sm:$0xff]  }
 0x155   :  { %v4248_v20 = vpop.f32.mrf.mxu0  ;;  %1514 = vmatprep.subr.bf16.mxu1 %v4170_v35 }
 0x157   :  { %v4251_v22 = vpop.f32.mrf.mxu0 }
 0x158   :  { %1515 = vmatpush2.bf16.msra.mxu1 %v831_v21  ;;  %v3752_v21 = vld [vmem:[#allocation2 + $0xe4] ss:$16 sps:$4 sm:$0xff]  }
 0x159   :  { %v4253_v23 = vpop.f32.mrf.mxu0  ;;  %1516 = vmatprep.subr.bf16.mxu1 %v4170_v35 }
 0x15a   :  { %v834_v5 = vpack.c.bf16 %v4253_v23, %v4248_v20  ;;  %v3748_v20 = vld [vmem:[#allocation2 + $0xc0] ss:$16 sps:$4 sm:$0xff]  }
 0x15b   :  { %v4256_v25 = vpop.f32.mrf.mxu0 }
 0x15c   :  { %1517 = vmatpush2.bf16.msra.mxu1 %v830_v24  ;;  %v833_v8 = vpack.c.bf16 %v4256_v25, %v4251_v22  ;;  %v3754_v24 = vld [vmem:[#allocation2 + $0xe0] ss:$16 sps:$4 sm:$0xff]   ;;  %v3758_v25 = vld [vmem:[#allocation2 + $0x104] ss:$16 sps:$4 sm:$0xff]  }
 0x15d   :  { %v3535_v26 = vpop.f32.mrf.mxu0  ;;  %1518 = vmatprep.subr.bf16.mxu1 %v4170_v35 }
 0x15f   :  { %v4259_v28 = vpop.f32.mrf.mxu0 }
 0x160   :  { %1519 = vmatpush2.bf16.msra.mxu1 %v829_v27 }
 0x161   :  { %v3536_v29 = vpop.f32.mrf.mxu0  ;;  %1520 = vmatprep.subr.bf16.mxu1 %v4170_v35 }
 0x162   :  { %v836_v61 = vpack.c.bf16 %v3536_v29, %v3535_v26  ;;  %v3760_v29 = vld [vmem:[#allocation2 + $0x100] ss:$16 sps:$4 sm:$0xff]  }
 0x163   :  { %v581_v31 = vpop.f32.mrf.mxu0 }
 0x164   :  { %1521 = vmatpush2.bf16.msra.mxu1 %v828_v30  ;;  %v835_v0 = vpack.c.bf16 %v581_v31, %v4259_v28  ;;  %v3743_v28 = vld [vmem:[#allocation2 + $0x8] ss:$16 sps:$4 sm:$0xff]   ;;  %v3749_v30 = vld [vmem:[#allocation2 + $0x2c] ss:$16 sps:$4 sm:$0xff]   ;;  %v3764_v31 = vld [vmem:[#allocation2 + $0x124] ss:$16 sps:$4 sm:$0xff]  }
 0x165   :  { %v3539_v32 = vpop.f32.mrf.mxu0  ;;  %1522 = vmatprep.subr.bf16.mxu1 %v4170_v35 }
 0x167   :  { %v594_v34 = vpop.f32.mrf.mxu0 }
 0x168   :  { %1523 = vmatpush2.bf16.msra.mxu1 %v827_v33  ;;  %v3766_v33 = vld [vmem:[#allocation2 + $0x120] ss:$16 sps:$4 sm:$0xff]  }
 0x169   :  { %v3540_v36 = vpop.f32.mrf.mxu0  ;;  %1524 = vmatprep.subr.bf16.mxu1 %v4170_v35 }
 0x16a   :  { %v838_v53 = vpack.c.bf16 %v3540_v36, %v3539_v32  ;;  %v3751_v32 = vld [vmem:[#allocation2 + $0x28] ss:$16 sps:$4 sm:$0xff]   ;;  %v3770_v36 = vld [vmem:[#allocation2 + $0x144] ss:$16 sps:$4 sm:$0xff]  }
 0x16b   :  { %v597_v38 = vpop.f32.mrf.mxu0 }
 0x16c   :  { %1525 = vmatpush2.bf16.msra.mxu1 %v826_v37  ;;  %v837_v56 = vpack.c.bf16 %v597_v38, %v594_v34  ;;  %v3755_v34 = vld [vmem:[#allocation2 + $0x4c] ss:$16 sps:$4 sm:$0xff]   ;;  %v3757_v38 = vld [vmem:[#allocation2 + $0x48] ss:$16 sps:$4 sm:$0xff]  }
 0x16d   :  { %v3543_v39 = vpop.f32.mrf.mxu0  ;;  %1526 = vmatprep.subr.bf16.mxu1 %v4170_v35  ;;  %v3851_v37 = vld [vmem:[#allocation8 + $0x38] sm:$0xff]  }
 0x16f   :  { %v610_v41 = vpop.f32.mrf.mxu0 }
 0x170   :  { %1527 = vmatpush2.bf16.msra.mxu1 %v825_v40  ;;  %v3761_v40 = vld [vmem:[#allocation2 + $0x6c] ss:$16 sps:$4 sm:$0xff]  }
 0x171   :  { %v3544_v44 = vpop.f32.mrf.mxu0  ;;  %3561 = vmatprep.subr.bf16.mxu1 %v3851_v37 }
 0x172   :  { %v840_v45 = vpack.c.bf16 %v3544_v44, %v3543_v39  ;;  %v3772_v39 = vld [vmem:[#allocation2 + $0x140] ss:$16 sps:$4 sm:$0xff]   ;;  %v3767_v44 = vld [vmem:[#allocation2 + $0x8c] ss:$16 sps:$4 sm:$0xff]  }
 0x173   :  { %v613_v46 = vpop.f32.mrf.mxu0  ;;  %1529 = vmatmul.mubr.bf16.vlgmr.msra.gmra.mxu1 %v3725_v42  ;;  %v3763_v42 = vld [vmem:[#allocation2 + $0x68] ss:$16 sps:$4 sm:$0xff]  }
 0x174   :  { %1786 = vmatpush1.bf16.msra.mxu0 %v840_v45  ;;  %1536 = vmatprep.mubr.bf16.mxu1 %v3728_v43  ;;  %v839_v48 = vpack.c.bf16 %v613_v46, %v610_v41  ;;  %v3776_v41 = vld [vmem:[#allocation2 + $0x164] ss:$16 sps:$4 sm:$0xff]   ;;  %v3778_v43 = vld [vmem:[#allocation2 + $0x160] ss:$16 sps:$4 sm:$0xff]   ;;  %v3769_v46 = vld [vmem:[#allocation2 + $0x88] ss:$16 sps:$4 sm:$0xff]  }
 0x175   :  { %v4269_v47 = vpop.f32.mrf.mxu0  ;;  %1787 = vmatprep.subr.bf16.mxu0 %v4170_v35  ;;  %3562 = vmatpush3.bf16.msra.mxu1 %v3851_v37  ;;  %v3782_v45 = vld [vmem:[#allocation2 + $0x184] ss:$16 sps:$4 sm:$0xff]  }
 0x176   :  { %v3855_v37 = vld [vmem:[#allocation2 + $0x304] ss:$16 sps:$4 sm:$0xff]  }
 0x177   :  { %v4272_v49 = vpop.f32.mrf.mxu0 }
 0x178   :  { %1788 = vmatpush1.bf16.msra.mxu0 %v839_v48  ;;  %v3773_v48 = vld [vmem:[#allocation2 + $0xac] ss:$16 sps:$4 sm:$0xff]  }
 0x179   :  { %v4274_v52 = vpop.f32.mrf.mxu0  ;;  %1789 = vmatprep.subr.bf16.mxu0 %v4170_v35 }
 0x17a   :  { %v842_v26 = vpack.c.bf16 %v4274_v52, %v4269_v47  ;;  %v3784_v47 = vld [vmem:[#allocation2 + $0x180] ss:$16 sps:$4 sm:$0xff]   ;;  %v3779_v52 = vld [vmem:[#allocation2 + $0xcc] ss:$16 sps:$4 sm:$0xff]  }
 0x17b   :  { %v4277_v54 = vpop.f32.mrf.mxu0  ;;  %1537 = vmatmul.mubr.bf16.gmra.mxu1 %v3730_v50  ;;  %v3775_v50 = vld [vmem:[#allocation2 + $0xa8] ss:$16 sps:$4 sm:$0xff]  }
 0x17c   :  { %1790 = vmatpush1.bf16.msra.mxu0 %v838_v53  ;;  %1544 = vmatprep.mubr.bf16.mxu1 %v3731_v51  ;;  %v841_v27 = vpack.c.bf16 %v4277_v54, %v4272_v49  ;;  %v3788_v49 = vld [vmem:[#allocation2 + $0x1a4] ss:$16 sps:$4 sm:$0xff]   ;;  %v3790_v51 = vld [vmem:[#allocation2 + $0x1a0] ss:$16 sps:$4 sm:$0xff]  }
 0x17d   :  { %v3551_v55 = vpop.f32.mrf.mxu0  ;;  %1791 = vmatprep.subr.bf16.mxu0 %v4170_v35  ;;  %v3794_v53 = vld [vmem:[#allocation2 + $0x1c4] ss:$16 sps:$4 sm:$0xff]  }
 0x17e   :  { %v3876_v54 = vld [vmem:[#allocation8 + $0x30] sm:$0xff]  }
 0x17f   :  { %v642_v57 = vpop.f32.mrf.mxu0  ;;  %3563 = vmatprep.subr.bf16.mxu1 %v3876_v54 }
 0x180   :  { %1792 = vmatpush1.bf16.msra.mxu0 %v837_v56  ;;  %3564 = vmatpush3.bf16.msra.mxu1 %v3876_v54  ;;  %v3796_v56 = vld [vmem:[#allocation2 + $0x1c0] ss:$16 sps:$4 sm:$0xff]  }
 0x181   :  { %v3552_v60 = vpop.f32.mrf.mxu0  ;;  %1793 = vmatprep.subr.bf16.mxu0 %v4170_v35  ;;  %v3869_v54 = vld [vmem:[#allocation2 + $0x340] ss:$16 sps:$4 sm:$0xff]  }
 0x182   :  { %v844_v22 = vpack.c.bf16 %v3552_v60, %v3551_v55  ;;  %v3781_v55 = vld [vmem:[#allocation2 + $0xc8] ss:$16 sps:$4 sm:$0xff]   ;;  %v3802_v60 = vld [vmem:[#allocation2 + $0x1e0] ss:$16 sps:$4 sm:$0xff]  }
 0x183   :  { %v645_v62 = vpop.f32.mrf.mxu0  ;;  %1545 = vmatmul.mubr.bf16.gmra.mxu1 %v3733_v58  ;;  %v3800_v58 = vld [vmem:[#allocation2 + $0x1e4] ss:$16 sps:$4 sm:$0xff]  }
 0x184   :  { %1794 = vmatpush1.bf16.msra.mxu0 %v836_v61  ;;  %1552 = vmatprep.mubr.bf16.mxu1 %v3734_v59  ;;  %v843_v23 = vpack.c.bf16 %v645_v62, %v642_v57  ;;  %v3785_v57 = vld [vmem:[#allocation2 + $0xec] ss:$16 sps:$4 sm:$0xff]   ;;  %v3787_v59 = vld [vmem:[#allocation2 + $0xe8] ss:$16 sps:$4 sm:$0xff]   ;;  %v3806_v62 = vld [vmem:[#allocation2 + $0x204] ss:$16 sps:$4 sm:$0xff]  }
 0x185   :  { %v3555_v63 = vpop.f32.mrf.mxu0  ;;  %1795 = vmatprep.subr.bf16.mxu0 %v4170_v35  ;;  %v3791_v61 = vld [vmem:[#allocation2 + $0x10c] ss:$16 sps:$4 sm:$0xff]  }
 0x187   :  { %v658_v1 = vpop.f32.mrf.mxu0 }
 0x188   :  { %1796 = vmatpush1.bf16.msra.mxu0 %v835_v0  ;;  %v3893_v0 = vld [vmem:[#allocation8 + $0x20] sm:$0xff]  }
 0x189   :  { %v3556_v4 = vpop.f32.mrf.mxu0  ;;  %1797 = vmatprep.subr.bf16.mxu0 %v4170_v35 }
 0x18a   :  { %v846_v18 = vpack.c.bf16 %v3556_v4, %v3555_v63  ;;  %v3889_v63 = vld [vmem:[#allocation8 + $0x28] sm:$0xff]   ;;  %v3812_v4 = vld [vmem:[#allocation2 + $0x224] ss:$16 sps:$4 sm:$0xff]  }
 0x18b   :  { %v661_v6 = vpop.f32.mrf.mxu0  ;;  %1553 = vmatmul.mubr.bf16.gmra.mxu1 %v3736_v2  ;;  %3565 = vmatprep.subr.bf16.mxu1 %v3889_v63  ;;  %v3808_v2 = vld [vmem:[#allocation2 + $0x200] ss:$16 sps:$4 sm:$0xff]  }
 0x18c   :  { %1798 = vmatpush1.bf16.msra.mxu0 %v834_v5  ;;  %1560 = vmatprep.mubr.bf16.mxu1 %v3737_v3  ;;  %v845_v19 = vpack.c.bf16 %v661_v6, %v658_v1  ;;  %v3793_v1 = vld [vmem:[#allocation2 + $0x108] ss:$16 sps:$4 sm:$0xff]   ;;  %v3797_v3 = vld [vmem:[#allocation2 + $0x12c] ss:$16 sps:$4 sm:$0xff]  }
 0x18d   :  { %v3559_v7 = vpop.f32.mrf.mxu0  ;;  %1799 = vmatprep.subr.bf16.mxu0 %v4170_v35  ;;  %3566 = vmatpush3.bf16.msra.mxu1 %v3889_v63  ;;  %v3897_v5 = vld [vmem:[#allocation8 + $0x18] sm:$0xff]  }
 0x18e   :  { %3567 = vmatprep.subr.bf16.mxu1 %v3893_v0  ;;  %v3799_v6 = vld [vmem:[#allocation2 + $0x128] ss:$16 sps:$4 sm:$0xff]   ;;  %v3866_v63 = vld [vmem:[#allocation2 + $0x28c] ss:$16 sps:$4 sm:$0xff]  }
 0x18f   :  { %v674_v9 = vpop.f32.mrf.mxu0 }
 0x190   :  { %1800 = vmatpush1.bf16.msra.mxu0 %v833_v8  ;;  %v3803_v8 = vld [vmem:[#allocation2 + $0x14c] ss:$16 sps:$4 sm:$0xff]  }
 0x191   :  { %v3560_v12 = vpop.f32.mrf.mxu0  ;;  %1801 = vmatprep.subr.bf16.mxu0 %v4170_v35  ;;  %3568 = vmatpush3.bf16.msra.mxu1 %v3893_v0  ;;  %v3882_v0 = vld [vmem:[#allocation2 + $0x384] ss:$16 sps:$4 sm:$0xff]  }
 0x192   :  { %v848_v13 = vpack.c.bf16 %v3560_v12, %v3559_v7  ;;  %3569 = vmatprep.subr.bf16.mxu1 %v3897_v5  ;;  %v3814_v7 = vld [vmem:[#allocation2 + $0x220] ss:$16 sps:$4 sm:$0xff]   ;;  %v3805_v12 = vld [vmem:[#allocation2 + $0x148] ss:$16 sps:$4 sm:$0xff]  }
 0x193   :  { %v677_v14 = vpop.f32.mrf.mxu0  ;;  %1561 = vmatmul.mubr.bf16.gmra.mxu1 %v3739_v10  ;;  %v3901_v10 = vld [vmem:[#allocation8 + $0x10] sm:$0xff]  }
 0x194   :  { %1802 = vmatpush2.bf16.msra.mxu0 %v848_v13  ;;  %1568 = vmatprep.mubr.bf16.mxu1 %v3740_v11  ;;  %v847_v15 = vpack.c.bf16 %v677_v14, %v674_v9  ;;  %v3818_v9 = vld [vmem:[#allocation2 + $0x244] ss:$16 sps:$4 sm:$0xff]   ;;  %v3905_v11 = vld [vmem:[#allocation8 + $0x8] sm:$0xff]   ;;  %v3820_v13 = vld [vmem:[#allocation2 + $0x240] ss:$16 sps:$4 sm:$0xff]  }
 0x195   :  { %1803 = vmatprep.subr.bf16.mxu0 %v4170_v35  ;;  %3570 = vmatpush3.bf16.msra.mxu1 %v3897_v5  ;;  %v3809_v14 = vld [vmem:[#allocation2 + $0x16c] ss:$16 sps:$4 sm:$0xff]  }
 0x196   :  { %3571 = vmatprep.subr.bf16.mxu1 %v3901_v10 }
 0x198   :  { %1804 = vmatpush2.bf16.msra.mxu0 %v847_v15  ;;  %v3824_v15 = vld [vmem:[#allocation2 + $0x264] ss:$16 sps:$4 sm:$0xff]  }
 0x199   :  { %1805 = vmatprep.subr.bf16.mxu0 %v4170_v35  ;;  %3572 = vmatpush3.bf16.msra.mxu1 %v3901_v10 }
 0x19a   :  { %3573 = vmatprep.subr.bf16.mxu1 %v3905_v11 }
 0x19b   :  { %1569 = vmatmul.mubr.bf16.gmra.mxu1 %v3742_v16  ;;  %v3909_v16 = vld [vmem:[#allocation8] sm:$0xff]  }
 0x19c   :  { %1806 = vmatpush2.bf16.msra.mxu0 %v846_v18  ;;  %1576 = vmatprep.mubr.bf16.mxu1 %v3746_v17  ;;  %v3811_v17 = vld [vmem:[#allocation2 + $0x168] ss:$16 sps:$4 sm:$0xff]   ;;  %v3826_v18 = vld [vmem:[#allocation2 + $0x260] ss:$16 sps:$4 sm:$0xff]  }
 0x19d   :  { %1807 = vmatprep.subr.bf16.mxu0 %v4170_v35  ;;  %3574 = vmatpush3.bf16.msra.mxu1 %v3905_v11 }
 0x19e   :  { %3575 = vmatprep.subr.bf16.mxu1 %v3909_v16 }
 0x1a0   :  { %1808 = vmatpush2.bf16.msra.mxu0 %v845_v19  ;;  %v3817_v19 = vld [vmem:[#allocation2 + $0x18c] ss:$16 sps:$4 sm:$0xff]  }
 0x1a1   :  { %1809 = vmatprep.subr.bf16.mxu0 %v4170_v35  ;;  %3576 = vmatpush3.bf16.msra.mxu1 %v3909_v16  ;;  %v3896_v16 = vld [vmem:[#allocation2 + $0x3c4] ss:$16 sps:$4 sm:$0xff]  }
 0x1a2   :  { %3641 = vmatprep.subr.bf16.mxu1 %v4170_v35 }
 0x1a3   :  { %1577 = vmatmul.mubr.bf16.gmra.mxu1 %v3748_v20  ;;  %v3830_v20 = vld [vmem:[#allocation2 + $0x284] ss:$16 sps:$4 sm:$0xff]  }
 0x1a4   :  { %1810 = vmatpush2.bf16.msra.mxu0 %v844_v22  ;;  %1584 = vmatprep.mubr.bf16.mxu1 %v3752_v21  ;;  %v3815_v21 = vld [vmem:[#allocation2 + $0x188] ss:$16 sps:$4 sm:$0xff]   ;;  %v3832_v22 = vld [vmem:[#allocation2 + $0x280] ss:$16 sps:$4 sm:$0xff]  }
 0x1a5   :  { %1811 = vmatprep.subr.bf16.mxu0 %v4170_v35 }
 0x1a8   :  { %1812 = vmatpush2.bf16.msra.mxu0 %v843_v23  ;;  %v3823_v23 = vld [vmem:[#allocation2 + $0x1ac] ss:$16 sps:$4 sm:$0xff]  }
 0x1a9   :  { %1813 = vmatprep.subr.bf16.mxu0 %v4170_v35 }
 0x1ab   :  { %1585 = vmatmul.mubr.bf16.gmra.mxu1 %v3754_v24  ;;  %v3836_v24 = vld [vmem:[#allocation2 + $0x2a4] ss:$16 sps:$4 sm:$0xff]  }
 0x1ac   :  { %1814 = vmatpush2.bf16.msra.mxu0 %v842_v26  ;;  %1592 = vmatprep.mubr.bf16.mxu1 %v3758_v25  ;;  %v3821_v25 = vld [vmem:[#allocation2 + $0x1a8] ss:$16 sps:$4 sm:$0xff]   ;;  %v3838_v26 = vld [vmem:[#allocation2 + $0x2a0] ss:$16 sps:$4 sm:$0xff]  }
 0x1ad   :  { %1815 = vmatprep.subr.bf16.mxu0 %v4170_v35 }
 0x1b0   :  { %1816 = vmatpush2.bf16.msra.mxu0 %v841_v27  ;;  %v3829_v27 = vld [vmem:[#allocation2 + $0x1cc] ss:$16 sps:$4 sm:$0xff]  }
 0x1b1   :  { %2562 = vmatprep.subr.bf16.mxu0 %v4170_v35 }
 0x1b3   :  { %1818 = vmatmul.mubr.bf16.vlgmr.msra.gmra.mxu0 %v3743_v28  ;;  %1593 = vmatmul.mubr.bf16.gmra.mxu1 %v3760_v29  ;;  %v3842_v28 = vld [vmem:[#allocation2 + $0x2c4] ss:$16 sps:$4 sm:$0xff]   ;;  %v3827_v29 = vld [vmem:[#allocation2 + $0x1c8] ss:$16 sps:$4 sm:$0xff]  }
 0x1b4   :  { %1825 = vmatprep.mubr.bf16.mxu0 %v3749_v30  ;;  %1600 = vmatprep.mubr.bf16.mxu1 %v3764_v31  ;;  %v3844_v30 = vld [vmem:[#allocation2 + $0x2c0] ss:$16 sps:$4 sm:$0xff]   ;;  %v3835_v31 = vld [vmem:[#allocation2 + $0x1ec] ss:$16 sps:$4 sm:$0xff]  }
 0x1bb   :  { %1826 = vmatmul.mubr.bf16.gmra.mxu0 %v3751_v32  ;;  %1601 = vmatmul.mubr.bf16.gmra.mxu1 %v3766_v33  ;;  %v3848_v32 = vld [vmem:[#allocation2 + $0x2e4] ss:$16 sps:$4 sm:$0xff]   ;;  %v3833_v33 = vld [vmem:[#allocation2 + $0x1e8] ss:$16 sps:$4 sm:$0xff]  }
 0x1bc   :  { %1833 = vmatprep.mubr.bf16.mxu0 %v3755_v34  ;;  %1608 = vmatprep.mubr.bf16.mxu1 %v3770_v36  ;;  %v3850_v34 = vld [vmem:[#allocation2 + $0x2e0] ss:$16 sps:$4 sm:$0xff]   ;;  %v3841_v36 = vld [vmem:[#allocation2 + $0x20c] ss:$16 sps:$4 sm:$0xff]  }
 0x1c3   :  { %1834 = vmatmul.mubr.bf16.gmra.mxu0 %v3757_v38  ;;  %1609 = vmatmul.mubr.bf16.gmra.mxu1 %v3772_v39  ;;  %v3839_v38 = vld [vmem:[#allocation2 + $0x208] ss:$16 sps:$4 sm:$0xff]   ;;  %v3857_v39 = vld [vmem:[#allocation2 + $0x300] ss:$16 sps:$4 sm:$0xff]  }
 0x1c4   :  { %1841 = vmatprep.mubr.bf16.mxu0 %v3761_v40  ;;  %1616 = vmatprep.mubr.bf16.mxu1 %v3776_v41  ;;  %v3847_v40 = vld [vmem:[#allocation2 + $0x22c] ss:$16 sps:$4 sm:$0xff]   ;;  %v3861_v41 = vld [vmem:[#allocation2 + $0x324] ss:$16 sps:$4 sm:$0xff]  }
 0x1cb   :  { %1842 = vmatmul.mubr.bf16.gmra.mxu0 %v3763_v42  ;;  %1617 = vmatmul.mubr.bf16.gmra.mxu1 %v3778_v43 }
 0x1cc   :  { %1849 = vmatprep.mubr.bf16.mxu0 %v3767_v44  ;;  %1624 = vmatprep.mubr.bf16.mxu1 %v3782_v45  ;;  %v3845_v44 = vld [vmem:[#allocation2 + $0x228] ss:$16 sps:$4 sm:$0xff]  }
 0x1d3   :  { %1850 = vmatmul.mubr.bf16.gmra.mxu0 %v3769_v46  ;;  %1625 = vmatmul.mubr.bf16.gmra.mxu1 %v3784_v47  ;;  %v3863_v46 = vld [vmem:[#allocation2 + $0x320] ss:$16 sps:$4 sm:$0xff]   ;;  %v3854_v47 = vld [vmem:[#allocation2 + $0x24c] ss:$16 sps:$4 sm:$0xff]  }
 0x1d4   :  { %1857 = vmatprep.mubr.bf16.mxu0 %v3773_v48  ;;  %1632 = vmatprep.mubr.bf16.mxu1 %v3788_v49  ;;  %v3867_v48 = vld [vmem:[#allocation2 + $0x344] ss:$16 sps:$4 sm:$0xff]  }
 0x1db   :  { %1858 = vmatmul.mubr.bf16.gmra.mxu0 %v3775_v50  ;;  %1633 = vmatmul.mubr.bf16.gmra.mxu1 %v3790_v51 }
 0x1dc   :  { %1865 = vmatprep.mubr.bf16.mxu0 %v3779_v52  ;;  %1640 = vmatprep.mubr.bf16.mxu1 %v3794_v53  ;;  %v3852_v52 = vld [vmem:[#allocation2 + $0x248] ss:$16 sps:$4 sm:$0xff]  }
 0x1e3   :  { %1866 = vmatmul.mubr.bf16.gmra.mxu0 %v3781_v55  ;;  %1641 = vmatmul.mubr.bf16.gmra.mxu1 %v3796_v56  ;;  %v3860_v55 = vld [vmem:[#allocation2 + $0x26c] ss:$16 sps:$4 sm:$0xff]   ;;  %v3873_v56 = vld [vmem:[#allocation2 + $0x364] ss:$16 sps:$4 sm:$0xff]  }
 0x1e4   :  { %1873 = vmatprep.mubr.bf16.mxu0 %v3785_v57  ;;  %1648 = vmatprep.mubr.bf16.mxu1 %v3800_v58 }
 0x1eb   :  { %1874 = vmatmul.mubr.bf16.gmra.mxu0 %v3787_v59  ;;  %1649 = vmatmul.mubr.bf16.gmra.mxu1 %v3802_v60  ;;  %v3858_v60 = vld [vmem:[#allocation2 + $0x268] ss:$16 sps:$4 sm:$0xff]  }
 0x1ec   :  { %1881 = vmatprep.mubr.bf16.mxu0 %v3791_v61  ;;  %1656 = vmatprep.mubr.bf16.mxu1 %v3806_v62  ;;  %v3875_v62 = vld [vmem:[#allocation2 + $0x360] ss:$16 sps:$4 sm:$0xff]  }
 0x1f3   :  { %1882 = vmatmul.mubr.bf16.gmra.mxu0 %v3793_v1  ;;  %1657 = vmatmul.mubr.bf16.gmra.mxu1 %v3808_v2 }
 0x1f4   :  { %1889 = vmatprep.mubr.bf16.mxu0 %v3797_v3  ;;  %1664 = vmatprep.mubr.bf16.mxu1 %v3812_v4  ;;  %v3864_v4 = vld [vmem:[#allocation2 + $0x288] ss:$16 sps:$4 sm:$0xff]  }
 0x1fb   :  { %1890 = vmatmul.mubr.bf16.gmra.mxu0 %v3799_v6  ;;  %1665 = vmatmul.mubr.bf16.gmra.mxu1 %v3814_v7  ;;  %v3880_v6 = vld [vmem:[#allocation2 + $0x380] ss:$16 sps:$4 sm:$0xff]   ;;  %v3872_v7 = vld [vmem:[#allocation2 + $0x2ac] ss:$16 sps:$4 sm:$0xff]  }
 0x1fc   :  { %1897 = vmatprep.mubr.bf16.mxu0 %v3803_v8  ;;  %1672 = vmatprep.mubr.bf16.mxu1 %v3818_v9  ;;  %v3888_v8 = vld [vmem:[#allocation2 + $0x3a4] ss:$16 sps:$4 sm:$0xff]  }
 0x203   :  { %1898 = vmatmul.mubr.bf16.gmra.mxu0 %v3805_v12  ;;  %1673 = vmatmul.mubr.bf16.gmra.mxu1 %v3820_v13  ;;  %v3870_v12 = vld [vmem:[#allocation2 + $0x2a8] ss:$16 sps:$4 sm:$0xff]  }
 0x204   :  { %1905 = vmatprep.mubr.bf16.mxu0 %v3809_v14  ;;  %1680 = vmatprep.mubr.bf16.mxu1 %v3824_v15  ;;  %v3886_v14 = vld [vmem:[#allocation2 + $0x3a0] ss:$16 sps:$4 sm:$0xff]   ;;  %v3879_v15 = vld [vmem:[#allocation2 + $0x2cc] ss:$16 sps:$4 sm:$0xff]  }
 0x20b   :  { %1906 = vmatmul.mubr.bf16.gmra.mxu0 %v3811_v17  ;;  %1681 = vmatmul.mubr.bf16.gmra.mxu1 %v3826_v18 }
 0x20c   :  { %1913 = vmatprep.mubr.bf16.mxu0 %v3817_v19  ;;  %1688 = vmatprep.mubr.bf16.mxu1 %v3830_v20  ;;  %v3877_v20 = vld [vmem:[#allocation2 + $0x2c8] ss:$16 sps:$4 sm:$0xff]  }
 0x213   :  { %1914 = vmatmul.mubr.bf16.gmra.mxu0 %v3815_v21  ;;  %1689 = vmatmul.mubr.bf16.gmra.mxu1 %v3832_v22  ;;  %v3894_v22 = vld [vmem:[#allocation2 + $0x3c0] ss:$16 sps:$4 sm:$0xff]  }
 0x214   :  { %1921 = vmatprep.mubr.bf16.mxu0 %v3823_v23  ;;  %1696 = vmatprep.mubr.bf16.mxu1 %v3836_v24  ;;  %v3885_v23 = vld [vmem:[#allocation2 + $0x2ec] ss:$16 sps:$4 sm:$0xff]   ;;  %v3904_v24 = vld [vmem:[#allocation2 + $0x3e4] ss:$16 sps:$4 sm:$0xff]  }
 0x21b   :  { %1922 = vmatmul.mubr.bf16.gmra.mxu0 %v3821_v25  ;;  %1697 = vmatmul.mubr.bf16.gmra.mxu1 %v3838_v26 }
 0x21c   :  { %1929 = vmatprep.mubr.bf16.mxu0 %v3829_v27  ;;  %1704 = vmatprep.mubr.bf16.mxu1 %v3842_v28  ;;  %v3883_v28 = vld [vmem:[#allocation2 + $0x2e8] ss:$16 sps:$4 sm:$0xff]  }
 0x223   :  { %1930 = vmatmul.mubr.bf16.gmra.mxu0 %v3827_v29  ;;  %1705 = vmatmul.mubr.bf16.gmra.mxu1 %v3844_v30  ;;  %v3902_v30 = vld [vmem:[#allocation2 + $0x3e0] ss:$16 sps:$4 sm:$0xff]  }
 0x224   :  { %1937 = vmatprep.mubr.bf16.mxu0 %v3835_v31  ;;  %1712 = vmatprep.mubr.bf16.mxu1 %v3848_v32  ;;  %v3892_v31 = vld [vmem:[#allocation2 + $0x30c] ss:$16 sps:$4 sm:$0xff]  }
 0x22b   :  { %1938 = vmatmul.mubr.bf16.gmra.mxu0 %v3833_v33  ;;  %1713 = vmatmul.mubr.bf16.gmra.mxu1 %v3850_v34 }
 0x22c   :  { %1945 = vmatprep.mubr.bf16.mxu0 %v3841_v36  ;;  %1720 = vmatprep.mubr.bf16.mxu1 %v3855_v37  ;;  %v4336_v36 = vld [vmem:[%s4921_s3] ss:$0 sm:$0xff]  ;;  %v3890_v37 = vld [vmem:[#allocation2 + $0x308] ss:$16 sps:$4 sm:$0xff]  }
 0x233   :  { %1946 = vmatmul.mubr.bf16.gmra.mxu0 %v3839_v38  ;;  %1721 = vmatmul.mubr.bf16.gmra.mxu1 %v3857_v39  ;;  %v4303_v42 = vpop.f32.mrf.mxu1  ;;  %v3900_v39 = vld [vmem:[#allocation2 + $0x32c] ss:$16 sps:$4 sm:$0xff]  }
 0x234   :  { %1953 = vmatprep.mubr.bf16.mxu0 %v3847_v40  ;;  %1728 = vmatprep.mubr.bf16.mxu1 %v3861_v41  ;;  %v1531_v41 = vadd.f32 %v4336_v36, %v4303_v42 }
 0x235   :  { %v1532_v43 = vpop.f32.mrf.mxu1 }
 0x237   :  { %v4305_v45 = vpop.f32.mrf.mxu1 }
 0x239   :  { %v1535_v49 = vpop.f32.mrf.mxu1 }
 0x23b   :  { %1954 = vmatmul.mubr.bf16.gmra.mxu0 %v3845_v44  ;;  %1729 = vmatmul.mubr.bf16.gmra.mxu1 %v3863_v46  ;;  %v4307_v50 = vpop.f32.mrf.mxu1 }
 0x23c   :  { %1961 = vmatprep.mubr.bf16.mxu0 %v3854_v47  ;;  %1736 = vmatprep.mubr.bf16.mxu1 %v3867_v48  ;;  %v1534_v48 = vadd.f32 %v4336_v36, %v4305_v45  ;;  %v1539_v42 = vadd.f32 %v4336_v36, %v4307_v50 }
 0x23d   :  { %v1540_v51 = vpop.f32.mrf.mxu1 }
 0x23f   :  { %v4309_v53 = vpop.f32.mrf.mxu1 }
 0x241   :  { %v1543_v57 = vpop.f32.mrf.mxu1 }
 0x243   :  { %1962 = vmatmul.mubr.bf16.gmra.mxu0 %v3852_v52  ;;  %1737 = vmatmul.mubr.bf16.gmra.mxu1 %v3869_v54  ;;  %v4311_v58 = vpop.f32.mrf.mxu1  ;;  %v3898_v52 = vld [vmem:[#allocation2 + $0x328] ss:$16 sps:$4 sm:$0xff]  }
 0x244   :  { %1969 = vmatprep.mubr.bf16.mxu0 %v3860_v55  ;;  %1744 = vmatprep.mubr.bf16.mxu1 %v3873_v56  ;;  %v3908_v56 = vld [vmem:[#allocation2 + $0x34c] ss:$16 sps:$4 sm:$0xff]  }
 0x245   :  { %v1548_v59 = vpop.f32.mrf.mxu1 }
 0x247   :  { %v4313_v61 = vpop.f32.mrf.mxu1 }
 0x249   :  { %v1551_v1 = vpop.f32.mrf.mxu1 }
 0x24b   :  { %1970 = vmatmul.mubr.bf16.gmra.mxu0 %v3858_v60  ;;  %1745 = vmatmul.mubr.bf16.gmra.mxu1 %v3875_v62  ;;  %v4315_v2 = vpop.f32.mrf.mxu1 }
 0x24c   :  { %1977 = vmatprep.mubr.bf16.mxu0 %v3866_v63  ;;  %1752 = vmatprep.mubr.bf16.mxu1 %v3882_v0 }
 0x24d   :  { %v1556_v3 = vpop.f32.mrf.mxu1 }
 0x24f   :  { %v4317_v5 = vpop.f32.mrf.mxu1 }
 0x251   :  { %v1559_v9 = vpop.f32.mrf.mxu1 }
 0x253   :  { %1978 = vmatmul.mubr.bf16.gmra.mxu0 %v3864_v4  ;;  %1753 = vmatmul.mubr.bf16.gmra.mxu1 %v3880_v6  ;;  %v4319_v10 = vpop.f32.mrf.mxu1  ;;  %v1542_v4 = vadd.f32 %v4336_v36, %v4309_v53 }
 0x254   :  { %1985 = vmatprep.mubr.bf16.mxu0 %v3872_v7  ;;  %1760 = vmatprep.mubr.bf16.mxu1 %v3888_v8  ;;  %v3906_v8 = vld [vmem:[#allocation2 + $0x348] ss:$16 sps:$4 sm:$0xff]  }
 0x255   :  { %v1564_v11 = vpop.f32.mrf.mxu1 }
 0x256   :  { %v3912_v11 = vld [vmem:[#allocation2 + $0x36c] ss:$16 sps:$4 sm:$0xff]  }
 0x257   :  { %v4321_v13 = vpop.f32.mrf.mxu1 }
 0x259   :  { %v1567_v17 = vpop.f32.mrf.mxu1 }
 0x25b   :  { %1986 = vmatmul.mubr.bf16.gmra.mxu0 %v3870_v12  ;;  %1761 = vmatmul.mubr.bf16.gmra.mxu1 %v3886_v14  ;;  %v4323_v18 = vpop.f32.mrf.mxu1 }
 0x25c   :  { %1993 = vmatprep.mubr.bf16.mxu0 %v3879_v15  ;;  %1768 = vmatprep.mubr.bf16.mxu1 %v3896_v16  ;;  %v1547_v15 = vadd.f32 %v4336_v36, %v4311_v58 }
 0x25d   :  { %v1572_v19 = vpop.f32.mrf.mxu1 }
 0x25f   :  { %v4325_v21 = vpop.f32.mrf.mxu1 }
 0x261   :  { %v1575_v25 = vpop.f32.mrf.mxu1 }
 0x263   :  { %1994 = vmatmul.mubr.bf16.gmra.mxu0 %v3877_v20  ;;  %1769 = vmatmul.mubr.bf16.gmra.mxu1 %v3894_v22  ;;  %v4327_v26 = vpop.f32.mrf.mxu1 }
 0x264   :  { %2001 = vmatprep.mubr.bf16.mxu0 %v3885_v23  ;;  %1776 = vmatprep.mubr.bf16.mxu1 %v3904_v24  ;;  %v1550_v24 = vadd.f32 %v4336_v36, %v4313_v61 }
 0x265   :  { %v1580_v27 = vpop.f32.mrf.mxu1 }
 0x267   :  { %v4329_v29 = vpop.f32.mrf.mxu1 }
 0x269   :  { %v1583_v32 = vpop.f32.mrf.mxu1 }
 0x26b   :  { %2002 = vmatmul.mubr.bf16.gmra.mxu0 %v3883_v28  ;;  %1777 = vmatmul.mubr.bf16.gmra.mxu1 %v3902_v30  ;;  %v4331_v33 = vpop.f32.mrf.mxu1  ;;  %v3910_v28 = vld [vmem:[#allocation2 + $0x368] ss:$16 sps:$4 sm:$0xff]  }
 0x26c   :  { %2009 = vmatprep.mubr.bf16.mxu0 %v3892_v31  ;;  %v3915_v31 = vld [vmem:[#allocation2 + $0x38c] ss:$16 sps:$4 sm:$0xff]  }
 0x26d   :  { %v1588_v34 = vpop.f32.mrf.mxu1 }
 0x26f   :  { %v4338_v38 = vpop.f32.mrf.mxu1 }
 0x271   :  { %v1591_v40 = vpop.f32.mrf.mxu1 }
 0x273   :  { %v1819_v43 = vpop.f32.mrf.mxu0  ;;  %2010 = vmatmul.mubr.bf16.gmra.mxu0 %v3890_v37  ;;  %v4342_v44 = vpop.f32.mrf.mxu1  ;;  %v1555_v37 = vadd.f32 %v4336_v36, %v4315_v2 }
 0x274   :  { %2017 = vmatprep.mubr.bf16.mxu0 %v3900_v39  ;;  %v1820_v49 = vadd.f32 %v1819_v43, %v1531_v41 }
 0x275   :  { %v1821_v46 = vpop.f32.mrf.mxu0  ;;  %v1596_v47 = vpop.f32.mrf.mxu1 }
 0x276   :  { %v2074_v60 = vmax.f32 %v1820_v49, 0.0 }
 0x277   :  { %v1822_v51 = vpop.f32.mrf.mxu0  ;;  %v4346_v54 = vpop.f32.mrf.mxu1 }
 0x278   :  { %v1823_v55 = vadd.f32 %v1822_v51, %v1534_v48  ;;  %v1558_v48 = vadd.f32 %v4336_v36, %v4317_v5 }
 0x279   :  { %v1824_v57 = vpop.f32.mrf.mxu0  ;;  %v1599_v59 = vpop.f32.mrf.mxu1 }
 0x27a   :  { %v2075_v62 = vmax.f32 %v1823_v55, 0.0 }
 0x27b   :  { %v1827_v63 = vpop.f32.mrf.mxu0  ;;  %2018 = vmatmul.mubr.bf16.gmra.mxu0 %v3898_v52  ;;  %v4350_v0 = vpop.f32.mrf.mxu1  ;;  %v3913_v52 = vld [vmem:[#allocation2 + $0x388] ss:$16 sps:$4 sm:$0xff]  }
 0x27c   :  { %v2138_v1 = vpack.c.bf16 %v2075_v62, %v2074_v60  ;;  %2025 = vmatprep.mubr.bf16.mxu0 %v3908_v56  ;;  %v1828_v6 = vadd.f32 %v1827_v63, %v1539_v42  ;;  %v3918_v56 = vld [vmem:[#allocation2 + $0x3ac] ss:$16 sps:$4 sm:$0xff]   ;;  %v1563_v42 = vadd.f32 %v4336_v36, %v4319_v10 }
 0x27d   :  { %v1829_v45 = vpop.f32.mrf.mxu0  ;;  %v1604_v3 = vpop.f32.mrf.mxu1 }
 0x27e   :  { %3577 = vmatprep.mubr.bf16.mxu1 %v2138_v1  ;;  %v2076_v16 = vmax.f32 %v1828_v6, 0.0 }
 0x27f   :  { %v1830_v7 = vpop.f32.mrf.mxu0  ;;  %v4354_v9 = vpop.f32.mrf.mxu1 }
 0x280   :  { %v1831_v50 = vadd.f32 %v1830_v7, %v1542_v4  ;;  %v1566_v4 = vadd.f32 %v4336_v36, %v4321_v13 }
 0x281   :  { %v1832_v12 = vpop.f32.mrf.mxu0  ;;  %v1607_v14 = vpop.f32.mrf.mxu1 }
 0x282   :  { %v2077_v17 = vmax.f32 %v1831_v50, 0.0 }
 0x283   :  { %v1835_v19 = vpop.f32.mrf.mxu0  ;;  %2026 = vmatmul.mubr.bf16.gmra.mxu0 %v3906_v8  ;;  %v4358_v20 = vpop.f32.mrf.mxu1  ;;  %v3916_v8 = vld [vmem:[#allocation2 + $0x3a8] ss:$16 sps:$4 sm:$0xff]  }
 0x284   :  { %v2139_v53 = vpack.c.bf16 %v2077_v17, %v2076_v16  ;;  %2033 = vmatprep.mubr.bf16.mxu0 %v3912_v11  ;;  %v1836_v25 = vadd.f32 %v1835_v19, %v1547_v15  ;;  %v3921_v11 = vld [vmem:[#allocation2 + $0x3cc] ss:$16 sps:$4 sm:$0xff]   ;;  %v1571_v15 = vadd.f32 %v4336_v36, %v4323_v18 }
 0x285   :  { %v1837_v22 = vpop.f32.mrf.mxu0  ;;  %v1612_v23 = vpop.f32.mrf.mxu1 }
 0x286   :  { %3578 = vmatmul.mubr.bf16.vlgmr.msra.gmra.mxu1 %v2139_v53  ;;  %v2078_v39 = vmax.f32 %v1836_v25, 0.0 }
 0x287   :  { %v1838_v27 = vpop.f32.mrf.mxu0  ;;  %v4362_v30 = vpop.f32.mrf.mxu1 }
 0x288   :  { %v1839_v58 = vadd.f32 %v1838_v27, %v1550_v24  ;;  %v1574_v24 = vadd.f32 %v4336_v36, %v4325_v21 }
 0x289   :  { %v1840_v32 = vpop.f32.mrf.mxu0  ;;  %v1615_v34 = vpop.f32.mrf.mxu1 }
 0x28a   :  { %v2079_v40 = vmax.f32 %v1839_v58, 0.0 }
 0x28b   :  { %v1843_v41 = vpop.f32.mrf.mxu0  ;;  %2034 = vmatmul.mubr.bf16.gmra.mxu0 %v3910_v28  ;;  %v4366_v43 = vpop.f32.mrf.mxu1  ;;  %v3919_v28 = vld [vmem:[#allocation2 + $0x3c8] ss:$16 sps:$4 sm:$0xff]  }
 0x28c   :  { %v2140_v61 = vpack.c.bf16 %v2079_v40, %v2078_v39  ;;  %2041 = vmatprep.mubr.bf16.mxu0 %v3915_v31  ;;  %v1844_v49 = vadd.f32 %v1843_v41, %v1555_v37  ;;  %v3924_v31 = vld [vmem:[#allocation2 + $0x3ec] ss:$16 sps:$4 sm:$0xff]   ;;  %v1579_v37 = vadd.f32 %v4336_v36, %v4327_v26 }
 0x28d   :  { %v1845_v46 = vpop.f32.mrf.mxu0  ;;  %v1620_v47 = vpop.f32.mrf.mxu1 }
 0x28e   :  { %3581 = vmatprep.mubr.bf16.mxu1 %v2140_v61  ;;  %v2080_v60 = vmax.f32 %v1844_v49, 0.0 }
 0x28f   :  { %v1846_v51 = vpop.f32.mrf.mxu0  ;;  %v4370_v55 = vpop.f32.mrf.mxu1 }
 0x290   :  { %v1847_v2 = vadd.f32 %v1846_v51, %v1558_v48  ;;  %v1582_v48 = vadd.f32 %v4336_v36, %v4329_v29  ;;  %v3925_v29 = vld [vmem:[#allocation2 + $0x4] ss:$16 sps:$4 sm:$0xff]  }
 0x291   :  { %v1848_v57 = vpop.f32.mrf.mxu0  ;;  %v1623_v59 = vpop.f32.mrf.mxu1 }
 0x292   :  { %v2081_v62 = vmax.f32 %v1847_v2, 0.0  ;;  %v1587_v59 = vadd.f32 %v4336_v36, %v4331_v33 }
 0x293   :  { %v1851_v63 = vpop.f32.mrf.mxu0  ;;  %2042 = vmatmul.mubr.bf16.gmra.mxu0 %v3913_v52  ;;  %v4374_v1 = vpop.f32.mrf.mxu1  ;;  %v3922_v52 = vld [vmem:[#allocation2 + $0x3e8] ss:$16 sps:$4 sm:$0xff]  }
 0x294   :  { %v2141_v5 = vpack.c.bf16 %v2081_v62, %v2080_v60  ;;  %2049 = vmatprep.mubr.bf16.mxu0 %v3918_v56  ;;  %v1852_v6 = vadd.f32 %v1851_v63, %v1563_v42 }
 0x295   :  { %v1853_v45 = vpop.f32.mrf.mxu0  ;;  %v1628_v3 = vpop.f32.mrf.mxu1 }
 0x296   :  { %3582 = vmatmul.mubr.bf16.gmra.mxu1 %v2141_v5  ;;  %v2082_v16 = vmax.f32 %v1852_v6, 0.0 }
 0x297   :  { %v1854_v7 = vpop.f32.mrf.mxu0  ;;  %v4378_v50 = vpop.f32.mrf.mxu1 }
 0x298   :  { %v1855_v10 = vadd.f32 %v1854_v7, %v1566_v4  ;;  %v1590_v4 = vadd.f32 %v4336_v36, %v4338_v38  ;;  %v1598_v38 = vadd.f32 %v4336_v36, %v4346_v54  ;;  %v1606_v54 = vadd.f32 %v4336_v36, %v4354_v9 }
 0x299   :  { %v1856_v12 = vpop.f32.mrf.mxu0  ;;  %v1631_v14 = vpop.f32.mrf.mxu1  ;;  %v1614_v9 = vadd.f32 %v4336_v36, %v4362_v30  ;;  %v1622_v30 = vadd.f32 %v4336_v36, %v4370_v55  ;;  %v1630_v55 = vadd.f32 %v4336_v36, %v4378_v50 }
 0x29a   :  { %v2083_v17 = vmax.f32 %v1855_v10, 0.0  ;;  %v1595_v12 = vadd.f32 %v4336_v36, %v4342_v44  ;;  %v1603_v44 = vadd.f32 %v4336_v36, %v4350_v0  ;;  %v1611_v0 = vadd.f32 %v4336_v36, %v4358_v20 }
 0x29b   :  { %v1859_v19 = vpop.f32.mrf.mxu0  ;;  %2050 = vmatmul.mubr.bf16.gmra.mxu0 %v3916_v8  ;;  %v4382_v53 = vpop.f32.mrf.mxu1  ;;  %v1619_v20 = vadd.f32 %v4336_v36, %v4366_v43  ;;  %v1627_v43 = vadd.f32 %v4336_v36, %v4374_v1 }
 0x29c   :  { %v2142_v13 = vpack.c.bf16 %v2083_v17, %v2082_v16  ;;  %2057 = vmatprep.mubr.bf16.mxu0 %v3921_v11  ;;  %v1860_v25 = vadd.f32 %v1859_v19, %v1571_v15  ;;  %v1635_v1 = vadd.f32 %v4336_v36, %v4382_v53 }
 0x29d   :  { %v1861_v22 = vpop.f32.mrf.mxu0  ;;  %v1636_v23 = vpop.f32.mrf.mxu1 }
 0x29e   :  { %3585 = vmatprep.mubr.bf16.mxu1 %v2142_v13  ;;  %v2084_v39 = vmax.f32 %v1860_v25, 0.0 }
 0x29f   :  { %v1862_v27 = vpop.f32.mrf.mxu0  ;;  %v4386_v58 = vpop.f32.mrf.mxu1 }
 0x2a0   :  { %v1863_v18 = vadd.f32 %v1862_v27, %v1574_v24  ;;  %v1638_v50 = vadd.f32 %v4336_v36, %v4386_v58 }
 0x2a1   :  { %v1864_v32 = vpop.f32.mrf.mxu0  ;;  %v1639_v34 = vpop.f32.mrf.mxu1 }
 0x2a2   :  { %v2085_v40 = vmax.f32 %v1863_v18, 0.0 }
 0x2a3   :  { %v1867_v41 = vpop.f32.mrf.mxu0  ;;  %2058 = vmatmul.mubr.bf16.gmra.mxu0 %v3919_v28  ;;  %v4390_v61 = vpop.f32.mrf.mxu1 }
 0x2a4   :  { %v2143_v21 = vpack.c.bf16 %v2085_v40, %v2084_v39  ;;  %2065 = vmatprep.mubr.bf16.mxu0 %v3924_v31  ;;  %v1868_v49 = vadd.f32 %v1867_v41, %v1579_v37  ;;  %v1643_v53 = vadd.f32 %v4336_v36, %v4390_v61 }
 0x2a5   :  { %v1869_v46 = vpop.f32.mrf.mxu0  ;;  %v1644_v47 = vpop.f32.mrf.mxu1 }
 0x2a6   :  { %3586 = vmatmul.mubr.bf16.gmra.mxu1 %v2143_v21  ;;  %v2086_v42 = vmax.f32 %v1868_v49, 0.0 }
 0x2a7   :  { %v1870_v51 = vpop.f32.mrf.mxu0  ;;  %v4394_v2 = vpop.f32.mrf.mxu1 }
 0x2a8   :  { %v1871_v26 = vadd.f32 %v1870_v51, %v1582_v48  ;;  %v1646_v58 = vadd.f32 %v4336_v36, %v4394_v2 }
 0x2a9   :  { %v1872_v56 = vpop.f32.mrf.mxu0  ;;  %v1647_v57 = vpop.f32.mrf.mxu1 }
 0x2aa   :  { %v2087_v60 = vmax.f32 %v1871_v26, 0.0 }
 0x2ab   :  { %v1875_v62 = vpop.f32.mrf.mxu0  ;;  %2066 = vmatmul.mubr.bf16.gmra.mxu0 %v3922_v52  ;;  %v4398_v63 = vpop.f32.mrf.mxu1 }
 0x2ac   :  { %v2144_v5 = vpack.c.bf16 %v2087_v60, %v2086_v42  ;;  %2594 = vmatprep.mubr.bf16.mxu0 %v3925_v29  ;;  %v1876_v6 = vadd.f32 %v1875_v62, %v1587_v59  ;;  %v1651_v61 = vadd.f32 %v4336_v36, %v4398_v63 }
 0x2ad   :  { %v1877_v45 = vpop.f32.mrf.mxu0  ;;  %v1652_v3 = vpop.f32.mrf.mxu1 }
 0x2ae   :  { %3589 = vmatprep.mubr.bf16.mxu1 %v2144_v5  ;;  %v2088_v14 = vmax.f32 %v1876_v6, 0.0 }
 0x2af   :  { %v1878_v7 = vpop.f32.mrf.mxu0  ;;  %v4402_v8 = vpop.f32.mrf.mxu1 }
 0x2b0   :  { %v1879_v33 = vadd.f32 %v1878_v7, %v1590_v4  ;;  %v1654_v2 = vadd.f32 %v4336_v36, %v4402_v8 }
 0x2b1   :  { %v1880_v10 = vpop.f32.mrf.mxu0  ;;  %v1655_v11 = vpop.f32.mrf.mxu1 }
 0x2b2   :  { %v2089_v15 = vmax.f32 %v1879_v33, 0.0 }
 0x2b3   :  { %v1883_v16 = vpop.f32.mrf.mxu0  ;;  %v4406_v17 = vpop.f32.mrf.mxu1 }
 0x2b4   :  { %v2145_v19 = vpack.c.bf16 %v2089_v15, %v2088_v14  ;;  %v1884_v23 = vadd.f32 %v1883_v16, %v1595_v12  ;;  %v1659_v63 = vadd.f32 %v4336_v36, %v4406_v17 }
 0x2b5   :  { %v1885_v13 = vpop.f32.mrf.mxu0  ;;  %v1660_v22 = vpop.f32.mrf.mxu1 }
 0x2b6   :  { %3590 = vmatmul.mubr.bf16.gmra.mxu1 %v2145_v19  ;;  %v2090_v31 = vmax.f32 %v1884_v23, 0.0 }
 0x2b7   :  { %v1886_v24 = vpop.f32.mrf.mxu0  ;;  %v4410_v25 = vpop.f32.mrf.mxu1 }
 0x2b8   :  { %v1887_v27 = vadd.f32 %v1886_v24, %v1598_v38  ;;  %v1662_v8 = vadd.f32 %v4336_v36, %v4410_v25 }
 0x2b9   :  { %v1888_v28 = vpop.f32.mrf.mxu0  ;;  %v1663_v18 = vpop.f32.mrf.mxu1 }
 0x2ba   :  { %v2091_v32 = vmax.f32 %v1887_v27, 0.0 }
 0x2bb   :  { %v1891_v34 = vpop.f32.mrf.mxu0  ;;  %v4414_v37 = vpop.f32.mrf.mxu1 }
 0x2bc   :  { %v2146_v39 = vpack.c.bf16 %v2091_v32, %v2090_v31  ;;  %v1892_v21 = vadd.f32 %v1891_v34, %v1603_v44  ;;  %v1667_v17 = vadd.f32 %v4336_v36, %v4414_v37 }
 0x2bd   :  { %v1893_v40 = vpop.f32.mrf.mxu0  ;;  %v1668_v41 = vpop.f32.mrf.mxu1 }
 0x2be   :  { %3593 = vmatprep.mubr.bf16.mxu1 %v2146_v39  ;;  %v2092_v52 = vmax.f32 %v1892_v21, 0.0 }
 0x2bf   :  { %v1894_v46 = vpop.f32.mrf.mxu0  ;;  %v4418_v47 = vpop.f32.mrf.mxu1 }
 0x2c0   :  { %v1895_v48 = vadd.f32 %v1894_v46, %v1606_v54  ;;  %v1670_v25 = vadd.f32 %v4336_v36, %v4418_v47 }
 0x2c1   :  { %v1896_v49 = vpop.f32.mrf.mxu0  ;;  %v1671_v51 = vpop.f32.mrf.mxu1 }
 0x2c2   :  { %v2093_v26 = vmax.f32 %v1895_v48, 0.0 }
 0x2c3   :  { %v1899_v56 = vpop.f32.mrf.mxu0  ;;  %v4422_v57 = vpop.f32.mrf.mxu1 }
 0x2c4   :  { %v2147_v59 = vpack.c.bf16 %v2093_v26, %v2092_v52  ;;  %v1900_v62 = vadd.f32 %v1899_v56, %v1611_v0  ;;  %v1675_v37 = vadd.f32 %v4336_v36, %v4422_v57 }
 0x2c5   :  { %v1901_v42 = vpop.f32.mrf.mxu0  ;;  %v1676_v60 = vpop.f32.mrf.mxu1 }
 0x2c6   :  { %3594 = vmatmul.mubr.bf16.gmra.mxu1 %v2147_v59  ;;  %v2094_v6 = vmax.f32 %v1900_v62, 0.0 }
 0x2c7   :  { %v1902_v5 = vpop.f32.mrf.mxu0  ;;  %v4426_v29 = vpop.f32.mrf.mxu1 }
 0x2c8   :  { %v1903_v45 = vadd.f32 %v1902_v5, %v1614_v9  ;;  %v1678_v47 = vadd.f32 %v4336_v36, %v4426_v29 }
 0x2c9   :  { %v1904_v3 = vpop.f32.mrf.mxu0  ;;  %v1679_v4 = vpop.f32.mrf.mxu1 }
 0x2ca   :  { %v2095_v7 = vmax.f32 %v1903_v45, 0.0 }
 0x2cb   :  { %v1907_v33 = vpop.f32.mrf.mxu0  ;;  %v4430_v10 = vpop.f32.mrf.mxu1 }
 0x2cc   :  { %v2148_v11 = vpack.c.bf16 %v2095_v7, %v2094_v6  ;;  %v1908_v15 = vadd.f32 %v1907_v33, %v1619_v20  ;;  %v1683_v57 = vadd.f32 %v4336_v36, %v4430_v10 }
 0x2cd   :  { %v1909_v12 = vpop.f32.mrf.mxu0  ;;  %v1684_v14 = vpop.f32.mrf.mxu1 }
 0x2ce   :  { %3597 = vmatprep.mubr.bf16.mxu1 %v2148_v11  ;;  %v2096_v23 = vmax.f32 %v1908_v15, 0.0 }
 0x2cf   :  { %v1910_v16 = vpop.f32.mrf.mxu0  ;;  %v4434_v19 = vpop.f32.mrf.mxu1 }
 0x2d0   :  { %v1911_v13 = vadd.f32 %v1910_v16, %v1622_v30  ;;  %v1686_v29 = vadd.f32 %v4336_v36, %v4434_v19 }
 0x2d1   :  { %v1912_v22 = vpop.f32.mrf.mxu0  ;;  %v1687_v38 = vpop.f32.mrf.mxu1 }
 0x2d2   :  { %v2097_v24 = vmax.f32 %v1911_v13, 0.0 }
 0x2d3   :  { %v1915_v27 = vpop.f32.mrf.mxu0  ;;  %v4438_v28 = vpop.f32.mrf.mxu1 }
 0x2d4   :  { %v2149_v18 = vpack.c.bf16 %v2097_v24, %v2096_v23  ;;  %v1916_v32 = vadd.f32 %v1915_v27, %v1627_v43  ;;  %v1691_v10 = vadd.f32 %v4336_v36, %v4438_v28 }
 0x2d5   :  { %v1917_v44 = vpop.f32.mrf.mxu0  ;;  %v1692_v31 = vpop.f32.mrf.mxu1 }
 0x2d6   :  { %3598 = vmatmul.mubr.bf16.gmra.mxu1 %v2149_v18  ;;  %v2098_v21 = vmax.f32 %v1916_v32, 0.0 }
 0x2d7   :  { %v1918_v34 = vpop.f32.mrf.mxu0  ;;  %v4442_v39 = vpop.f32.mrf.mxu1 }
 0x2d8   :  { %v1919_v40 = vadd.f32 %v1918_v34, %v1630_v55  ;;  %v1694_v19 = vadd.f32 %v4336_v36, %v4442_v39 }
 0x2d9   :  { %v1920_v41 = vpop.f32.mrf.mxu0  ;;  %v1695_v54 = vpop.f32.mrf.mxu1 }
 0x2da   :  { %v2099_v46 = vmax.f32 %v1919_v40, 0.0 }
 0x2db   :  { %v1923_v48 = vpop.f32.mrf.mxu0  ;;  %v4446_v49 = vpop.f32.mrf.mxu1 }
 0x2dc   :  { %v2150_v51 = vpack.c.bf16 %v2099_v46, %v2098_v21  ;;  %v1924_v26 = vadd.f32 %v1923_v48, %v1635_v1  ;;  %v1699_v28 = vadd.f32 %v4336_v36, %v4446_v49 }
 0x2dd   :  { %v1925_v0 = vpop.f32.mrf.mxu0  ;;  %v1700_v52 = vpop.f32.mrf.mxu1 }
 0x2de   :  { %3601 = vmatprep.mubr.bf16.mxu1 %v2150_v51  ;;  %v2100_v62 = vmax.f32 %v1924_v26, 0.0 }
 0x2df   :  { %v1926_v56 = vpop.f32.mrf.mxu0  ;;  %v4450_v59 = vpop.f32.mrf.mxu1 }
 0x2e0   :  { %v1927_v42 = vadd.f32 %v1926_v56, %v1638_v50  ;;  %v1702_v39 = vadd.f32 %v4336_v36, %v4450_v59 }
 0x2e1   :  { %v1928_v60 = vpop.f32.mrf.mxu0  ;;  %v1703_v9 = vpop.f32.mrf.mxu1 }
 0x2e2   :  { %v2101_v5 = vmax.f32 %v1927_v42, 0.0 }
 0x2e3   :  { %v1931_v45 = vpop.f32.mrf.mxu0  ;;  %v4454_v3 = vpop.f32.mrf.mxu1 }
 0x2e4   :  { %v2151_v4 = vpack.c.bf16 %v2101_v5, %v2100_v62  ;;  %v1932_v7 = vadd.f32 %v1931_v45, %v1643_v53  ;;  %v1707_v49 = vadd.f32 %v4336_v36, %v4454_v3 }
 0x2e5   :  { %v1933_v20 = vpop.f32.mrf.mxu0  ;;  %v1708_v6 = vpop.f32.mrf.mxu1 }
 0x2e6   :  { %3602 = vmatmul.mubr.bf16.gmra.mxu1 %v2151_v4  ;;  %v2102_v15 = vmax.f32 %v1932_v7, 0.0 }
 0x2e7   :  { %v1934_v33 = vpop.f32.mrf.mxu0  ;;  %v4458_v11 = vpop.f32.mrf.mxu1 }
 0x2e8   :  { %v1935_v12 = vadd.f32 %v1934_v33, %v1646_v58  ;;  %v1710_v59 = vadd.f32 %v4336_v36, %v4458_v11 }
 0x2e9   :  { %v1936_v14 = vpop.f32.mrf.mxu0  ;;  %v1711_v30 = vpop.f32.mrf.mxu1 }
 0x2ea   :  { %v2103_v16 = vmax.f32 %v1935_v12, 0.0 }
 0x2eb   :  { %v1939_v13 = vpop.f32.mrf.mxu0  ;;  %v4462_v22 = vpop.f32.mrf.mxu1 }
 0x2ec   :  { %v2152_v38 = vpack.c.bf16 %v2103_v16, %v2102_v15  ;;  %v1940_v24 = vadd.f32 %v1939_v13, %v1651_v61  ;;  %v1715_v3 = vadd.f32 %v4336_v36, %v4462_v22 }
 0x2ed   :  { %v1941_v43 = vpop.f32.mrf.mxu0  ;;  %v1716_v23 = vpop.f32.mrf.mxu1 }
 0x2ee   :  { %3605 = vmatprep.mubr.bf16.mxu1 %v2152_v38  ;;  %v2104_v32 = vmax.f32 %v1940_v24, 0.0 }
 0x2ef   :  { %v1942_v27 = vpop.f32.mrf.mxu0  ;;  %v4466_v18 = vpop.f32.mrf.mxu1 }
 0x2f0   :  { %v1943_v44 = vadd.f32 %v1942_v27, %v1654_v2  ;;  %v1718_v11 = vadd.f32 %v4336_v36, %v4466_v18 }
 0x2f1   :  { %v1944_v31 = vpop.f32.mrf.mxu0  ;;  %v1719_v55 = vpop.f32.mrf.mxu1 }
 0x2f2   :  { %v2105_v34 = vmax.f32 %v1943_v44, 0.0 }
 0x2f3   :  { %v1947_v40 = vpop.f32.mrf.mxu0  ;;  %v4470_v41 = vpop.f32.mrf.mxu1 }
 0x2f4   :  { %v2153_v54 = vpack.c.bf16 %v2105_v34, %v2104_v32  ;;  %v1948_v46 = vadd.f32 %v1947_v40, %v1659_v63  ;;  %v1723_v22 = vadd.f32 %v4336_v36, %v4470_v41 }
 0x2f5   :  { %v1949_v1 = vpop.f32.mrf.mxu0  ;;  %v1724_v21 = vpop.f32.mrf.mxu1 }
 0x2f6   :  { %3606 = vmatmul.mubr.bf16.gmra.mxu1 %v2153_v54  ;;  %v2106_v26 = vmax.f32 %v1948_v46, 0.0 }
 0x2f7   :  { %v1950_v48 = vpop.f32.mrf.mxu0  ;;  %v4474_v51 = vpop.f32.mrf.mxu1 }
 0x2f8   :  { %v1951_v0 = vadd.f32 %v1950_v48, %v1662_v8 }
 0x2f9   :  { %v1952_v52 = vpop.f32.mrf.mxu0  ;;  %v1727_v50 = vpop.f32.mrf.mxu1 }
 0x2fa   :  { %v2107_v56 = vmax.f32 %v1951_v0, 0.0 }
 0x2fb   :  { %v1955_v42 = vpop.f32.mrf.mxu0  ;;  %v4478_v60 = vpop.f32.mrf.mxu1 }
 0x2fc   :  { %v2154_v9 = vpack.c.bf16 %v2107_v56, %v2106_v26  ;;  %v1956_v5 = vadd.f32 %v1955_v42, %v1667_v17 }
 0x2fd   :  { %v1957_v53 = vpop.f32.mrf.mxu0  ;;  %v1732_v62 = vpop.f32.mrf.mxu1 }
 0x2fe   :  { %3609 = vmatprep.mubr.bf16.mxu1 %v2154_v9  ;;  %v2108_v7 = vmax.f32 %v1956_v5, 0.0 }
 0x2ff   :  { %v1958_v45 = vpop.f32.mrf.mxu0  ;;  %v4482_v4 = vpop.f32.mrf.mxu1 }
 0x300   :  { %v1959_v20 = vadd.f32 %v1958_v45, %v1670_v25 }
 0x301   :  { %v1960_v6 = vpop.f32.mrf.mxu0  ;;  %v1735_v58 = vpop.f32.mrf.mxu1 }
 0x302   :  { %v2109_v33 = vmax.f32 %v1959_v20, 0.0 }
 0x303   :  { %v1963_v12 = vpop.f32.mrf.mxu0  ;;  %v4486_v14 = vpop.f32.mrf.mxu1 }
 0x304   :  { %v2155_v30 = vpack.c.bf16 %v2109_v33, %v2108_v7  ;;  %v1964_v16 = vadd.f32 %v1963_v12, %v1675_v37 }
 0x305   :  { %v1965_v61 = vpop.f32.mrf.mxu0  ;;  %v1740_v15 = vpop.f32.mrf.mxu1 }
 0x306   :  { %3610 = vmatmul.mubr.bf16.gmra.mxu1 %v2155_v30  ;;  %v2110_v24 = vmax.f32 %v1964_v16, 0.0 }
 0x307   :  { %v1966_v13 = vpop.f32.mrf.mxu0  ;;  %v4490_v38 = vpop.f32.mrf.mxu1 }
 0x308   :  { %v1967_v43 = vadd.f32 %v1966_v13, %v1678_v47 }
 0x309   :  { %v1968_v23 = vpop.f32.mrf.mxu0  ;;  %v1743_v2 = vpop.f32.mrf.mxu1 }
 0x30a   :  { %v2111_v27 = vmax.f32 %v1967_v43, 0.0 }
 0x30b   :  { %v1971_v44 = vpop.f32.mrf.mxu0  ;;  %v4494_v31 = vpop.f32.mrf.mxu1 }
 0x30c   :  { %v2156_v55 = vpack.c.bf16 %v2111_v27, %v2110_v24  ;;  %v1972_v34 = vadd.f32 %v1971_v44, %v1683_v57 }
 0x30d   :  { %v1973_v63 = vpop.f32.mrf.mxu0  ;;  %v1748_v32 = vpop.f32.mrf.mxu1 }
 0x30e   :  { %3613 = vmatprep.mubr.bf16.mxu1 %v2156_v55  ;;  %v2112_v46 = vmax.f32 %v1972_v34, 0.0 }
 0x30f   :  { %v1974_v40 = vpop.f32.mrf.mxu0  ;;  %v4498_v54 = vpop.f32.mrf.mxu1 }
 0x310   :  { %v1975_v1 = vadd.f32 %v1974_v40, %v1686_v29 }
 0x311   :  { %v1976_v21 = vpop.f32.mrf.mxu0  ;;  %v1751_v8 = vpop.f32.mrf.mxu1 }
 0x312   :  { %v2113_v48 = vmax.f32 %v1975_v1, 0.0 }
 0x313   :  { %v1979_v0 = vpop.f32.mrf.mxu0  ;;  %v4502_v52 = vpop.f32.mrf.mxu1 }
 0x314   :  { %v2157_v50 = vpack.c.bf16 %v2113_v48, %v2112_v46  ;;  %v1980_v56 = vadd.f32 %v1979_v0, %v1691_v10 }
 0x315   :  { %v1981_v17 = vpop.f32.mrf.mxu0  ;;  %v1756_v26 = vpop.f32.mrf.mxu1 }
 0x316   :  { %3614 = vmatmul.mubr.bf16.gmra.mxu1 %v2157_v50  ;;  %v2114_v5 = vmax.f32 %v1980_v56, 0.0 }
 0x317   :  { %v1982_v42 = vpop.f32.mrf.mxu0  ;;  %v4506_v9 = vpop.f32.mrf.mxu1 }
 0x318   :  { %v1983_v53 = vadd.f32 %v1982_v42, %v1694_v19 }
 0x319   :  { %v1984_v62 = vpop.f32.mrf.mxu0  ;;  %v1759_v25 = vpop.f32.mrf.mxu1 }
 0x31a   :  { %v2115_v45 = vmax.f32 %v1983_v53, 0.0 }
 0x31b   :  { %v1987_v20 = vpop.f32.mrf.mxu0  ;;  %v4510_v6 = vpop.f32.mrf.mxu1 }
 0x31c   :  { %v2158_v58 = vpack.c.bf16 %v2115_v45, %v2114_v5  ;;  %v1988_v33 = vadd.f32 %v1987_v20, %v1699_v28  ;;  %v1726_v28 = vadd.f32 %v4336_v36, %v4474_v51 }
 0x31d   :  { %v1989_v37 = vpop.f32.mrf.mxu0  ;;  %v1764_v7 = vpop.f32.mrf.mxu1 }
 0x31e   :  { %3617 = vmatprep.mubr.bf16.mxu1 %v2158_v58  ;;  %v2116_v16 = vmax.f32 %v1988_v33, 0.0  ;;  %v1731_v58 = vadd.f32 %v4336_v36, %v4478_v60 }
 0x31f   :  { %v1990_v12 = vpop.f32.mrf.mxu0  ;;  %v4514_v30 = vpop.f32.mrf.mxu1 }
 0x320   :  { %v1991_v61 = vadd.f32 %v1990_v12, %v1702_v39  ;;  %v1734_v12 = vadd.f32 %v4336_v36, %v4482_v4 }
 0x321   :  { %v1992_v15 = vpop.f32.mrf.mxu0  ;;  %v1767_v47 = vpop.f32.mrf.mxu1 }
 0x322   :  { %v2117_v13 = vmax.f32 %v1991_v61, 0.0 }
 0x323   :  { %v1995_v43 = vpop.f32.mrf.mxu0  ;;  %v4518_v23 = vpop.f32.mrf.mxu1 }
 0x324   :  { %v2159_v2 = vpack.c.bf16 %v2117_v13, %v2116_v16  ;;  %v1996_v27 = vadd.f32 %v1995_v43, %v1707_v49  ;;  %v1739_v49 = vadd.f32 %v4336_v36, %v4486_v14 }
 0x325   :  { %v1997_v57 = vpop.f32.mrf.mxu0  ;;  %v1772_v24 = vpop.f32.mrf.mxu1 }
 0x326   :  { %3618 = vmatmul.mubr.bf16.gmra.mxu1 %v2159_v2  ;;  %v2118_v34 = vmax.f32 %v1996_v27, 0.0  ;;  %v1742_v57 = vadd.f32 %v4336_v36, %v4490_v38 }
 0x327   :  { %v1998_v44 = vpop.f32.mrf.mxu0  ;;  %v4522_v55 = vpop.f32.mrf.mxu1 }
 0x328   :  { %v1999_v63 = vadd.f32 %v1998_v44, %v1710_v59  ;;  %v1747_v44 = vadd.f32 %v4336_v36, %v4494_v31  ;;  %v1755_v31 = vadd.f32 %v4336_v36, %v4502_v52  ;;  %v1763_v52 = vadd.f32 %v4336_v36, %v4510_v6 }
 0x329   :  { %v2000_v32 = vpop.f32.mrf.mxu0  ;;  %v1775_v29 = vpop.f32.mrf.mxu1  ;;  %v1771_v6 = vadd.f32 %v4336_v36, %v4518_v23 }
 0x32a   :  { %v2119_v40 = vmax.f32 %v1999_v63, 0.0 }
 0x32b   :  { %v2003_v1 = vpop.f32.mrf.mxu0  ;;  %v4526_v21 = vpop.f32.mrf.mxu1 }
 0x32c   :  { %v2160_v8 = vpack.c.bf16 %v2119_v40, %v2118_v34  ;;  %v2004_v48 = vadd.f32 %v2003_v1, %v1715_v3  ;;  %v1750_v40 = vadd.f32 %v4336_v36, %v4498_v54  ;;  %v1758_v54 = vadd.f32 %v4336_v36, %v4506_v9 }
 0x32d   :  { %v2005_v10 = vpop.f32.mrf.mxu0  ;;  %v1780_v46 = vpop.f32.mrf.mxu1  ;;  %v1766_v9 = vadd.f32 %v4336_v36, %v4514_v30 }
 0x32e   :  { %3621 = vmatprep.mubr.bf16.mxu1 %v2160_v8  ;;  %v2120_v56 = vmax.f32 %v2004_v48, 0.0 }
 0x32f   :  { %v2006_v0 = vpop.f32.mrf.mxu0  ;;  %v4530_v50 = vpop.f32.mrf.mxu1 }
 0x330   :  { %v2007_v17 = vadd.f32 %v2006_v0, %v1718_v11 }
 0x331   :  { %v2008_v26 = vpop.f32.mrf.mxu0  ;;  %v1783_v19 = vpop.f32.mrf.mxu1 }
 0x332   :  { %v2121_v42 = vmax.f32 %v2007_v17, 0.0 }
 0x333   :  { %v2011_v53 = vpop.f32.mrf.mxu0 }
 0x334   :  { %v2161_v62 = vpack.c.bf16 %v2121_v42, %v2120_v56  ;;  %v2012_v18 = vadd.f32 %v2011_v53, %v1723_v22 }
 0x335   :  { %v2013_v25 = vpop.f32.mrf.mxu0 }
 0x336   :  { %3622 = vmatmul.mubr.bf16.gmra.mxu1 %v2161_v62  ;;  %v2122_v37 = vmax.f32 %v2012_v18, 0.0 }
 0x337   :  { %v2014_v5 = vpop.f32.mrf.mxu0 }
 0x338   :  { %v2015_v45 = vadd.f32 %v2014_v5, %v1726_v28 }
 0x339   :  { %v2016_v20 = vpop.f32.mrf.mxu0 }
 0x33a   :  { %v2123_v7 = vmax.f32 %v2015_v45, 0.0 }
 0x33b   :  { %v2019_v39 = vpop.f32.mrf.mxu0 }
 0x33c   :  { %v2162_v41 = vpack.c.bf16 %v2123_v7, %v2122_v37  ;;  %v2020_v61 = vadd.f32 %v2019_v39, %v1731_v58 }
 0x33d   :  { %v2021_v33 = vpop.f32.mrf.mxu0 }
 0x33e   :  { %3625 = vmatprep.mubr.bf16.mxu1 %v2162_v41  ;;  %v2124_v16 = vmax.f32 %v2020_v61, 0.0 }
 0x33f   :  { %v2022_v15 = vpop.f32.mrf.mxu0 }
 0x340   :  { %v2023_v51 = vadd.f32 %v2022_v15, %v1734_v12 }
 0x341   :  { %v2024_v47 = vpop.f32.mrf.mxu0 }
 0x342   :  { %v2125_v13 = vmax.f32 %v2023_v51, 0.0 }
 0x343   :  { %v2027_v43 = vpop.f32.mrf.mxu0 }
 0x344   :  { %v2163_v60 = vpack.c.bf16 %v2125_v13, %v2124_v16  ;;  %v2028_v24 = vadd.f32 %v2027_v43, %v1739_v49  ;;  %v1774_v49 = vadd.f32 %v4336_v36, %v4522_v55  ;;  %v3926_v55 = vld [vmem:[%s4921_s3] ss:$0 sm:$0xff] }
 0x345   :  { %v2029_v2 = vpop.f32.mrf.mxu0 }
 0x346   :  { %3626 = vmatmul.mubr.bf16.gmra.mxu1 %v2163_v60  ;;  %v2126_v63 = vmax.f32 %v2028_v24, 0.0  ;;  %v4546_v14 = vpop.f32.mrf.mxu1 }
 0x347   :  { %v2030_v59 = vpop.f32.mrf.mxu0 }
 0x348   :  { %v2031_v4 = vadd.f32 %v2030_v59, %v1742_v57  ;;  %v4550_v8 = vpop.f32.mrf.mxu1  ;;  %v1779_v57 = vadd.f32 %v4336_v36, %v4526_v21 }
 0x349   :  { %v2032_v27 = vpop.f32.mrf.mxu0 }
 0x34a   :  { %v2127_v32 = vmax.f32 %v2031_v4, 0.0  ;;  %v4554_v17 = vpop.f32.mrf.mxu1 }
 0x34b   :  { %v2035_v29 = vpop.f32.mrf.mxu0 }
 0x34c   :  { %v2164_v3 = vpack.c.bf16 %v2127_v32, %v2126_v63  ;;  %v2036_v1 = vadd.f32 %v2035_v29, %v1747_v44  ;;  %v4558_v42 = vpop.f32.mrf.mxu1  ;;  %v1782_v63 = vadd.f32 %v3926_v55, %v4530_v50  ;;  %v3933_v55 = vld [vmem:[#allocation2 + $0x64] ss:$16 sps:$4 sm:$0xff]  }
 0x34d   :  { %v2037_v34 = vpop.f32.mrf.mxu0 }
 0x34e   :  { %3629 = vmatprep.mubr.bf16.mxu1 %v2164_v3  ;;  %v2128_v11 = vmax.f32 %v2036_v1, 0.0 }
 0x34f   :  { %v2038_v38 = vpop.f32.mrf.mxu0 }
 0x350   :  { %v2039_v10 = vadd.f32 %v2038_v38, %v1750_v40 }
 0x351   :  { %v2040_v46 = vpop.f32.mrf.mxu0 }
 0x352   :  { %v2129_v48 = vmax.f32 %v2039_v10, 0.0  ;;  %v3927_v46 = vld [vmem:[#allocation2 + $0x4c] ss:$16 sps:$4 sm:$0xff]  }
 0x353   :  { %v2043_v0 = vpop.f32.mrf.mxu0 }
 0x354   :  { %v2165_v26 = vpack.c.bf16 %v2129_v48, %v2128_v11  ;;  %v2044_v22 = vadd.f32 %v2043_v0, %v1755_v31 }
 0x355   :  { %v2045_v19 = vpop.f32.mrf.mxu0 }
 0x356   :  { %3630 = vmatmul.mubr.bf16.gmra.mxu1 %v2165_v26  ;;  %v2130_v25 = vmax.f32 %v2044_v22, 0.0  ;;  %v4562_v28 = vpop.f32.mrf.mxu1 }
 0x357   :  { %v2046_v56 = vpop.f32.mrf.mxu0 }
 0x358   :  { %v2047_v53 = vadd.f32 %v2046_v56, %v1758_v54  ;;  %v4566_v58 = vpop.f32.mrf.mxu1 }
 0x359   :  { %v2048_v62 = vpop.f32.mrf.mxu0 }
 0x35a   :  { %v2131_v18 = vmax.f32 %v2047_v53, 0.0  ;;  %v3584_v33 = vpop.f32.mrf.mxu1  ;;  %v2524_v62 = vpack.c.bf16 %v4554_v17, %v4546_v14 }
 0x35b   :  { %v2051_v5 = vpop.f32.mrf.mxu0  ;;  %v2526_v54 = vpack.c.bf16 %v3584_v33, %v4562_v28 }
 0x35c   :  { %v2166_v45 = vpack.c.bf16 %v2131_v18, %v2130_v25  ;;  %v2052_v37 = vadd.f32 %v2051_v5, %v1763_v52  ;;  %v2287_v30 = vpop.f32.mrf.mxu1  ;;  %v2523_v25 = vpack.c.bf16 %v4558_v42, %v4550_v8 }
 0x35d   :  { %v2053_v20 = vpop.f32.mrf.mxu0  ;;  %v2525_v56 = vpack.c.bf16 %v2287_v30, %v4566_v58 }
 0x35e   :  { %3633 = vmatprep.mubr.bf16.mxu1 %v2166_v45  ;;  %v2132_v12 = vmax.f32 %v2052_v37, 0.0 }
 0x35f   :  { %v2054_v7 = vpop.f32.mrf.mxu0 }
 0x360   :  { %v2055_v39 = vadd.f32 %v2054_v7, %v1766_v9 }
 0x361   :  { %v2056_v41 = vpop.f32.mrf.mxu0 }
 0x362   :  { %v2133_v61 = vmax.f32 %v2055_v39, 0.0 }
 0x363   :  { %v2059_v15 = vpop.f32.mrf.mxu0 }
 0x364   :  { %v2167_v51 = vpack.c.bf16 %v2133_v61, %v2132_v12  ;;  %v2060_v16 = vadd.f32 %v2059_v15, %v1771_v6 }
 0x365   :  { %v2061_v47 = vpop.f32.mrf.mxu0 }
 0x366   :  { %3634 = vmatmul.mubr.bf16.gmra.mxu1 %v2167_v51  ;;  %v3587_v43 = vpop.f32.mrf.mxu1  ;;  %v2134_v23 = vmax.f32 %v2060_v16, 0.0 }
 0x367   :  { %v2062_v13 = vpop.f32.mrf.mxu0 }
 0x368   :  { %v2063_v60 = vadd.f32 %v2062_v13, %v1774_v49  ;;  %v2300_v27 = vpop.f32.mrf.mxu1 }
 0x369   :  { %v2064_v2 = vpop.f32.mrf.mxu0 }
 0x36a   :  { %v2135_v24 = vmax.f32 %v2063_v60, 0.0  ;;  %v3588_v3 = vpop.f32.mrf.mxu1  ;;  %v3929_v60 = vld [vmem:[#allocation2 + $0x24] ss:$16 sps:$4 sm:$0xff]  }
 0x36b   :  { %v2067_v59 = vpop.f32.mrf.mxu0  ;;  %v2528_v26 = vpack.c.bf16 %v3588_v3, %v3587_v43  ;;  %v3928_v43 = vld [vmem:[#allocation2] ss:$16 sps:$4 sm:$0xff]   ;;  %v3935_v3 = vld [vmem:[#allocation2 + $0x84] ss:$16 sps:$4 sm:$0xff]  }
 0x36c   :  { %v2168_v4 = vpack.c.bf16 %v2135_v24, %v2134_v23  ;;  %v2068_v32 = vadd.f32 %v2067_v59, %v1779_v57  ;;  %v2303_v21 = vpop.f32.mrf.mxu1  ;;  %v3930_v23 = vld [vmem:[#allocation2 + $0x20] ss:$16 sps:$4 sm:$0xff]   ;;  %v3931_v24 = vld [vmem:[#allocation2 + $0x44] ss:$16 sps:$4 sm:$0xff]  }
 0x36d   :  { %v2069_v44 = vpop.f32.mrf.mxu0  ;;  %v2527_v19 = vpack.c.bf16 %v2303_v21, %v2300_v27 }
 0x36e   :  { %3637 = vmatprep.mubr.bf16.mxu1 %v2168_v4  ;;  %v2136_v1 = vmax.f32 %v2068_v32, 0.0  ;;  %v3932_v44 = vld [vmem:[#allocation2 + $0x40] ss:$16 sps:$4 sm:$0xff]  }
 0x36f   :  { %v2070_v29 = vpop.f32.mrf.mxu0 }
 0x370   :  { %v2071_v34 = vadd.f32 %v2070_v29, %v1782_v63  ;;  %v3934_v29 = vld [vmem:[#allocation2 + $0x60] ss:$16 sps:$4 sm:$0xff]  }
 0x371   :  { %v2072_v40 = vpop.f32.mrf.mxu0 }
 0x372   :  { %v2137_v36 = vmax.f32 %v2071_v34, 0.0 }
 0x374   :  { %v2169_v38 = vpack.c.bf16 %v2137_v36, %v2136_v1 }
 0x376   :  { %v3591_v10 = vpop.f32.mrf.mxu1  ;;  %3638 = vmatmul.mubr.bf16.gmra.mxu1 %v2169_v38  ;;  %v3936_v38 = vld [vmem:[#allocation2 + $0x80] ss:$16 sps:$4 sm:$0xff]  }
 0x377   :  { %2899 = vmatprep.mubr.bf16.mxu1 %v3927_v46  ;;  %v3937_v46 = vld [vmem:[#allocation2 + $0xa4] ss:$16 sps:$4 sm:$0xff]  }
 0x378   :  { %v2316_v31 = vpop.f32.mrf.mxu1 }
 0x37a   :  { %v3592_v11 = vpop.f32.mrf.mxu1 }
 0x37b   :  { %v2530_v48 = vpack.c.bf16 %v3592_v11, %v3591_v10  ;;  %v3938_v11 = vld [vmem:[#allocation2 + $0xa0] ss:$16 sps:$4 sm:$0xff]  }
 0x37c   :  { %v2319_v0 = vpop.f32.mrf.mxu1 }
 0x37d   :  { %2563 = vmatpush1.bf16.msra.mxu0 %v2530_v48  ;;  %v2529_v50 = vpack.c.bf16 %v2319_v0, %v2316_v31  ;;  %v3939_v0 = vld [vmem:[#allocation2 + $0xc4] ss:$16 sps:$4 sm:$0xff]  }
 0x37e   :  { %2564 = vmatprep.subr.bf16.mxu0 %v4170_v35 }
 0x381   :  { %2565 = vmatpush1.bf16.msra.mxu0 %v2529_v50 }
 0x382   :  { %2566 = vmatprep.subr.bf16.mxu0 %v4170_v35 }
 0x385   :  { %2567 = vmatpush1.bf16.msra.mxu0 %v2528_v26 }
 0x386   :  { %2568 = vmatprep.subr.bf16.mxu0 %v4170_v35  ;;  %v3595_v22 = vpop.f32.mrf.mxu1 }
 0x388   :  { %v2332_v53 = vpop.f32.mrf.mxu1 }
 0x389   :  { %2569 = vmatpush1.bf16.msra.mxu0 %v2527_v19  ;;  %v3940_v19 = vld [vmem:[#allocation2 + $0xc0] ss:$16 sps:$4 sm:$0xff]  }
 0x38a   :  { %2570 = vmatprep.subr.bf16.mxu0 %v4170_v35  ;;  %v3596_v52 = vpop.f32.mrf.mxu1 }
 0x38b   :  { %v2532_v47 = vpack.c.bf16 %v3596_v52, %v3595_v22  ;;  %v3941_v22 = vld [vmem:[#allocation2 + $0xe4] ss:$16 sps:$4 sm:$0xff]   ;;  %v3942_v52 = vld [vmem:[#allocation2 + $0xe0] ss:$16 sps:$4 sm:$0xff]  }
 0x38c   :  { %v2335_v28 = vpop.f32.mrf.mxu1 }
 0x38d   :  { %2571 = vmatpush1.bf16.msra.mxu0 %v2526_v54  ;;  %v2531_v30 = vpack.c.bf16 %v2335_v28, %v2332_v53  ;;  %v3943_v28 = vld [vmem:[#allocation2 + $0x104] ss:$16 sps:$4 sm:$0xff]  }
 0x38e   :  { %2572 = vmatprep.subr.bf16.mxu0 %v4170_v35 }
 0x391   :  { %2573 = vmatpush1.bf16.msra.mxu0 %v2525_v56 }
 0x392   :  { %2574 = vmatprep.subr.bf16.mxu0 %v4170_v35 }
 0x395   :  { %2575 = vmatpush1.bf16.msra.mxu0 %v2524_v62 }
 0x396   :  { %2576 = vmatprep.subr.bf16.mxu0 %v4170_v35  ;;  %v3599_v18 = vpop.f32.mrf.mxu1 }
 0x398   :  { %v2348_v5 = vpop.f32.mrf.mxu1 }
 0x399   :  { %2577 = vmatpush1.bf16.msra.mxu0 %v2523_v25 }
 0x39a   :  { %2578 = vmatprep.subr.bf16.mxu0 %v4170_v35  ;;  %v3600_v45 = vpop.f32.mrf.mxu1 }
 0x39b   :  { %v2534_v12 = vpack.c.bf16 %v3600_v45, %v3599_v18  ;;  %v3944_v45 = vld [vmem:[#allocation2 + $0x100] ss:$16 sps:$4 sm:$0xff]  }
 0x39c   :  { %v2351_v20 = vpop.f32.mrf.mxu1 }
 0x39d   :  { %v2533_v15 = vpack.c.bf16 %v2351_v20, %v2348_v5  ;;  %v3945_v20 = vld [vmem:[#allocation2 + $0x124] ss:$16 sps:$4 sm:$0xff]  }
 0x3a6   :  { %v3603_v9 = vpop.f32.mrf.mxu1 }
 0x3a8   :  { %v2364_v58 = vpop.f32.mrf.mxu1 }
 0x3aa   :  { %v3604_v37 = vpop.f32.mrf.mxu1 }
 0x3ab   :  { %v2536_v42 = vpack.c.bf16 %v3604_v37, %v3603_v9  ;;  %v3946_v37 = vld [vmem:[#allocation2 + $0x120] ss:$16 sps:$4 sm:$0xff]  }
 0x3ac   :  { %v2367_v7 = vpop.f32.mrf.mxu1 }
 0x3ad   :  { %v2535_v33 = vpack.c.bf16 %v2367_v7, %v2364_v58  ;;  %v3947_v7 = vld [vmem:[#allocation2 + $0x144] ss:$16 sps:$4 sm:$0xff]  }
 0x3b6   :  { %v3607_v14 = vpop.f32.mrf.mxu1 }
 0x3b8   :  { %v2380_v17 = vpop.f32.mrf.mxu1 }
 0x3ba   :  { %v3608_v39 = vpop.f32.mrf.mxu1 }
 0x3bb   :  { %v2538_v41 = vpack.c.bf16 %v3608_v39, %v3607_v14 }
 0x3bc   :  { %v2383_v6 = vpop.f32.mrf.mxu1 }
 0x3bd   :  { %2579 = vmatpush2.bf16.msra.mxu0 %v2538_v41  ;;  %v2537_v8 = vpack.c.bf16 %v2383_v6, %v2380_v17  ;;  %v3948_v41 = vld [vmem:[#allocation2 + $0x140] ss:$16 sps:$4 sm:$0xff]   ;;  %v3949_v6 = vld [vmem:[#allocation2 + $0x164] ss:$16 sps:$4 sm:$0xff]  }
 0x3be   :  { %2580 = vmatprep.subr.bf16.mxu0 %v4170_v35 }
 0x3c1   :  { %2581 = vmatpush2.bf16.msra.mxu0 %v2537_v8 }
 0x3c2   :  { %2582 = vmatprep.subr.bf16.mxu0 %v4170_v35 }
 0x3c5   :  { %2583 = vmatpush2.bf16.msra.mxu0 %v2536_v42 }
 0x3c6   :  { %2584 = vmatprep.subr.bf16.mxu0 %v4170_v35  ;;  %v4596_v61 = vpop.f32.mrf.mxu1 }
 0x3c8   :  { %v4599_v51 = vpop.f32.mrf.mxu1 }
 0x3c9   :  { %2585 = vmatpush2.bf16.msra.mxu0 %v2535_v33  ;;  %v3950_v33 = vld [vmem:[#allocation2 + $0x160] ss:$16 sps:$4 sm:$0xff]  }
 0x3ca   :  { %2586 = vmatprep.subr.bf16.mxu0 %v4170_v35  ;;  %v4602_v49 = vpop.f32.mrf.mxu1 }
 0x3cb   :  { %v2540_v53 = vpack.c.bf16 %v4602_v49, %v4596_v61 }
 0x3cc   :  { %v4605_v16 = vpop.f32.mrf.mxu1 }
 0x3cd   :  { %2587 = vmatpush2.bf16.msra.mxu0 %v2534_v12  ;;  %v2539_v25 = vpack.c.bf16 %v4605_v16, %v4599_v51  ;;  %v3951_v12 = vld [vmem:[#allocation2 + $0x184] ss:$16 sps:$4 sm:$0xff]  }
 0x3ce   :  { %2588 = vmatprep.subr.bf16.mxu0 %v4170_v35 }
 0x3d1   :  { %2589 = vmatpush2.bf16.msra.mxu0 %v2533_v15 }
 0x3d2   :  { %2590 = vmatprep.subr.bf16.mxu0 %v4170_v35 }
 0x3d5   :  { %2591 = vmatpush2.bf16.msra.mxu0 %v2532_v47 }
 0x3d6   :  { %2592 = vmatprep.subr.bf16.mxu0 %v4170_v35  ;;  %v3615_v13 = vpop.f32.mrf.mxu1 }
 0x3d8   :  { %v2412_v2 = vpop.f32.mrf.mxu1 }
 0x3d9   :  { %2593 = vmatpush2.bf16.msra.mxu0 %v2531_v30  ;;  %v3952_v30 = vld [vmem:[#allocation2 + $0x180] ss:$16 sps:$4 sm:$0xff]  }
 0x3da   :  { %2851 = vmatprep.subr.bf16.mxu0 %v4170_v35  ;;  %v3616_v57 = vpop.f32.mrf.mxu1 }
 0x3db   :  { %v2542_v50 = vpack.c.bf16 %v3616_v57, %v3615_v13  ;;  %v3953_v13 = vld [vmem:[#allocation2 + $0x1a4] ss:$16 sps:$4 sm:$0xff]  }
 0x3dc   :  { %2595 = vmatmul.mubr.bf16.vlgmr.msra.gmra.mxu0 %v3928_v43  ;;  %v2415_v59 = vpop.f32.mrf.mxu1  ;;  %v3955_v57 = vld [vmem:[#allocation2 + $0x1c4] ss:$16 sps:$4 sm:$0xff]  }
 0x3dd   :  { %2602 = vmatprep.mubr.bf16.mxu0 %v3929_v60  ;;  %v2541_v54 = vpack.c.bf16 %v2415_v59, %v2412_v2  ;;  %v3954_v60 = vld [vmem:[#allocation2 + $0x1a0] ss:$16 sps:$4 sm:$0xff]  }
 0x3e4   :  { %2603 = vmatmul.mubr.bf16.gmra.mxu0 %v3930_v23 }
 0x3e5   :  { %2610 = vmatprep.mubr.bf16.mxu0 %v3931_v24  ;;  %v3956_v24 = vld [vmem:[#allocation2 + $0x1c0] ss:$16 sps:$4 sm:$0xff]  }
 0x3e6   :  { %v3619_v4 = vpop.f32.mrf.mxu1 }
 0x3e8   :  { %v2428_v27 = vpop.f32.mrf.mxu1 }
 0x3ea   :  { %v3620_v63 = vpop.f32.mrf.mxu1 }
 0x3eb   :  { %v2544_v31 = vpack.c.bf16 %v3620_v63, %v3619_v4  ;;  %v3957_v4 = vld [vmem:[#allocation2 + $0x1e4] ss:$16 sps:$4 sm:$0xff]  }
 0x3ec   :  { %2611 = vmatmul.mubr.bf16.gmra.mxu0 %v3932_v44  ;;  %v2431_v32 = vpop.f32.mrf.mxu1  ;;  %v3958_v44 = vld [vmem:[#allocation2 + $0x1e0] ss:$16 sps:$4 sm:$0xff]   ;;  %v3959_v63 = vld [vmem:[#allocation2 + $0x204] ss:$16 sps:$4 sm:$0xff]  }
 0x3ed   :  { %2618 = vmatprep.mubr.bf16.mxu0 %v3933_v55  ;;  %v2543_v48 = vpack.c.bf16 %v2431_v32, %v2428_v27  ;;  %v3960_v32 = vld [vmem:[#allocation2 + $0x200] ss:$16 sps:$4 sm:$0xff]  }
 0x3f4   :  { %2619 = vmatmul.mubr.bf16.gmra.mxu0 %v3934_v29  ;;  %v3961_v29 = vld [vmem:[#allocation2 + $0x48] ss:$16 sps:$4 sm:$0xff]  }
 0x3f5   :  { %2626 = vmatprep.mubr.bf16.mxu0 %v3935_v3  ;;  %v3962_v3 = vld [vmem:[#allocation2 + $0x224] ss:$16 sps:$4 sm:$0xff]  }
 0x3f6   :  { %v3623_v34 = vpop.f32.mrf.mxu1 }
 0x3f8   :  { %v2444_v40 = vpop.f32.mrf.mxu1 }
 0x3fa   :  { %v3624_v1 = vpop.f32.mrf.mxu1 }
 0x3fb   :  { %v2546_v36 = vpack.c.bf16 %v3624_v1, %v3623_v34  ;;  %v3963_v34 = vld [vmem:[#allocation2 + $0x6c] ss:$16 sps:$4 sm:$0xff]   ;;  %v3965_v1 = vld [vmem:[#allocation2 + $0x68] ss:$16 sps:$4 sm:$0xff]  }
 0x3fc   :  { %v2447_v21 = vpop.f32.mrf.mxu1  ;;  %2627 = vmatmul.mubr.bf16.gmra.mxu0 %v3936_v38  ;;  %v3969_v38 = vld [vmem:[#allocation2 + $0x88] ss:$16 sps:$4 sm:$0xff]  }
 0x3fd   :  { %2852 = vmatpush1.bf16.msra.mxu0 %v2546_v36  ;;  %3657 = vmatpush1.bf16.msra.mxu1 %v2546_v36  ;;  %v2545_v10 = vpack.c.bf16 %v2447_v21, %v2444_v40  ;;  %v3964_v40 = vld [vmem:[#allocation2 + $0x220] ss:$16 sps:$4 sm:$0xff]   ;;  %v3967_v36 = vld [vmem:[#allocation2 + $0x8c] ss:$16 sps:$4 sm:$0xff]  }
 0x3fe   :  { %2853 = vmatprep.subr.bf16.mxu0 %v4170_v35  ;;  %3642 = vmatprep.subr.bf16.mxu1 %v4170_v35  ;;  %v3968_v21 = vld [vmem:[#allocation2 + $0x240] ss:$16 sps:$4 sm:$0xff]  }
 0x3ff   :  { %2634 = vmatprep.mubr.bf16.mxu0 %v3937_v46  ;;  %v3971_v46 = vld [vmem:[#allocation2 + $0xac] ss:$16 sps:$4 sm:$0xff]  }
 0x401   :  { %2854 = vmatpush1.bf16.msra.mxu0 %v2545_v10  ;;  %3658 = vmatpush1.bf16.msra.mxu1 %v2545_v10  ;;  %v3970_v10 = vld [vmem:[#allocation2 + $0x264] ss:$16 sps:$4 sm:$0xff]  }
 0x402   :  { %2855 = vmatprep.subr.bf16.mxu0 %v4170_v35  ;;  %3643 = vmatprep.subr.bf16.mxu1 %v4170_v35 }
 0x404   :  { %2635 = vmatmul.mubr.bf16.gmra.mxu0 %v3938_v11  ;;  %v3973_v11 = vld [vmem:[#allocation2 + $0xa8] ss:$16 sps:$4 sm:$0xff]  }
 0x405   :  { %2856 = vmatpush1.bf16.msra.mxu0 %v2544_v31  ;;  %3659 = vmatpush1.bf16.msra.mxu1 %v2544_v31  ;;  %v3972_v31 = vld [vmem:[#allocation2 + $0x260] ss:$16 sps:$4 sm:$0xff]  }
 0x406   :  { %2857 = vmatprep.subr.bf16.mxu0 %v4170_v35  ;;  %3644 = vmatprep.subr.bf16.mxu1 %v4170_v35  ;;  %v4616_v26 = vpop.f32.mrf.mxu1 }
 0x407   :  { %2642 = vmatprep.mubr.bf16.mxu0 %v3939_v0  ;;  %v3975_v0 = vld [vmem:[#allocation2 + $0xcc] ss:$16 sps:$4 sm:$0xff]  }
 0x408   :  { %v4620_v56 = vpop.f32.mrf.mxu1 }
 0x409   :  { %2858 = vmatpush1.bf16.msra.mxu0 %v2543_v48  ;;  %3660 = vmatpush1.bf16.msra.mxu1 %v2543_v48  ;;  %v3974_v48 = vld [vmem:[#allocation2 + $0x284] ss:$16 sps:$4 sm:$0xff]  }
 0x40a   :  { %2859 = vmatprep.subr.bf16.mxu0 %v4170_v35  ;;  %3645 = vmatprep.subr.bf16.mxu1 %v4170_v35  ;;  %v4626_v62 = vpop.f32.mrf.mxu1 }
 0x40b   :  { %v2548_v27 = vpack.c.bf16 %v4626_v62, %v4616_v26  ;;  %v3977_v26 = vld [vmem:[#allocation2 + $0xc8] ss:$16 sps:$4 sm:$0xff]   ;;  %v3983_v62 = vld [vmem:[#allocation2 + $0x10c] ss:$16 sps:$4 sm:$0xff]  }
 0x40c   :  { %2643 = vmatmul.mubr.bf16.gmra.mxu0 %v3940_v19  ;;  %v4632_v18 = vpop.f32.mrf.mxu1  ;;  %v3978_v19 = vld [vmem:[#allocation2 + $0x2a4] ss:$16 sps:$4 sm:$0xff]  }
 0x40d   :  { %2860 = vmatpush1.bf16.msra.mxu0 %v2542_v50  ;;  %3661 = vmatpush1.bf16.msra.mxu1 %v2542_v50  ;;  %v2547_v55 = vpack.c.bf16 %v4632_v18, %v4620_v56  ;;  %v3976_v50 = vld [vmem:[#allocation2 + $0x280] ss:$16 sps:$4 sm:$0xff]   ;;  %v3981_v56 = vld [vmem:[#allocation2 + $0xe8] ss:$16 sps:$4 sm:$0xff]   ;;  %v3987_v18 = vld [vmem:[#allocation2 + $0x12c] ss:$16 sps:$4 sm:$0xff]  }
 0x40e   :  { %2861 = vmatprep.subr.bf16.mxu0 %v4170_v35  ;;  %3646 = vmatprep.subr.bf16.mxu1 %v4170_v35 }
 0x40f   :  { %2650 = vmatprep.mubr.bf16.mxu0 %v3941_v22  ;;  %v3980_v22 = vld [vmem:[#allocation2 + $0x2a0] ss:$16 sps:$4 sm:$0xff]  }
 0x411   :  { %2862 = vmatpush1.bf16.msra.mxu0 %v2541_v54  ;;  %3662 = vmatpush1.bf16.msra.mxu1 %v2541_v54  ;;  %v3979_v54 = vld [vmem:[#allocation2 + $0xec] ss:$16 sps:$4 sm:$0xff]  }
 0x412   :  { %2863 = vmatprep.subr.bf16.mxu0 %v4170_v35  ;;  %3647 = vmatprep.subr.bf16.mxu1 %v4170_v35 }
 0x414   :  { %2651 = vmatmul.mubr.bf16.gmra.mxu0 %v3942_v52  ;;  %v3984_v52 = vld [vmem:[#allocation2 + $0x2c0] ss:$16 sps:$4 sm:$0xff]  }
 0x415   :  { %2864 = vmatpush1.bf16.msra.mxu0 %v2540_v53  ;;  %3663 = vmatpush1.bf16.msra.mxu1 %v2540_v53  ;;  %v3982_v53 = vld [vmem:[#allocation2 + $0x2c4] ss:$16 sps:$4 sm:$0xff]  }
 0x416   :  { %2865 = vmatprep.subr.bf16.mxu0 %v4170_v35  ;;  %3648 = vmatprep.subr.bf16.mxu1 %v4170_v35  ;;  %v3631_v5 = vpop.f32.mrf.mxu1 }
 0x417   :  { %2658 = vmatprep.mubr.bf16.mxu0 %v3943_v28  ;;  %v3986_v28 = vld [vmem:[#allocation2 + $0x2e4] ss:$16 sps:$4 sm:$0xff]  }
 0x418   :  { %v2476_v9 = vpop.f32.mrf.mxu1 }
 0x419   :  { %2866 = vmatpush1.bf16.msra.mxu0 %v2539_v25  ;;  %3664 = vmatpush1.bf16.msra.mxu1 %v2539_v25  ;;  %v3985_v25 = vld [vmem:[#allocation2 + $0x108] ss:$16 sps:$4 sm:$0xff]  }
 0x41a   :  { %2867 = vmatprep.subr.bf16.mxu0 %v4170_v35  ;;  %3649 = vmatprep.subr.bf16.mxu1 %v4170_v35  ;;  %v3632_v58 = vpop.f32.mrf.mxu1 }
 0x41b   :  { %v2550_v23 = vpack.c.bf16 %v3632_v58, %v3631_v5  ;;  %v3988_v5 = vld [vmem:[#allocation2 + $0x2e0] ss:$16 sps:$4 sm:$0xff]  }
 0x41c   :  { %2659 = vmatmul.mubr.bf16.gmra.mxu0 %v3944_v45  ;;  %v2479_v14 = vpop.f32.mrf.mxu1  ;;  %v3989_v45 = vld [vmem:[#allocation2 + $0x128] ss:$16 sps:$4 sm:$0xff]  }
 0x41d   :  { %2666 = vmatprep.mubr.bf16.mxu0 %v3945_v20  ;;  %v2549_v59 = vpack.c.bf16 %v2479_v14, %v2476_v9  ;;  %v3990_v20 = vld [vmem:[#allocation2 + $0x304] ss:$16 sps:$4 sm:$0xff]   ;;  %v3991_v9 = vld [vmem:[#allocation2 + $0x14c] ss:$16 sps:$4 sm:$0xff]  }
 0x41e   :  { %v3994_v14 = vld [vmem:[#allocation2 + $0x324] ss:$16 sps:$4 sm:$0xff]  }
 0x424   :  { %2667 = vmatmul.mubr.bf16.gmra.mxu0 %v3946_v37  ;;  %v3992_v37 = vld [vmem:[#allocation2 + $0x300] ss:$16 sps:$4 sm:$0xff]  }
 0x425   :  { %2674 = vmatprep.mubr.bf16.mxu0 %v3947_v7  ;;  %v3993_v7 = vld [vmem:[#allocation2 + $0x148] ss:$16 sps:$4 sm:$0xff]  }
 0x426   :  { %v3635_v17 = vpop.f32.mrf.mxu1 }
 0x428   :  { %v2492_v39 = vpop.f32.mrf.mxu1 }
 0x42a   :  { %v3636_v8 = vpop.f32.mrf.mxu1 }
 0x42b   :  { %v2552_v43 = vpack.c.bf16 %v3636_v8, %v3635_v17  ;;  %v3995_v17 = vld [vmem:[#allocation2 + $0x16c] ss:$16 sps:$4 sm:$0xff]  }
 0x42c   :  { %2675 = vmatmul.mubr.bf16.gmra.mxu0 %v3948_v41  ;;  %v2495_v42 = vpop.f32.mrf.mxu1 }
 0x42d   :  { %2682 = vmatprep.mubr.bf16.mxu0 %v3949_v6  ;;  %v2551_v2 = vpack.c.bf16 %v2495_v42, %v2492_v39  ;;  %v3996_v42 = vld [vmem:[#allocation2 + $0x320] ss:$16 sps:$4 sm:$0xff]  }
 0x434   :  { %2683 = vmatmul.mubr.bf16.gmra.mxu0 %v3950_v33  ;;  %v3997_v33 = vld [vmem:[#allocation2 + $0x168] ss:$16 sps:$4 sm:$0xff]  }
 0x435   :  { %2690 = vmatprep.mubr.bf16.mxu0 %v3951_v12  ;;  %v3998_v12 = vld [vmem:[#allocation2 + $0x344] ss:$16 sps:$4 sm:$0xff]  }
 0x436   :  { %v3639_v61 = vpop.f32.mrf.mxu1 }
 0x438   :  { %v2508_v15 = vpop.f32.mrf.mxu1 }
 0x43a   :  { %v3640_v51 = vpop.f32.mrf.mxu1 }
 0x43b   :  { %v2554_v47 = vpack.c.bf16 %v3640_v51, %v3639_v61  ;;  %v3999_v61 = vld [vmem:[#allocation2 + $0x18c] ss:$16 sps:$4 sm:$0xff]  }
 0x43c   :  { %v2511_v49 = vpop.f32.mrf.mxu1  ;;  %2691 = vmatmul.mubr.bf16.gmra.mxu0 %v3952_v30  ;;  %v4000_v30 = vld [vmem:[#allocation2 + $0x340] ss:$16 sps:$4 sm:$0xff]  }
 0x43d   :  { %2868 = vmatpush2.bf16.msra.mxu0 %v2554_v47  ;;  %3665 = vmatpush2.bf16.msra.mxu1 %v2554_v47  ;;  %v2553_v16 = vpack.c.bf16 %v2511_v49, %v2508_v15 }
 0x43e   :  { %2869 = vmatprep.subr.bf16.mxu0 %v4170_v35  ;;  %3650 = vmatprep.subr.bf16.mxu1 %v4170_v35 }
 0x43f   :  { %2698 = vmatprep.mubr.bf16.mxu0 %v3953_v13  ;;  %v4002_v13 = vld [vmem:[#allocation2 + $0x364] ss:$16 sps:$4 sm:$0xff]  }
 0x441   :  { %2870 = vmatpush2.bf16.msra.mxu0 %v2553_v16  ;;  %3666 = vmatpush2.bf16.msra.mxu1 %v2553_v16  ;;  %v4001_v16 = vld [vmem:[#allocation2 + $0x188] ss:$16 sps:$4 sm:$0xff]  }
 0x442   :  { %2871 = vmatprep.subr.bf16.mxu0 %v4170_v35  ;;  %3651 = vmatprep.subr.bf16.mxu1 %v4170_v35 }
 0x444   :  { %2699 = vmatmul.mubr.bf16.gmra.mxu0 %v3954_v60 }
 0x445   :  { %2872 = vmatpush2.bf16.msra.mxu0 %v2552_v43  ;;  %3667 = vmatpush2.bf16.msra.mxu1 %v2552_v43  ;;  %v4003_v43 = vld [vmem:[#allocation2 + $0x1ac] ss:$16 sps:$4 sm:$0xff]  }
 0x446   :  { %2873 = vmatprep.subr.bf16.mxu0 %v4170_v35  ;;  %3652 = vmatprep.subr.bf16.mxu1 %v4170_v35 }
 0x447   :  { %2706 = vmatprep.mubr.bf16.mxu0 %v3955_v57 }
 0x449   :  { %2874 = vmatpush2.bf16.msra.mxu0 %v2551_v2  ;;  %3668 = vmatpush2.bf16.msra.mxu1 %v2551_v2 }
 0x44a   :  { %2875 = vmatprep.subr.bf16.mxu0 %v4170_v35  ;;  %3653 = vmatprep.subr.bf16.mxu1 %v4170_v35 }
 0x44c   :  { %2707 = vmatmul.mubr.bf16.gmra.mxu0 %v3956_v24  ;;  %v4004_v24 = vld [vmem:[#allocation2 + $0x360] ss:$16 sps:$4 sm:$0xff]  }
 0x44d   :  { %2876 = vmatpush2.bf16.msra.mxu0 %v2550_v23  ;;  %3669 = vmatpush2.bf16.msra.mxu1 %v2550_v23 }
 0x44e   :  { %2877 = vmatprep.subr.bf16.mxu0 %v4170_v35  ;;  %3654 = vmatprep.subr.bf16.mxu1 %v4170_v35 }
 0x44f   :  { %2714 = vmatprep.mubr.bf16.mxu0 %v3957_v4  ;;  %v4006_v4 = vld [vmem:[#allocation2 + $0x384] ss:$16 sps:$4 sm:$0xff]  }
 0x451   :  { %2878 = vmatpush2.bf16.msra.mxu0 %v2549_v59  ;;  %3670 = vmatpush2.bf16.msra.mxu1 %v2549_v59  ;;  %v4005_v59 = vld [vmem:[#allocation2 + $0x1a8] ss:$16 sps:$4 sm:$0xff]  }
 0x452   :  { %2879 = vmatprep.subr.bf16.mxu0 %v4170_v35  ;;  %3655 = vmatprep.subr.bf16.mxu1 %v4170_v35 }
 0x454   :  { %2715 = vmatmul.mubr.bf16.gmra.mxu0 %v3958_v44 }
 0x455   :  { %2880 = vmatpush2.bf16.msra.mxu0 %v2548_v27  ;;  %3671 = vmatpush2.bf16.msra.mxu1 %v2548_v27  ;;  %v4007_v27 = vld [vmem:[#allocation2 + $0x1cc] ss:$16 sps:$4 sm:$0xff]  }
 0x456   :  { %2881 = vmatprep.subr.bf16.mxu0 %v4170_v35  ;;  %3656 = vmatprep.subr.bf16.mxu1 %v4170_v35  ;;  %v3966_v35 = vld [vmem:[#allocation2 + $0x244] ss:$16 sps:$4 sm:$0xff]  }
 0x457   :  { %2722 = vmatprep.mubr.bf16.mxu0 %v3959_v63 }
 0x459   :  { %2882 = vmatpush2.bf16.msra.mxu0 %v2547_v55  ;;  %3672 = vmatpush2.bf16.msra.mxu1 %v2547_v55 }
 0x45c   :  { %2723 = vmatmul.mubr.bf16.gmra.mxu0 %v3960_v32  ;;  %2900 = vmatmul.mubr.bf16.vlgmr.msra.gmra.mxu1 %v3961_v29  ;;  %v4008_v29 = vld [vmem:[#allocation2 + $0x380] ss:$16 sps:$4 sm:$0xff]  }
 0x45d   :  { %2730 = vmatprep.mubr.bf16.mxu0 %v3962_v3  ;;  %2907 = vmatprep.mubr.bf16.mxu1 %v3963_v34  ;;  %v4009_v3 = vld [vmem:[#allocation2 + $0x1c8] ss:$16 sps:$4 sm:$0xff]   ;;  %v4010_v34 = vld [vmem:[#allocation2 + $0x3a4] ss:$16 sps:$4 sm:$0xff]  }
 0x464   :  { %2731 = vmatmul.mubr.bf16.gmra.mxu0 %v3964_v40  ;;  %2908 = vmatmul.mubr.bf16.gmra.mxu1 %v3965_v1  ;;  %v4011_v40 = vld [vmem:[#allocation2 + $0x1ec] ss:$16 sps:$4 sm:$0xff]  }
 0x465   :  { %2738 = vmatprep.mubr.bf16.mxu0 %v3966_v35  ;;  %2915 = vmatprep.mubr.bf16.mxu1 %v3967_v36 }
 0x46c   :  { %2739 = vmatmul.mubr.bf16.gmra.mxu0 %v3968_v21  ;;  %2916 = vmatmul.mubr.bf16.gmra.mxu1 %v3969_v38  ;;  %v4012_v38 = vld [vmem:[#allocation2 + $0x3a0] ss:$16 sps:$4 sm:$0xff]  }
 0x46d   :  { %2746 = vmatprep.mubr.bf16.mxu0 %v3970_v10  ;;  %2923 = vmatprep.mubr.bf16.mxu1 %v3971_v46  ;;  %v4013_v10 = vld [vmem:[#allocation2 + $0x1e8] ss:$16 sps:$4 sm:$0xff]   ;;  %v4014_v46 = vld [vmem:[#allocation2 + $0x3c4] ss:$16 sps:$4 sm:$0xff]  }
 0x474   :  { %2747 = vmatmul.mubr.bf16.gmra.mxu0 %v3972_v31  ;;  %2924 = vmatmul.mubr.bf16.gmra.mxu1 %v3973_v11  ;;  %v4015_v31 = vld [vmem:[#allocation2 + $0x20c] ss:$16 sps:$4 sm:$0xff]  }
 0x475   :  { %2754 = vmatprep.mubr.bf16.mxu0 %v3974_v48  ;;  %2931 = vmatprep.mubr.bf16.mxu1 %v3975_v0 }
 0x47c   :  { %2755 = vmatmul.mubr.bf16.gmra.mxu0 %v3976_v50  ;;  %2932 = vmatmul.mubr.bf16.gmra.mxu1 %v3977_v26  ;;  %v4016_v26 = vld [vmem:[#allocation2 + $0x3c0] ss:$16 sps:$4 sm:$0xff]  }
 0x47d   :  { %2762 = vmatprep.mubr.bf16.mxu0 %v3978_v19  ;;  %2939 = vmatprep.mubr.bf16.mxu1 %v3979_v54  ;;  %v4017_v19 = vld [vmem:[#allocation2 + $0x208] ss:$16 sps:$4 sm:$0xff]   ;;  %v4018_v54 = vld [vmem:[#allocation2 + $0x3e4] ss:$16 sps:$4 sm:$0xff]  }
 0x484   :  { %2763 = vmatmul.mubr.bf16.gmra.mxu0 %v3980_v22  ;;  %2940 = vmatmul.mubr.bf16.gmra.mxu1 %v3981_v56  ;;  %v4019_v22 = vld [vmem:[#allocation2 + $0x22c] ss:$16 sps:$4 sm:$0xff]  }
 0x485   :  { %2770 = vmatprep.mubr.bf16.mxu0 %v3982_v53  ;;  %2947 = vmatprep.mubr.bf16.mxu1 %v3983_v62 }
 0x48c   :  { %2771 = vmatmul.mubr.bf16.gmra.mxu0 %v3984_v52  ;;  %2948 = vmatmul.mubr.bf16.gmra.mxu1 %v3985_v25  ;;  %v4020_v25 = vld [vmem:[#allocation2 + $0x3e0] ss:$16 sps:$4 sm:$0xff]  }
 0x48d   :  { %2778 = vmatprep.mubr.bf16.mxu0 %v3986_v28  ;;  %2955 = vmatprep.mubr.bf16.mxu1 %v3987_v18  ;;  %v4021_v28 = vld [vmem:[#allocation2 + $0x228] ss:$16 sps:$4 sm:$0xff]   ;;  %v4022_v18 = vld [vmem:[#allocation2 + $0xc] ss:$16 sps:$4 sm:$0xff]  }
 0x494   :  { %2779 = vmatmul.mubr.bf16.gmra.mxu0 %v3988_v5  ;;  %2956 = vmatmul.mubr.bf16.gmra.mxu1 %v3989_v45  ;;  %v4023_v5 = vld [vmem:[#allocation2 + $0x24c] ss:$16 sps:$4 sm:$0xff]  }
 0x495   :  { %2786 = vmatprep.mubr.bf16.mxu0 %v3990_v20  ;;  %2963 = vmatprep.mubr.bf16.mxu1 %v3991_v9 }
 0x49c   :  { %v4654_v58 = vpop.f32.mrf.mxu0  ;;  %2787 = vmatmul.mubr.bf16.gmra.mxu0 %v3992_v37  ;;  %2964 = vmatmul.mubr.bf16.gmra.mxu1 %v3993_v7  ;;  %v4024_v7 = vld [vmem:[#allocation2 + $0x8] ss:$16 sps:$4 sm:$0xff]  }
 0x49d   :  { %2794 = vmatprep.mubr.bf16.mxu0 %v3994_v14  ;;  %2971 = vmatprep.mubr.bf16.mxu1 %v3995_v17  ;;  %v4025_v14 = vld [vmem:[#allocation2 + $0x248] ss:$16 sps:$4 sm:$0xff]   ;;  %v4026_v17 = vld [vmem:[#allocation2 + $0x2c] ss:$16 sps:$4 sm:$0xff]  }
 0x49e   :  { %v2598_v39 = vpop.f32.mrf.mxu0 }
 0x49f   :  { %v4027_v39 = vld [vmem:[#allocation2 + $0x26c] ss:$16 sps:$4 sm:$0xff]  }
 0x4a0   :  { %v4656_v41 = vpop.f32.mrf.mxu0 }
 0x4a2   :  { %v2601_v6 = vpop.f32.mrf.mxu0 }
 0x4a4   :  { %v4658_v8 = vpop.f32.mrf.mxu0  ;;  %2795 = vmatmul.mubr.bf16.gmra.mxu0 %v3996_v42  ;;  %2972 = vmatmul.mubr.bf16.gmra.mxu1 %v3997_v33 }
 0x4a5   :  { %2802 = vmatprep.mubr.bf16.mxu0 %v3998_v12  ;;  %2979 = vmatprep.mubr.bf16.mxu1 %v3999_v61  ;;  %v4028_v61 = vld [vmem:[#allocation2 + $0x28] ss:$16 sps:$4 sm:$0xff]  }
 0x4a6   :  { %v2606_v15 = vpop.f32.mrf.mxu0 }
 0x4a7   :  { %v4029_v15 = vld [vmem:[#allocation2 + $0x268] ss:$16 sps:$4 sm:$0xff]  }
 0x4a8   :  { %v4660_v51 = vpop.f32.mrf.mxu0 }
 0x4aa   :  { %v2609_v47 = vpop.f32.mrf.mxu0 }
 0x4ab   :  { %v4030_v47 = vld [vmem:[#allocation2 + $0x28c] ss:$16 sps:$4 sm:$0xff]  }
 0x4ac   :  { %v4662_v49 = vpop.f32.mrf.mxu0  ;;  %2803 = vmatmul.mubr.bf16.gmra.mxu0 %v4000_v30  ;;  %2980 = vmatmul.mubr.bf16.gmra.mxu1 %v4001_v16 }
 0x4ad   :  { %2810 = vmatprep.mubr.bf16.mxu0 %v4002_v13  ;;  %2987 = vmatprep.mubr.bf16.mxu1 %v4003_v43 }
 0x4ae   :  { %v2614_v60 = vpop.f32.mrf.mxu0 }
 0x4af   :  { %v4031_v60 = vld [vmem:[#allocation2 + $0x288] ss:$16 sps:$4 sm:$0xff]  }
 0x4b0   :  { %v4664_v2 = vpop.f32.mrf.mxu0 }
 0x4b2   :  { %v2617_v57 = vpop.f32.mrf.mxu0 }
 0x4b3   :  { %v4032_v57 = vld [vmem:[#allocation2 + $0x2ac] ss:$16 sps:$4 sm:$0xff]  }
 0x4b4   :  { %v4666_v23 = vpop.f32.mrf.mxu0  ;;  %2811 = vmatmul.mubr.bf16.gmra.mxu0 %v4004_v24  ;;  %2988 = vmatmul.mubr.bf16.gmra.mxu1 %v4005_v59 }
 0x4b5   :  { %2818 = vmatprep.mubr.bf16.mxu0 %v4006_v4  ;;  %2995 = vmatprep.mubr.bf16.mxu1 %v4007_v27 }
 0x4b6   :  { %v2622_v44 = vpop.f32.mrf.mxu0 }
 0x4b7   :  { %v4033_v44 = vld [vmem:[#allocation2 + $0x2a8] ss:$16 sps:$4 sm:$0xff]  }
 0x4b8   :  { %v4668_v55 = vpop.f32.mrf.mxu0 }
 0x4ba   :  { %v2625_v63 = vpop.f32.mrf.mxu0 }
 0x4bb   :  { %v4034_v63 = vld [vmem:[#allocation2 + $0x2cc] ss:$16 sps:$4 sm:$0xff]  }
 0x4bc   :  { %v4670_v32 = vpop.f32.mrf.mxu0  ;;  %2819 = vmatmul.mubr.bf16.gmra.mxu0 %v4008_v29  ;;  %2996 = vmatmul.mubr.bf16.gmra.mxu1 %v4009_v3 }
 0x4bd   :  { %2826 = vmatprep.mubr.bf16.mxu0 %v4010_v34  ;;  %3003 = vmatprep.mubr.bf16.mxu1 %v4011_v40 }
 0x4be   :  { %v2630_v1 = vpop.f32.mrf.mxu0 }
 0x4bf   :  { %v4035_v1 = vld [vmem:[#allocation2 + $0x2c8] ss:$16 sps:$4 sm:$0xff]  }
 0x4c0   :  { %v4672_v35 = vpop.f32.mrf.mxu0 }
 0x4c2   :  { %v2633_v36 = vpop.f32.mrf.mxu0 }
 0x4c3   :  { %v4036_v36 = vld [vmem:[#allocation2 + $0x2ec] ss:$16 sps:$4 sm:$0xff]  }
 0x4c4   :  { %v4674_v21 = vpop.f32.mrf.mxu0  ;;  %2827 = vmatmul.mubr.bf16.gmra.mxu0 %v4012_v38  ;;  %3004 = vmatmul.mubr.bf16.gmra.mxu1 %v4013_v10 }
 0x4c5   :  { %2834 = vmatprep.mubr.bf16.mxu0 %v4014_v46  ;;  %3011 = vmatprep.mubr.bf16.mxu1 %v4015_v31 }
 0x4c6   :  { %v2638_v11 = vpop.f32.mrf.mxu0 }
 0x4c7   :  { %v4037_v11 = vld [vmem:[#allocation2 + $0x2e8] ss:$16 sps:$4 sm:$0xff]  }
 0x4c8   :  { %v4676_v48 = vpop.f32.mrf.mxu0 }
 0x4ca   :  { %v2641_v0 = vpop.f32.mrf.mxu0 }
 0x4cb   :  { %v4038_v0 = vld [vmem:[#allocation2 + $0x30c] ss:$16 sps:$4 sm:$0xff]  }
 0x4cc   :  { %v4678_v50 = vpop.f32.mrf.mxu0  ;;  %2835 = vmatmul.mubr.bf16.gmra.mxu0 %v4016_v26  ;;  %3012 = vmatmul.mubr.bf16.gmra.mxu1 %v4017_v19 }
 0x4cd   :  { %2842 = vmatprep.mubr.bf16.mxu0 %v4018_v54  ;;  %3019 = vmatprep.mubr.bf16.mxu1 %v4019_v22 }
 0x4ce   :  { %v2646_v56 = vpop.f32.mrf.mxu0 }
 0x4cf   :  { %v4039_v56 = vld [vmem:[#allocation2 + $0x308] ss:$16 sps:$4 sm:$0xff]  }
 0x4d0   :  { %v4680_v53 = vpop.f32.mrf.mxu0 }
 0x4d2   :  { %v2649_v62 = vpop.f32.mrf.mxu0 }
 0x4d3   :  { %v4040_v62 = vld [vmem:[#allocation2 + $0x32c] ss:$16 sps:$4 sm:$0xff]  }
 0x4d4   :  { %v4682_v52 = vpop.f32.mrf.mxu0  ;;  %2843 = vmatmul.mubr.bf16.gmra.mxu0 %v4020_v25  ;;  %3020 = vmatmul.mubr.bf16.gmra.mxu1 %v4021_v28 }
 0x4d5   :  { %2883 = vmatprep.mubr.bf16.mxu0 %v4022_v18  ;;  %3027 = vmatprep.mubr.bf16.mxu1 %v4023_v5 }
 0x4d6   :  { %v2654_v45 = vpop.f32.mrf.mxu0 }
 0x4d7   :  { %v4041_v45 = vld [vmem:[#allocation2 + $0x328] ss:$16 sps:$4 sm:$0xff]  }
 0x4d8   :  { %v4684_v20 = vpop.f32.mrf.mxu0 }
 0x4da   :  { %v2657_v9 = vpop.f32.mrf.mxu0 }
 0x4db   :  { %v4042_v9 = vld [vmem:[#allocation2 + $0x34c] ss:$16 sps:$4 sm:$0xff]  }
 0x4dc   :  { %v4686_v37 = vpop.f32.mrf.mxu0  ;;  %2884 = vmatmul.mubr.bf16.vlgmr.msra.gmra.mxu0 %v4024_v7  ;;  %3028 = vmatmul.mubr.bf16.gmra.mxu1 %v4025_v14 }
 0x4dd   :  { %2891 = vmatprep.mubr.bf16.mxu0 %v4026_v17  ;;  %3035 = vmatprep.mubr.bf16.mxu1 %v4027_v39  ;;  %v4721_v17 = vld [vmem:[%s4923_s5] ss:$0 sm:$0xff]  ;;  %s4171_s5 = smov [#allocation10]  }
 0x4de   :  { %v2662_v6 = vpop.f32.mrf.mxu0  ;;  %s3209_s22 = sshll.u32 %s4171_s5, 4  ;;  %s3210_s22 = int_to_ptr.vmem [resolvable:$true] %s3209_s22 }
 0x4df   :  { %v2613_v6 = vadd.f32 %v4721_v17, %v4662_v49  ;;  %s4134_s23 = scalar_lea.vmem %s3210_s22, 8192  ;;  %p4139_p7 = scmp.lt.s32.totalorder %s3210_s22, %s3210_s22 }
 0x4e0   :  { %v4688_v42 = vpop.f32.mrf.mxu0  ;;  %p4135_p6 = scmp.ne.s32.totalorder %s3210_s22, %s4134_s23  ;;  %p4140_p8 = scmp.lt.s32.totalorder %s4134_s23, %s4134_s23 }
 0x4e2   :  { %v2665_v33 = vpop.f32.mrf.mxu0  ;;  %p4141_p9 = por %p4140_p8, %p4139_p7 }
 0x4e4   :  { %v4690_v12 = vpop.f32.mrf.mxu0  ;;  %2892 = vmatmul.mubr.bf16.gmra.mxu0 %v4028_v61  ;;  %3036 = vmatmul.mubr.bf16.gmra.mxu1 %v4029_v15  ;;  %v4043_v15 = vld [vmem:[#allocation2 + $0x348] ss:$16 sps:$4 sm:$0xff]   ;;  %p4142_p10 = pnand %p4141_p9, %p4135_p6 }
 0x4e5   :  { %3043 = vmatprep.mubr.bf16.mxu1 %v4030_v47 }
 0x4e6   :  { %v2670_v30 = vpop.f32.mrf.mxu0 }
 0x4e7   :  { %v4044_v30 = vld [vmem:[#allocation2 + $0x36c] ss:$16 sps:$4 sm:$0xff]  }
 0x4e8   :  { %v4692_v16 = vpop.f32.mrf.mxu0 }
 0x4ea   :  { %v2673_v13 = vpop.f32.mrf.mxu0 }
 0x4ec   :  { %v4694_v43 = vpop.f32.mrf.mxu0  ;;  %3044 = vmatmul.mubr.bf16.gmra.mxu1 %v4031_v60 }
 0x4ed   :  { %3051 = vmatprep.mubr.bf16.mxu1 %v4032_v57  ;;  %v2616_v57 = vadd.f32 %v4721_v17, %v4664_v2 }
 0x4ee   :  { %v2678_v24 = vpop.f32.mrf.mxu0 }
 0x4f0   :  { %v4696_v59 = vpop.f32.mrf.mxu0 }
 0x4f2   :  { %v2681_v4 = vpop.f32.mrf.mxu0 }
 0x4f4   :  { %v4698_v27 = vpop.f32.mrf.mxu0  ;;  %3052 = vmatmul.mubr.bf16.gmra.mxu1 %v4033_v44 }
 0x4f5   :  { %3059 = vmatprep.mubr.bf16.mxu1 %v4034_v63 }
 0x4f6   :  { %v2686_v29 = vpop.f32.mrf.mxu0 }
 0x4f7   :  { %v2621_v29 = vadd.f32 %v4721_v17, %v4666_v23 }
 0x4f8   :  { %v4700_v3 = vpop.f32.mrf.mxu0 }
 0x4fa   :  { %v2689_v34 = vpop.f32.mrf.mxu0 }
 0x4fc   :  { %v4702_v40 = vpop.f32.mrf.mxu0  ;;  %3060 = vmatmul.mubr.bf16.gmra.mxu1 %v4035_v1 }
 0x4fd   :  { %3067 = vmatprep.mubr.bf16.mxu1 %v4036_v36  ;;  %v4045_v36 = vld [vmem:[#allocation2 + $0x368] ss:$16 sps:$4 sm:$0xff]  }
 0x4fe   :  { %v2694_v38 = vpop.f32.mrf.mxu0 }
 0x500   :  { %v4704_v10 = vpop.f32.mrf.mxu0 }
 0x502   :  { %v2697_v46 = vpop.f32.mrf.mxu0 }
 0x503   :  { %v4046_v46 = vld [vmem:[#allocation2 + $0x38c] ss:$16 sps:$4 sm:$0xff]  }
 0x504   :  { %v4706_v31 = vpop.f32.mrf.mxu0  ;;  %3068 = vmatmul.mubr.bf16.gmra.mxu1 %v4037_v11 }
 0x505   :  { %3075 = vmatprep.mubr.bf16.mxu1 %v4038_v0  ;;  %v2624_v0 = vadd.f32 %v4721_v17, %v4668_v55 }
 0x506   :  { %v2702_v26 = vpop.f32.mrf.mxu0 }
 0x508   :  { %v4708_v19 = vpop.f32.mrf.mxu0 }
 0x50a   :  { %v2705_v54 = vpop.f32.mrf.mxu0 }
 0x50c   :  { %v4710_v22 = vpop.f32.mrf.mxu0  ;;  %3076 = vmatmul.mubr.bf16.gmra.mxu1 %v4039_v56 }
 0x50d   :  { %3083 = vmatprep.mubr.bf16.mxu1 %v4040_v62 }
 0x50e   :  { %v2710_v25 = vpop.f32.mrf.mxu0 }
 0x50f   :  { %v2629_v25 = vadd.f32 %v4721_v17, %v4670_v32 }
 0x510   :  { %v4712_v28 = vpop.f32.mrf.mxu0 }
 0x512   :  { %v2713_v18 = vpop.f32.mrf.mxu0 }
 0x514   :  { %v4714_v5 = vpop.f32.mrf.mxu0  ;;  %3084 = vmatmul.mubr.bf16.gmra.mxu1 %v4041_v45 }
 0x515   :  { %3091 = vmatprep.mubr.bf16.mxu1 %v4042_v9  ;;  %v4047_v9 = vld [vmem:[#allocation2 + $0x388] ss:$16 sps:$4 sm:$0xff]  }
 0x516   :  { %v2718_v7 = vpop.f32.mrf.mxu0 }
 0x518   :  { %v4716_v14 = vpop.f32.mrf.mxu0 }
 0x51a   :  { %v2721_v39 = vpop.f32.mrf.mxu0 }
 0x51b   :  { %v4048_v39 = vld [vmem:[#allocation2 + $0x3ac] ss:$16 sps:$4 sm:$0xff]  }
 0x51c   :  { %v4725_v33 = vpop.f32.mrf.mxu0  ;;  %v2901_v61 = vpop.f32.mrf.mxu1  ;;  %3092 = vmatmul.mubr.bf16.gmra.mxu1 %v4043_v15 }
 0x51d   :  { %v2902_v47 = vadd.f32 %v2901_v61, %v2613_v6  ;;  %3099 = vmatprep.mubr.bf16.mxu1 %v4044_v30  ;;  %v2632_v61 = vadd.f32 %v4721_v17, %v4672_v35 }
 0x51e   :  { %v2726_v13 = vpop.f32.mrf.mxu0  ;;  %v2903_v60 = vpop.f32.mrf.mxu1 }
 0x51f   :  { %3144 = vst [vmem:[#allocation10 + $0x20] sm:$0xff] %v2902_v47  ;;  %v2637_v60 = vadd.f32 %v4721_v17, %v4674_v21 }
 0x520   :  { %v4729_v24 = vpop.f32.mrf.mxu0  ;;  %v2904_v4 = vpop.f32.mrf.mxu1 }
 0x521   :  { %v2905_v44 = vadd.f32 %v2904_v4, %v2616_v57 }
 0x522   :  { %v2729_v63 = vpop.f32.mrf.mxu0  ;;  %v2906_v49 = vpop.f32.mrf.mxu1 }
 0x523   :  { %3145 = vst [vmem:[#allocation10 + $0x28] sm:$0xff] %v2905_v44  ;;  %v4049_v44 = vld [vmem:[#allocation2 + $0x3a8] ss:$16 sps:$4 sm:$0xff]   ;;  %v4050_v49 = vld [vmem:[#allocation2 + $0x3cc] ss:$16 sps:$4 sm:$0xff]  }
 0x524   :  { %v4733_v34 = vpop.f32.mrf.mxu0  ;;  %v2909_v1 = vpop.f32.mrf.mxu1  ;;  %3100 = vmatmul.mubr.bf16.gmra.mxu1 %v4045_v36 }
 0x525   :  { %v2910_v38 = vadd.f32 %v2909_v1, %v2621_v29  ;;  %3107 = vmatprep.mubr.bf16.mxu1 %v4046_v46  ;;  %v2640_v1 = vadd.f32 %v4721_v17, %v4676_v48 }
 0x526   :  { %v2734_v2 = vpop.f32.mrf.mxu0  ;;  %v2911_v11 = vpop.f32.mrf.mxu1 }
 0x527   :  { %3146 = vst [vmem:[#allocation10 + $0x30] sm:$0xff] %v2910_v38  ;;  %v2645_v11 = vadd.f32 %v4721_v17, %v4678_v50 }
 0x528   :  { %v4737_v26 = vpop.f32.mrf.mxu0  ;;  %v2912_v54 = vpop.f32.mrf.mxu1 }
 0x529   :  { %v2913_v56 = vadd.f32 %v2912_v54, %v2624_v0 }
 0x52a   :  { %v2737_v23 = vpop.f32.mrf.mxu0  ;;  %v2914_v62 = vpop.f32.mrf.mxu1 }
 0x52b   :  { %3147 = vst [vmem:[#allocation10 + $0x38] sm:$0xff] %v2913_v56  ;;  %v4051_v56 = vld [vmem:[#allocation2 + $0x3c8] ss:$16 sps:$4 sm:$0xff]   ;;  %v4052_v62 = vld [vmem:[#allocation2 + $0x3ec] ss:$16 sps:$4 sm:$0xff]  }
 0x52c   :  { %v4741_v18 = vpop.f32.mrf.mxu0  ;;  %v2917_v45 = vpop.f32.mrf.mxu1  ;;  %3108 = vmatmul.mubr.bf16.gmra.mxu1 %v4047_v9 }
 0x52d   :  { %v2918_v7 = vadd.f32 %v2917_v45, %v2629_v25  ;;  %3115 = vmatprep.mubr.bf16.mxu1 %v4048_v39  ;;  %v2648_v45 = vadd.f32 %v4721_v17, %v4680_v53  ;;  %v2656_v53 = vadd.f32 %v4721_v17, %v4684_v20  ;;  %v2664_v20 = vadd.f32 %v4721_v17, %v4688_v42 }
 0x52e   :  { %v2742_v55 = vpop.f32.mrf.mxu0  ;;  %v2919_v6 = vpop.f32.mrf.mxu1  ;;  %v2672_v42 = vadd.f32 %v4721_v17, %v4692_v16  ;;  %v2680_v16 = vadd.f32 %v4721_v17, %v4696_v59  ;;  %v2688_v59 = vadd.f32 %v4721_v17, %v4700_v3  ;;  %v2696_v3 = vadd.f32 %v4721_v17, %v4704_v10 }
 0x52f   :  { %3148 = vst [vmem:[#allocation10 + $0x40] sm:$0xff] %v2918_v7  ;;  %v2653_v6 = vadd.f32 %v4721_v17, %v4682_v52  ;;  %v2661_v52 = vadd.f32 %v4721_v17, %v4686_v37  ;;  %v2669_v37 = vadd.f32 %v4721_v17, %v4690_v12  ;;  %v2677_v12 = vadd.f32 %v4721_v17, %v4694_v43 }
 0x530   :  { %v4745_v15 = vpop.f32.mrf.mxu0  ;;  %v2920_v47 = vpop.f32.mrf.mxu1  ;;  %v2685_v43 = vadd.f32 %v4721_v17, %v4698_v27  ;;  %v2693_v27 = vadd.f32 %v4721_v17, %v4702_v40  ;;  %v2701_v40 = vadd.f32 %v4721_v17, %v4706_v31  ;;  %v2704_v10 = vadd.f32 %v4721_v17, %v4708_v19 }
 0x531   :  { %v2921_v30 = vadd.f32 %v2920_v47, %v2632_v61  ;;  %v2709_v31 = vadd.f32 %v4721_v17, %v4710_v22  ;;  %v2712_v19 = vadd.f32 %v4721_v17, %v4712_v28  ;;  %v2717_v22 = vadd.f32 %v4721_v17, %v4714_v5 }
 0x532   :  { %v2745_v32 = vpop.f32.mrf.mxu0  ;;  %v2922_v13 = vpop.f32.mrf.mxu1  ;;  %v2720_v28 = vadd.f32 %v4721_v17, %v4716_v14  ;;  %v2725_v5 = vadd.f32 %v4721_v17, %v4725_v33  ;;  %v2728_v14 = vadd.f32 %v4721_v17, %v4729_v24  ;;  %v2733_v33 = vadd.f32 %v4721_v17, %v4733_v34 }
 0x533   :  { %3149 = vst [vmem:[#allocation10 + $0x48] sm:$0xff] %v2921_v30  ;;  %v4053_v30 = vld [vmem:[#allocation2 + $0x3e8] ss:$16 sps:$4 sm:$0xff]   ;;  %v2736_v24 = vadd.f32 %v4721_v17, %v4737_v26  ;;  %v2597_v34 = vadd.f32 %v4721_v17, %v4654_v58 }
 0x534   :  { %v4749_v57 = vpop.f32.mrf.mxu0  ;;  %v2925_v4 = vpop.f32.mrf.mxu1  ;;  %3116 = vmatmul.mubr.bf16.gmra.mxu1 %v4049_v44 }
 0x535   :  { %v2926_v63 = vadd.f32 %v2925_v4, %v2637_v60  ;;  %3123 = vmatprep.mubr.bf16.mxu1 %v4050_v49 }
 0x536   :  { %v2750_v35 = vpop.f32.mrf.mxu0  ;;  %v2927_v29 = vpop.f32.mrf.mxu1 }
 0x537   :  { %3150 = vst [vmem:[#allocation10 + $0x50] sm:$0xff] %v2926_v63 }
 0x538   :  { %v4753_v36 = vpop.f32.mrf.mxu0  ;;  %v2928_v38 = vpop.f32.mrf.mxu1 }
 0x539   :  { %v2929_v46 = vadd.f32 %v2928_v38, %v2640_v1 }
 0x53a   :  { %v2753_v21 = vpop.f32.mrf.mxu0  ;;  %v2930_v2 = vpop.f32.mrf.mxu1 }
 0x53b   :  { %3151 = vst [vmem:[#allocation10 + $0x58] sm:$0xff] %v2929_v46 }
 0x53c   :  { %v4757_v0 = vpop.f32.mrf.mxu0  ;;  %v2933_v54 = vpop.f32.mrf.mxu1  ;;  %3124 = vmatmul.mubr.bf16.gmra.mxu1 %v4051_v56 }
 0x53d   :  { %v2934_v23 = vadd.f32 %v2933_v54, %v2645_v11  ;;  %3131 = vmatprep.mubr.bf16.mxu1 %v4052_v62 }
 0x53e   :  { %v2758_v48 = vpop.f32.mrf.mxu0  ;;  %v2935_v25 = vpop.f32.mrf.mxu1 }
 0x53f   :  { %3152 = vst [vmem:[#allocation10 + $0x60] sm:$0xff] %v2934_v23 }
 0x540   :  { %v4761_v9 = vpop.f32.mrf.mxu0  ;;  %v2936_v7 = vpop.f32.mrf.mxu1 }
 0x541   :  { %v2937_v39 = vadd.f32 %v2936_v7, %v2648_v45 }
 0x542   :  { %v2761_v50 = vpop.f32.mrf.mxu0  ;;  %v2938_v55 = vpop.f32.mrf.mxu1 }
 0x543   :  { %3153 = vst [vmem:[#allocation10 + $0x68] sm:$0xff] %v2937_v39 }
 0x544   :  { %v4765_v61 = vpop.f32.mrf.mxu0  ;;  %v2941_v47 = vpop.f32.mrf.mxu1  ;;  %3132 = vmatmul.mubr.bf16.gmra.mxu1 %v4053_v30 }
 0x545   :  { %v2942_v32 = vadd.f32 %v2941_v47, %v2653_v6 }
 0x546   :  { %v2766_v13 = vpop.f32.mrf.mxu0  ;;  %v2943_v60 = vpop.f32.mrf.mxu1 }
 0x547   :  { %3154 = vst [vmem:[#allocation10 + $0x70] sm:$0xff] %v2942_v32 }
 0x548   :  { %v4769_v4 = vpop.f32.mrf.mxu0  ;;  %v2944_v44 = vpop.f32.mrf.mxu1 }
 0x549   :  { %v2945_v63 = vadd.f32 %v2944_v44, %v2656_v53 }
 0x54a   :  { %v2769_v49 = vpop.f32.mrf.mxu0  ;;  %v2946_v35 = vpop.f32.mrf.mxu1 }
 0x54b   :  { %3155 = vst [vmem:[#allocation10 + $0x78] sm:$0xff] %v2945_v63 }
 0x54c   :  { %v4773_v29 = vpop.f32.mrf.mxu0  ;;  %v2949_v1 = vpop.f32.mrf.mxu1 }
 0x54d   :  { %v2950_v38 = vadd.f32 %v2949_v1, %v2661_v52 }
 0x54e   :  { %v2774_v46 = vpop.f32.mrf.mxu0  ;;  %v2951_v21 = vpop.f32.mrf.mxu1 }
 0x54f   :  { %3156 = vst [vmem:[#allocation10 + $0x80] sm:$0xff] %v2950_v38 }
 0x550   :  { %v4777_v2 = vpop.f32.mrf.mxu0  ;;  %v2952_v11 = vpop.f32.mrf.mxu1 }
 0x551   :  { %v2953_v54 = vadd.f32 %v2952_v11, %v2664_v20 }
 0x552   :  { %v2777_v56 = vpop.f32.mrf.mxu0  ;;  %v2954_v23 = vpop.f32.mrf.mxu1 }
 0x553   :  { %3157 = vst [vmem:[#allocation10 + $0x88] sm:$0xff] %v2953_v54 }
 0x554   :  { %v4781_v62 = vpop.f32.mrf.mxu0  ;;  %v2957_v48 = vpop.f32.mrf.mxu1 }
 0x555   :  { %v2958_v25 = vadd.f32 %v2957_v48, %v2669_v37 }
 0x556   :  { %v2782_v45 = vpop.f32.mrf.mxu0  ;;  %v2959_v7 = vpop.f32.mrf.mxu1 }
 0x557   :  { %3158 = vst [vmem:[#allocation10 + $0x90] sm:$0xff] %v2958_v25 }
 0x558   :  { %v4785_v39 = vpop.f32.mrf.mxu0  ;;  %v2960_v50 = vpop.f32.mrf.mxu1 }
 0x559   :  { %v2961_v55 = vadd.f32 %v2960_v50, %v2672_v42 }
 0x55a   :  { %v2785_v6 = vpop.f32.mrf.mxu0  ;;  %v2962_v47 = vpop.f32.mrf.mxu1 }
 0x55b   :  { %3159 = vst [vmem:[#allocation10 + $0x98] sm:$0xff] %v2961_v55 }
 0x55c   :  { %v4789_v30 = vpop.f32.mrf.mxu0  ;;  %v2965_v32 = vpop.f32.mrf.mxu1 }
 0x55d   :  { %v2966_v13 = vadd.f32 %v2965_v32, %v2677_v12 }
 0x55e   :  { %v2790_v60 = vpop.f32.mrf.mxu0  ;;  %v2967_v53 = vpop.f32.mrf.mxu1 }
 0x55f   :  { %3160 = vst [vmem:[#allocation10 + $0xa0] sm:$0xff] %v2966_v13 }
 0x560   :  { %v4793_v44 = vpop.f32.mrf.mxu0  ;;  %v2968_v63 = vpop.f32.mrf.mxu1 }
 0x561   :  { %v2969_v49 = vadd.f32 %v2968_v63, %v2680_v16 }
 0x562   :  { %v2793_v35 = vpop.f32.mrf.mxu0  ;;  %v2970_v52 = vpop.f32.mrf.mxu1 }
 0x563   :  { %3161 = vst [vmem:[#allocation10 + $0xa8] sm:$0xff] %v2969_v49 }
 0x564   :  { %v4797_v1 = vpop.f32.mrf.mxu0  ;;  %v2973_v38 = vpop.f32.mrf.mxu1 }
 0x565   :  { %v2974_v46 = vadd.f32 %v2973_v38, %v2685_v43 }
 0x566   :  { %v2798_v21 = vpop.f32.mrf.mxu0  ;;  %v2975_v20 = vpop.f32.mrf.mxu1 }
 0x567   :  { %3162 = vst [vmem:[#allocation10 + $0xb0] sm:$0xff] %v2974_v46 }
 0x568   :  { %v4801_v11 = vpop.f32.mrf.mxu0  ;;  %v2976_v54 = vpop.f32.mrf.mxu1 }
 0x569   :  { %v2977_v56 = vadd.f32 %v2976_v54, %v2688_v59 }
 0x56a   :  { %v2801_v23 = vpop.f32.mrf.mxu0  ;;  %v2978_v37 = vpop.f32.mrf.mxu1 }
 0x56b   :  { %3163 = vst [vmem:[#allocation10 + $0xb8] sm:$0xff] %v2977_v56 }
 0x56c   :  { %v4805_v48 = vpop.f32.mrf.mxu0  ;;  %v2981_v25 = vpop.f32.mrf.mxu1 }
 0x56d   :  { %v2982_v45 = vadd.f32 %v2981_v25, %v2693_v27 }
 0x56e   :  { %v2806_v7 = vpop.f32.mrf.mxu0  ;;  %v2983_v42 = vpop.f32.mrf.mxu1 }
 0x56f   :  { %3164 = vst [vmem:[#allocation10 + $0xc0] sm:$0xff] %v2982_v45 }
 0x570   :  { %v4809_v50 = vpop.f32.mrf.mxu0  ;;  %v2984_v55 = vpop.f32.mrf.mxu1 }
 0x571   :  { %v2985_v6 = vadd.f32 %v2984_v55, %v2696_v3 }
 0x572   :  { %v2809_v47 = vpop.f32.mrf.mxu0  ;;  %v2986_v12 = vpop.f32.mrf.mxu1 }
 0x573   :  { %3165 = vst [vmem:[#allocation10 + $0xc8] sm:$0xff] %v2985_v6 }
 0x574   :  { %v4813_v32 = vpop.f32.mrf.mxu0  ;;  %v2989_v13 = vpop.f32.mrf.mxu1 }
 0x575   :  { %v2990_v60 = vadd.f32 %v2989_v13, %v2701_v40 }
 0x576   :  { %v2814_v53 = vpop.f32.mrf.mxu0  ;;  %v2991_v16 = vpop.f32.mrf.mxu1 }
 0x577   :  { %3166 = vst [vmem:[#allocation10 + $0xd0] sm:$0xff] %v2990_v60 }
 0x578   :  { %v4817_v63 = vpop.f32.mrf.mxu0  ;;  %v2992_v49 = vpop.f32.mrf.mxu1 }
 0x579   :  { %v2993_v35 = vadd.f32 %v2992_v49, %v2704_v10 }
 0x57a   :  { %v2817_v52 = vpop.f32.mrf.mxu0  ;;  %v2994_v43 = vpop.f32.mrf.mxu1 }
 0x57b   :  { %3167 = vst [vmem:[#allocation10 + $0xd8] sm:$0xff] %v2993_v35 }
 0x57c   :  { %v4821_v38 = vpop.f32.mrf.mxu0  ;;  %v2997_v46 = vpop.f32.mrf.mxu1 }
 0x57d   :  { %v2998_v21 = vadd.f32 %v2997_v46, %v2709_v31 }
 0x57e   :  { %v2822_v20 = vpop.f32.mrf.mxu0  ;;  %v2999_v59 = vpop.f32.mrf.mxu1 }
 0x57f   :  { %3168 = vst [vmem:[#allocation10 + $0xe0] sm:$0xff] %v2998_v21 }
 0x580   :  { %v4825_v54 = vpop.f32.mrf.mxu0  ;;  %v3000_v56 = vpop.f32.mrf.mxu1 }
 0x581   :  { %v3001_v23 = vadd.f32 %v3000_v56, %v2712_v19 }
 0x582   :  { %v2825_v37 = vpop.f32.mrf.mxu0  ;;  %v3002_v27 = vpop.f32.mrf.mxu1 }
 0x583   :  { %3169 = vst [vmem:[#allocation10 + $0xe8] sm:$0xff] %v3001_v23 }
 0x584   :  { %v4829_v25 = vpop.f32.mrf.mxu0  ;;  %v3005_v45 = vpop.f32.mrf.mxu1 }
 0x585   :  { %v3006_v7 = vadd.f32 %v3005_v45, %v2717_v22  ;;  %v2741_v45 = vadd.f32 %v4721_v17, %v4741_v18 }
 0x586   :  { %v2830_v42 = vpop.f32.mrf.mxu0  ;;  %v3007_v3 = vpop.f32.mrf.mxu1 }
 0x587   :  { %3170 = vst [vmem:[#allocation10 + $0xf0] sm:$0xff] %v3006_v7 }
 0x588   :  { %v4833_v55 = vpop.f32.mrf.mxu0  ;;  %v3008_v6 = vpop.f32.mrf.mxu1 }
 0x589   :  { %v3009_v47 = vadd.f32 %v3008_v6, %v2720_v28 }
 0x58a   :  { %v2833_v12 = vpop.f32.mrf.mxu0  ;;  %v3010_v40 = vpop.f32.mrf.mxu1 }
 0x58b   :  { %3171 = vst [vmem:[#allocation10 + $0xf8] sm:$0xff] %v3009_v47  ;;  %v2600_v47 = vadd.f32 %v4721_v17, %v4656_v41  ;;  %v2744_v12 = vadd.f32 %v4721_v17, %v4745_v15 }
 0x58c   :  { %v4837_v13 = vpop.f32.mrf.mxu0  ;;  %v3013_v60 = vpop.f32.mrf.mxu1 }
 0x58d   :  { %v3014_v53 = vadd.f32 %v3013_v60, %v2725_v5 }
 0x58e   :  { %v2838_v16 = vpop.f32.mrf.mxu0  ;;  %v3015_v10 = vpop.f32.mrf.mxu1 }
 0x58f   :  { %3172 = vst [vmem:[#allocation10 + $0x100] sm:$0xff] %v3014_v53  ;;  %v2605_v16 = vadd.f32 %v4721_v17, %v4658_v8  ;;  %v2749_v10 = vadd.f32 %v4721_v17, %v4749_v57 }
 0x590   :  { %v4841_v49 = vpop.f32.mrf.mxu0  ;;  %v3016_v35 = vpop.f32.mrf.mxu1 }
 0x591   :  { %v3017_v52 = vadd.f32 %v3016_v35, %v2728_v14 }
 0x592   :  { %v2841_v43 = vpop.f32.mrf.mxu0  ;;  %v3018_v31 = vpop.f32.mrf.mxu1 }
 0x593   :  { %3173 = vst [vmem:[#allocation10 + $0x108] sm:$0xff] %v3017_v52  ;;  %v2608_v31 = vadd.f32 %v4721_v17, %v4660_v51  ;;  %v2760_v51 = vadd.f32 %v4721_v17, %v4761_v9  ;;  %v2773_v9 = vadd.f32 %v4721_v17, %v4773_v29  ;;  %v2784_v29 = vadd.f32 %v4721_v17, %v4785_v39 }
 0x594   :  { %v4845_v46 = vpop.f32.mrf.mxu0  ;;  %v3021_v21 = vpop.f32.mrf.mxu1  ;;  %v2797_v39 = vadd.f32 %v4721_v17, %v4797_v1  ;;  %v2808_v1 = vadd.f32 %v4721_v17, %v4809_v50  ;;  %v2821_v50 = vadd.f32 %v4721_v17, %v4821_v38  ;;  %v2832_v38 = vadd.f32 %v4721_v17, %v4833_v55 }
 0x595   :  { %v3022_v20 = vadd.f32 %v3021_v21, %v2733_v33  ;;  %v2752_v33 = vadd.f32 %v4721_v17, %v4753_v36  ;;  %v2845_v55 = vadd.f32 %v4721_v17, %v4845_v46 }
 0x596   :  { %v2846_v59 = vpop.f32.mrf.mxu0  ;;  %v3023_v19 = vpop.f32.mrf.mxu1 }
 0x597   :  { %3174 = vst [vmem:[#allocation10 + $0x110] sm:$0xff] %v3022_v20 }
 0x598   :  { %v4849_v56 = vpop.f32.mrf.mxu0  ;;  %v3024_v23 = vpop.f32.mrf.mxu1 }
 0x599   :  { %v3025_v37 = vadd.f32 %v3024_v23, %v2736_v24  ;;  %v2757_v24 = vadd.f32 %v4721_v17, %v4757_v0  ;;  %v2768_v0 = vadd.f32 %v4721_v17, %v4769_v4  ;;  %v2781_v4 = vadd.f32 %v4721_v17, %v4781_v62 }
 0x59a   :  { %v2849_v27 = vpop.f32.mrf.mxu0  ;;  %v3026_v22 = vpop.f32.mrf.mxu1  ;;  %v2792_v62 = vadd.f32 %v4721_v17, %v4793_v44  ;;  %v2805_v44 = vadd.f32 %v4721_v17, %v4805_v48  ;;  %v2816_v48 = vadd.f32 %v4721_v17, %v4817_v63  ;;  %v2829_v63 = vadd.f32 %v4721_v17, %v4829_v25 }
 0x59b   :  { %3175 = vst [vmem:[#allocation10 + $0x118] sm:$0xff] %v3025_v37  ;;  %v2840_v25 = vadd.f32 %v4721_v17, %v4841_v49 }
 0x59c   :  { %v2885_v7 = vpop.f32.mrf.mxu0  ;;  %v3029_v42 = vpop.f32.mrf.mxu1 }
 0x59d   :  { %v2886_v3 = vadd.f32 %v2885_v7, %v2597_v34  ;;  %v3030_v28 = vadd.f32 %v3029_v42, %v2741_v45  ;;  %v2765_v45 = vadd.f32 %v4721_v17, %v4765_v61  ;;  %v2776_v61 = vadd.f32 %v4721_v17, %v4777_v2 }
 0x59e   :  { %v2887_v6 = vpop.f32.mrf.mxu0  ;;  %v3031_v26 = vpop.f32.mrf.mxu1  ;;  %v2789_v2 = vadd.f32 %v4721_v17, %v4789_v30  ;;  %v2800_v30 = vadd.f32 %v4721_v17, %v4801_v11  ;;  %v2813_v11 = vadd.f32 %v4721_v17, %v4813_v32  ;;  %v2824_v32 = vadd.f32 %v4721_v17, %v4825_v54 }
 0x59f   :  { %3140 = vst [vmem:[#allocation10] sm:$0xff] %v2886_v3  ;;  %3176 = vst [vmem:[#allocation10 + $0x120] sm:$0xff] %v3030_v28  ;;  %v2837_v54 = vadd.f32 %v4721_v17, %v4837_v13 }
 0x5a0   :  { %v2888_v40 = vpop.f32.mrf.mxu0  ;;  %v3032_v58 = vpop.f32.mrf.mxu1 }
 0x5a1   :  { %v2889_v5 = vadd.f32 %v2888_v40, %v2600_v47  ;;  %v3033_v60 = vadd.f32 %v3032_v58, %v2744_v12 }
 0x5a2   :  { %v2890_v18 = vpop.f32.mrf.mxu0  ;;  %v3034_v53 = vpop.f32.mrf.mxu1 }
 0x5a3   :  { %3141 = vst [vmem:[#allocation10 + $0x8] sm:$0xff] %v2889_v5  ;;  %3177 = vst [vmem:[#allocation10 + $0x128] sm:$0xff] %v3033_v60 }
 0x5a4   :  { %v2893_v41 = vpop.f32.mrf.mxu0  ;;  %v3037_v14 = vpop.f32.mrf.mxu1 }
 0x5a5   :  { %v2894_v35 = vadd.f32 %v2893_v41, %v2605_v16  ;;  %v3038_v15 = vadd.f32 %v3037_v14, %v2749_v10 }
 0x5a6   :  { %v2895_v52 = vpop.f32.mrf.mxu0  ;;  %v3039_v43 = vpop.f32.mrf.mxu1 }
 0x5a7   :  { %3142 = vst [vmem:[#allocation10 + $0x10] sm:$0xff] %v2894_v35  ;;  %3178 = vst [vmem:[#allocation10 + $0x130] sm:$0xff] %v3038_v15 }
 0x5a8   :  { %v2896_v8 = vpop.f32.mrf.mxu0  ;;  %v3040_v21 = vpop.f32.mrf.mxu1 }
 0x5a9   :  { %v2897_v20 = vadd.f32 %v2896_v8, %v2608_v31  ;;  %v3041_v57 = vadd.f32 %v3040_v21, %v2752_v33 }
 0x5aa   :  { %v3042_v59 = vpop.f32.mrf.mxu1  ;;  %v2898_v19 = vpop.f32.mrf.mxu0 }
 0x5ab   :  { %3143 = vst [vmem:[#allocation10 + $0x18] sm:$0xff] %v2897_v20  ;;  %3179 = vst [vmem:[#allocation10 + $0x138] sm:$0xff] %v3041_v57 }
 0x5ac   :  { %v3045_v23 = vpop.f32.mrf.mxu1 }
 0x5ad   :  { %v3046_v37 = vadd.f32 %v3045_v23, %v2757_v24 }
 0x5ae   :  { %v3047_v27 = vpop.f32.mrf.mxu1 }
 0x5af   :  { %3180 = vst [vmem:[#allocation10 + $0x140] sm:$0xff] %v3046_v37 }
 0x5b0   :  { %v3048_v36 = vpop.f32.mrf.mxu1 }
 0x5b1   :  { %v3049_v22 = vadd.f32 %v3048_v36, %v2760_v51 }
 0x5b2   :  { %v3050_v34 = vpop.f32.mrf.mxu1 }
 0x5b3   :  { %3181 = vst [vmem:[#allocation10 + $0x148] sm:$0xff] %v3049_v22 }
 0x5b4   :  { %v3053_v7 = vpop.f32.mrf.mxu1 }
 0x5b5   :  { %v3054_v42 = vadd.f32 %v3053_v7, %v2765_v45 }
 0x5b6   :  { %v3055_v3 = vpop.f32.mrf.mxu1 }
 0x5b7   :  { %3182 = vst [vmem:[#allocation10 + $0x150] sm:$0xff] %v3054_v42 }
 0x5b8   :  { %v3056_v28 = vpop.f32.mrf.mxu1 }
 0x5b9   :  { %v3057_v6 = vadd.f32 %v3056_v28, %v2768_v0 }
 0x5ba   :  { %v3058_v26 = vpop.f32.mrf.mxu1 }
 0x5bb   :  { %3183 = vst [vmem:[#allocation10 + $0x158] sm:$0xff] %v3057_v6 }
 0x5bc   :  { %v3061_v47 = vpop.f32.mrf.mxu1 }
 0x5bd   :  { %v3062_v12 = vadd.f32 %v3061_v47, %v2773_v9 }
 0x5be   :  { %v3063_v40 = vpop.f32.mrf.mxu1 }
 0x5bf   :  { %3184 = vst [vmem:[#allocation10 + $0x160] sm:$0xff] %v3062_v12 }
 0x5c0   :  { %v3064_v58 = vpop.f32.mrf.mxu1 }
 0x5c1   :  { %v3065_v5 = vadd.f32 %v3064_v58, %v2776_v61 }
 0x5c2   :  { %v3066_v60 = vpop.f32.mrf.mxu1 }
 0x5c3   :  { %3185 = vst [vmem:[#allocation10 + $0x168] sm:$0xff] %v3065_v5 }
 0x5c4   :  { %v3069_v18 = vpop.f32.mrf.mxu1 }
 0x5c5   :  { %v3070_v53 = vadd.f32 %v3069_v18, %v2781_v4 }
 0x5c6   :  { %v3071_v16 = vpop.f32.mrf.mxu1 }
 0x5c7   :  { %3186 = vst [vmem:[#allocation10 + $0x170] sm:$0xff] %v3070_v53 }
 0x5c8   :  { %v3072_v10 = vpop.f32.mrf.mxu1 }
 0x5c9   :  { %v3073_v41 = vadd.f32 %v3072_v10, %v2784_v29 }
 0x5ca   :  { %v3074_v14 = vpop.f32.mrf.mxu1 }
 0x5cb   :  { %3187 = vst [vmem:[#allocation10 + $0x178] sm:$0xff] %v3073_v41 }
 0x5cc   :  { %v3077_v35 = vpop.f32.mrf.mxu1 }
 0x5cd   :  { %v3078_v15 = vadd.f32 %v3077_v35, %v2789_v2  ;;  %v2848_v2 = vadd.f32 %v4721_v17, %v4849_v56 }
 0x5ce   :  { %v3079_v52 = vpop.f32.mrf.mxu1 }
 0x5cf   :  { %3188 = vst [vmem:[#allocation10 + $0x180] sm:$0xff] %v3078_v15 }
 0x5d0   :  { %v3080_v43 = vpop.f32.mrf.mxu1 }
 0x5d1   :  { %v3081_v31 = vadd.f32 %v3080_v43, %v2792_v62 }
 0x5d2   :  { %v3082_v33 = vpop.f32.mrf.mxu1 }
 0x5d3   :  { %3189 = vst [vmem:[#allocation10 + $0x188] sm:$0xff] %v3081_v31 }
 0x5d4   :  { %v3085_v8 = vpop.f32.mrf.mxu1 }
 0x5d5   :  { %v3086_v21 = vadd.f32 %v3085_v8, %v2797_v39 }
 0x5d6   :  { %v3087_v20 = vpop.f32.mrf.mxu1 }
 0x5d7   :  { %3190 = vst [vmem:[#allocation10 + $0x190] sm:$0xff] %v3086_v21 }
 0x5d8   :  { %v3088_v57 = vpop.f32.mrf.mxu1 }
 0x5d9   :  { %v3089_v59 = vadd.f32 %v3088_v57, %v2800_v30 }
 0x5da   :  { %v3090_v19 = vpop.f32.mrf.mxu1 }
 0x5db   :  { %3191 = vst [vmem:[#allocation10 + $0x198] sm:$0xff] %v3089_v59 }
 0x5dc   :  { %v3093_v24 = vpop.f32.mrf.mxu1 }
 0x5dd   :  { %v3094_v23 = vadd.f32 %v3093_v24, %v2805_v44 }
 0x5de   :  { %v3095_v37 = vpop.f32.mrf.mxu1 }
 0x5df   :  { %3192 = vst [vmem:[#allocation10 + $0x1a0] sm:$0xff] %v3094_v23 }
 0x5e0   :  { %v3096_v27 = vpop.f32.mrf.mxu1 }
 0x5e1   :  { %v3097_v51 = vadd.f32 %v3096_v27, %v2808_v1 }
 0x5e2   :  { %v3098_v36 = vpop.f32.mrf.mxu1 }
 0x5e3   :  { %3193 = vst [vmem:[#allocation10 + $0x1a8] sm:$0xff] %v3097_v51 }
 0x5e4   :  { %v3101_v22 = vpop.f32.mrf.mxu1 }
 0x5e5   :  { %v3102_v34 = vadd.f32 %v3101_v22, %v2813_v11 }
 0x5e6   :  { %v3103_v45 = vpop.f32.mrf.mxu1 }
 0x5e7   :  { %3194 = vst [vmem:[#allocation10 + $0x1b0] sm:$0xff] %v3102_v34 }
 0x5e8   :  { %v3104_v7 = vpop.f32.mrf.mxu1 }
 0x5e9   :  { %v3105_v42 = vadd.f32 %v3104_v7, %v2816_v48 }
 0x5ea   :  { %v3106_v3 = vpop.f32.mrf.mxu1 }
 0x5eb   :  { %3195 = vst [vmem:[#allocation10 + $0x1b8] sm:$0xff] %v3105_v42 }
 0x5ec   :  { %v3109_v0 = vpop.f32.mrf.mxu1 }
 0x5ed   :  { %v3110_v28 = vadd.f32 %v3109_v0, %v2821_v50 }
 0x5ee   :  { %v3111_v6 = vpop.f32.mrf.mxu1 }
 0x5ef   :  { %3196 = vst [vmem:[#allocation10 + $0x1c0] sm:$0xff] %v3110_v28 }
 0x5f0   :  { %v3112_v26 = vpop.f32.mrf.mxu1 }
 0x5f1   :  { %v3113_v9 = vadd.f32 %v3112_v26, %v2824_v32 }
 0x5f2   :  { %v3114_v47 = vpop.f32.mrf.mxu1 }
 0x5f3   :  { %3197 = vst [vmem:[#allocation10 + $0x1c8] sm:$0xff] %v3113_v9 }
 0x5f4   :  { %v3117_v12 = vpop.f32.mrf.mxu1 }
 0x5f5   :  { %v3118_v40 = vadd.f32 %v3117_v12, %v2829_v63 }
 0x5f6   :  { %v3119_v61 = vpop.f32.mrf.mxu1 }
 0x5f7   :  { %3198 = vst [vmem:[#allocation10 + $0x1d0] sm:$0xff] %v3118_v40 }
 0x5f8   :  { %v3120_v58 = vpop.f32.mrf.mxu1 }
 0x5f9   :  { %v3121_v5 = vadd.f32 %v3120_v58, %v2832_v38 }
 0x5fa   :  { %v3122_v60 = vpop.f32.mrf.mxu1 }
 0x5fb   :  { %3199 = vst [vmem:[#allocation10 + $0x1d8] sm:$0xff] %v3121_v5 }
 0x5fc   :  { %v3125_v4 = vpop.f32.mrf.mxu1 }
 0x5fd   :  { %v3126_v18 = vadd.f32 %v3125_v4, %v2837_v54 }
 0x5fe   :  { %v3127_v53 = vpop.f32.mrf.mxu1 }
 0x5ff   :  { %3200 = vst [vmem:[#allocation10 + $0x1e0] sm:$0xff] %v3126_v18 }
 0x600   :  { %v3128_v16 = vpop.f32.mrf.mxu1 }
 0x601   :  { %v3129_v29 = vadd.f32 %v3128_v16, %v2840_v25 }
 0x602   :  { %v3130_v10 = vpop.f32.mrf.mxu1 }
 0x603   :  { %3201 = vst [vmem:[#allocation10 + $0x1e8] sm:$0xff] %v3129_v29 }
 0x604   :  { %v3133_v41 = vpop.f32.mrf.mxu1 }
 0x605   :  { %v3134_v14 = vadd.f32 %v3133_v41, %v2845_v55 }
 0x606   :  { %v3135_v13 = vpop.f32.mrf.mxu1 }
 0x607   :  { %3202 = vst [vmem:[#allocation10 + $0x1f0] sm:$0xff] %v3134_v14 }
 0x608   :  { %v3136_v35 = vpop.f32.mrf.mxu1 }
 0x609   :  { %v3137_v49 = vadd.f32 %v3136_v35, %v2848_v2 }
 0x60a   :  { %v3138_v15 = vpop.f32.mrf.mxu1 }
 0x60b   :  { %3203 = vst [vmem:[#allocation10 + $0x1f8] sm:$0xff] %v3137_v49 }
 0x60c   :  { %4145 = shalt.err (!%p4142_p10)
}
 0x60d   :  { %s4172_s24 = smov 128   ;;  %s4173_s25 = smov 8  }
 0x60e   :  { %3215 = dma.vmem_to_hbm [thread:$0]  %s3210_s22, 8192, %s4924_s6, [#allocation4], %s4172_s24, %s4172_s24, %s4173_s25  }
 0x60f   :  { %4160 = dma.done.wait [#allocation4], 8192  }
 0x610   :  { %4161 = vsyncadd [#allocation4], 4294959104 }
 0x611   :  { %3219 = vsyncpa [#allocation3], 1 }
 0x612   :  { %3220 = vsyncpa [#allocation6], 1 }
 0x613   :  { %3221 = vsyncpa [#allocation9], 1 }
 0x614   :  { %3222 = vsyncpa [#allocation4], 1 }

</bundles_post_ra>
